<compile_context>
chip_gen: v5e
topology: v5e:2x2
jax: 0.10.0
libtpu: 0.0.40
codegen_flags: <defaults>
</compile_context>

<pallas_src>
import functools

import numpy as np
import jax
import jax.numpy as jnp
from jax import lax
from jax.experimental import pallas as pl
from jax.experimental.pallas import tpu as pltpu

EPS = 1e-5

# tap order t = (u+1)*3 + (v+1), u = low-res row offset, v = low-res col offset
_OFFSETS = tuple((u, v) for u in (-1, 0, 1) for v in (-1, 0, 1))


def _round_up(x, m):
    return ((x + m - 1) // m) * m


def _vmem_bytes(shape, dtype):
    """VMEM footprint of one buffer incl. (sublane, lane) tile padding."""
    itemsize = jnp.dtype(dtype).itemsize
    sub = {4: 8, 2: 16, 1: 32}.get(itemsize, 8)
    dims = list(shape)
    dims[-1] = _round_up(dims[-1], 128)
    if len(dims) >= 2:
        dims[-2] = _round_up(dims[-2], sub)
    total = itemsize
    for d in dims:
        total *= d
    return total


# ----------------------------------------------------------------------------
# Host-side block-structured weight construction
# ----------------------------------------------------------------------------
def _build_conv1_weights(w1, w_sc, r, in_planes, planes, has_shortcut):
    """(9, M, in_planes) bf16 weights for the fused sub-pixel conv1 (+ 1x1 sc).

    Tap t=(u+1)*3+(v+1) multiplies the input shifted by (u, v) on the low-res
    grid.  Rows [ij*planes + o] are conv1's sub-pixel outputs, rows
    [r^2*planes + ij*planes + o] the shortcut's (only the center tap is
    non-zero there).  Input channels are in the ORIGINAL NCHW order.
    """
    rr = r * r
    cps = in_planes // rr
    mc = rr * planes
    m = 2 * mc if has_shortcut else mc
    n_w1 = planes * cps * 9
    zero = n_w1 + (planes * cps if has_shortcut else 0)
    idx = np.full((9, m, in_planes), zero, dtype=np.int32)
    for i in range(r):
        for j in range(r):
            base = (i * r + j) * planes
            for dy in (-1, 0, 1):
                u, a = divmod(i + dy, r)
                for dx in (-1, 0, 1):
                    v, b = divmod(j + dx, r)
                    t = (u + 1) * 3 + (v + 1)
                    for o in range(planes):
                        for c in range(cps):
                            c_orig = c * rr + a * r + b   # PixelShuffle mapping
                            idx[t, base + o, c_orig] = (
                                ((o * cps + c) * 3 + (dy + 1)) * 3 + (dx + 1))
    pieces = [w1.reshape(-1)]
    if has_shortcut:
        for ij in range(rr):
            base = mc + ij * planes
            for o in range(planes):
                for c in range(cps):
                    idx[4, base + o, c * rr + ij] = n_w1 + o * cps + c
        pieces.append(w_sc.reshape(-1))
    pieces.append(jnp.zeros((1,), w1.dtype))
    flat = jnp.concatenate(pieces)
    return flat[idx].astype(jnp.bfloat16)


def _build_conv2_weights(w2, r, planes):
    """(9, r^2*planes, r^2*planes) bf16 weights for the fused sub-pixel conv2."""
    rr = r * r
    m = rr * planes
    zero = planes * planes * 9
    idx = np.full((9, m, m), zero, dtype=np.int32)
    for i in range(r):
        for j in range(r):
            base = (i * r + j) * planes
            for dy in (-1, 0, 1):
                u, a = divmod(i + dy, r)
                for dx in (-1, 0, 1):
                    v, b = divmod(j + dx, r)
                    t = (u + 1) * 3 + (v + 1)
                    g = a * r + b
                    for o in range(planes):
                        for c in range(planes):
                            idx[t, base + o, g * planes + c] = (
                                ((o * planes + c) * 3 + (dy + 1)) * 3 + (dx + 1))
    flat = jnp.concatenate([w2.reshape(-1), jnp.zeros((1,), w2.dtype)])
    return flat[idx].astype(jnp.bfloat16)


# ----------------------------------------------------------------------------
# Pallas kernels
# ----------------------------------------------------------------------------
def _subpixel_conv_taps(pad_ref, w_ref, acc, *, h, w, gutter):
    """acc += sum_t  W[t] @ shifted_tap_t, handled via lane-offset slices."""
    hw = h * w
    col = lax.broadcasted_iota(jnp.int32, (1, hw), 1) % w
    mask = {-1: col >= 1, 0: None, 1: col < (w - 1)}   # horizontal conv padding
    for t, (u, v) in enumerate(_OFFSETS):
        s = u * w + v
        tap = pad_ref[:, gutter + s:gutter + s + hw]   # (C, hw) bf16
        if mask[v] is not None:
            tap = jnp.where(mask[v], tap, jnp.zeros_like(tap))
        acc = acc + jnp.dot(w_ref[t], tap, preferred_element_type=jnp.float32)
    return acc


def _conv1_kernel(*refs, rr, planes, h, w, gutter, has_shortcut):
    # Fused: BN1+ReLU -> sub-pixel 3x3 conv1 (+ fused sub-pixel 1x1 shortcut)
    # + BN2 batch-stats epilogue.  One batch element per grid step.
    if has_shortcut:
        (x_ref, scale_ref, shift_ref, w_ref,
         out_ref, sc_ref, stats_ref, pad_ref) = refs
    else:
        (x_ref, scale_ref, shift_ref, w_ref,
         out_ref, stats_ref, pad_ref) = refs
        sc_ref = None

    hw = h * w
    cin = x_ref.shape[1]
    mc = rr * planes
    m = w_ref.shape[1]

    # ---- BN1 + ReLU (f32) -> bf16 into the flat zero-gutter buffer ----------
    x = x_ref[0].astype(jnp.float32)                               # (cin, hw)
    act = jnp.maximum(x * scale_ref[...] + shift_ref[...], 0.0)
    pad_ref[:, :gutter] = jnp.zeros((cin, gutter), pad_ref.dtype)
    pad_ref[:, gutter + hw:] = jnp.zeros((cin, gutter), pad_ref.dtype)
    pad_ref[:, gutter:gutter + hw] = act.astype(pad_ref.dtype)

    # ---- 9 accumulating MXU dots: conv1 + shortcut rows together ------------
    acc = jnp.zeros((m, hw), jnp.float32)
    acc = _subpixel_conv_taps(pad_ref, w_ref, acc, h=h, w=w, gutter=gutter)

    y1 = acc[:mc]
    out_ref[0] = y1.astype(out_ref.dtype)                          # lane-dense
    if has_shortcut:
        sc_ref[0] = acc[mc:].astype(sc_ref.dtype)

    # ---- BN2 batch-stats epilogue: one (1, 2*planes) row per batch element --
    y1g = y1.reshape(rr, planes, hw)
    s2 = jnp.sum(y1g, axis=(0, 2)).reshape(1, planes)
    ss2 = jnp.sum(y1g * y1g, axis=(0, 2)).reshape(1, planes)
    stats_ref[0] = jnp.concatenate([s2, ss2], axis=1)


def _conv2_kernel(y_ref, res_ref, scale_ref, shift_ref, w_ref, out_ref, pad_ref,
                  *, h, w, gutter):
    # Fused: BN2+ReLU -> sub-pixel 3x3 conv2 + residual add.
    hw = h * w
    c2 = y_ref.shape[1]

    y = y_ref[0].astype(jnp.float32)                               # (c2, hw)
    act = jnp.maximum(y * scale_ref[...] + shift_ref[...], 0.0)
    pad_ref[:, :gutter] = jnp.zeros((c2, gutter), pad_ref.dtype)
    pad_ref[:, gutter + hw:] = jnp.zeros((c2, gutter), pad_ref.dtype)
    pad_ref[:, gutter:gutter + hw] = act.astype(pad_ref.dtype)

    acc = res_ref[0].astype(jnp.float32)                           # residual
    acc = _subpixel_conv_taps(pad_ref, w_ref, acc, h=h, w=w, gutter=gutter)
    out_ref[0] = acc.astype(out_ref.dtype)


# ----------------------------------------------------------------------------
# Pallas wrappers
# ----------------------------------------------------------------------------
def conv1_fused(x_flat, scale1, shift1, w_all, *, r, planes, h, w, has_shortcut):
    n, cin, hw = x_flat.shape
    rr = r * r
    mc = rr * planes
    m = w_all.shape[1]
    gutter = _round_up(w + 1, 128)

    in_specs = [
        pl.BlockSpec((1, cin, hw), lambda i: (i, 0, 0)),
        pl.BlockSpec((cin, 1), lambda i: (0, 0)),
        pl.BlockSpec((cin, 1), lambda i: (0, 0)),
        pl.BlockSpec((9, m, cin), lambda i: (0, 0, 0)),
    ]
    out_shape = [jax.ShapeDtypeStruct((n, mc, hw), jnp.float32)]
    out_specs = [pl.BlockSpec((1, mc, hw), lambda i: (i, 0, 0))]
    if has_shortcut:
        out_shape.append(jax.ShapeDtypeStruct((n, mc, hw), jnp.float32))
        out_specs.append(pl.BlockSpec((1, mc, hw), lambda i: (i, 0, 0)))
    out_shape.append(jax.ShapeDtypeStruct((n, 1, 2 * planes), jnp.float32))
    out_specs.append(pl.BlockSpec((1, 1, 2 * planes), lambda i: (i, 0, 0)))

    pad_shape = (cin, hw + 2 * gutter)
    vmem = (2 * (_vmem_bytes((1, cin, hw), jnp.float32)
                 + 2 * _vmem_bytes((cin, 1), jnp.float32)
                 + _vmem_bytes((9, m, cin), jnp.bfloat16))
            + 2 * ((1 + int(has_shortcut)) * _vmem_bytes((1, mc, hw), jnp.float32)
                   + _vmem_bytes((1, 1, 2 * planes), jnp.float32))
            + _vmem_bytes(pad_shape, jnp.bfloat16))
    kernel = functools.partial(_conv1_kernel, rr=rr, planes=planes, h=h, w=w,
                               gutter=gutter, has_shortcut=has_shortcut)
    outs = pl.pallas_call(
        kernel,
        grid=(n,),
        in_specs=in_specs,
        out_specs=tuple(out_specs),
        out_shape=tuple(out_shape),
        scratch_shapes=[pltpu.VMEM(pad_shape, jnp.bfloat16)],
        compiler_params=pltpu.CompilerParams(
            dimension_semantics=("parallel",),          # megacore over batch
            vmem_limit_bytes=int(vmem * 1.5) + (4 << 20)),
    )(x_flat, scale1, shift1, w_all)
    if has_shortcut:
        out1, sc, stats = outs
    else:
        out1, stats = outs
        sc = None
    return out1, sc, stats


def conv2_fused(out1, residual, scale2, shift2, w_all, *, h, w):
    n, c2, hw = out1.shape
    m = w_all.shape[1]
    gutter = _round_up(w + 1, 128)

    pad_shape = (c2, hw + 2 * gutter)
    vmem = (2 * (2 * _vmem_bytes((1, c2, hw), jnp.float32)
                 + 2 * _vmem_bytes((c2, 1), jnp.float32)
                 + _vmem_bytes((9, m, c2), jnp.bfloat16))
            + 2 * _vmem_bytes((1, m, hw), jnp.float32)
            + _vmem_bytes(pad_shape, jnp.bfloat16))
    kernel = functools.partial(_conv2_kernel, h=h, w=w, gutter=gutter)
    return pl.pallas_call(
        kernel,
        grid=(n,),
        in_specs=[
            pl.BlockSpec((1, c2, hw), lambda i: (i, 0, 0)),
            pl.BlockSpec((1, residual.shape[1], hw), lambda i: (i, 0, 0)),
            pl.BlockSpec((c2, 1), lambda i: (0, 0)),
            pl.BlockSpec((c2, 1), lambda i: (0, 0)),
            pl.BlockSpec((9, m, c2), lambda i: (0, 0, 0)),
        ],
        out_specs=pl.BlockSpec((1, m, hw), lambda i: (i, 0, 0)),
        out_shape=jax.ShapeDtypeStruct((n, m, hw), jnp.float32),
        scratch_shapes=[pltpu.VMEM(pad_shape, jnp.bfloat16)],
        compiler_params=pltpu.CompilerParams(
            dimension_semantics=("parallel",),
            vmem_limit_bytes=int(vmem * 1.5) + (4 << 20)),
    )(out1, residual, scale2, shift2, w_all)


# ----------------------------------------------------------------------------
# PreActBlockUP forward (upsample='pixel', dropout_p=0.0)
# ----------------------------------------------------------------------------
def preact_block_up_forward(x_nchw, params, *, in_planes, planes, stride):
    r = stride
    rr = r * r
    n, cin, h, w = x_nchw.shape
    assert cin == in_planes and in_planes % rr == 0
    hw = h * w
    has_shortcut = (stride != 1) or (in_planes != planes)
    f32 = jnp.float32

    # NCHW -> (N, C, H*W): a free reshape, channels stay in original order.
    x_flat = x_nchw.reshape(n, in_planes, hw).astype(f32)

    # --- BN1 batch statistics (training mode, biased variance): plain jnp ----
    cnt1 = f32(n * hw)
    s1 = jnp.sum(x_flat, axis=(0, 2))
    ss1 = jnp.sum(x_flat * x_flat, axis=(0, 2))
    mean1 = s1 / cnt1
    var1 = jnp.maximum(ss1 / cnt1 - mean1 * mean1, 0.0)
    scale1 = params["gamma1"].astype(f32) / jnp.sqrt(var1 + EPS)
    shift1 = params["beta1"].astype(f32) - mean1 * scale1

    # --- block-structured bf16 weights for the fused sub-pixel convs ---------
    w1_all = _build_conv1_weights(params["w1"], params.get("w_sc"),
                                  r, in_planes, planes, has_shortcut)
    w2_all = _build_conv2_weights(params["w2"], r, planes)

    # --- fused: BN1+ReLU -> sub-pixel conv1 + 1x1 shortcut + BN2 stats -------
    out1, sc, stats = conv1_fused(
        x_flat, scale1.reshape(in_planes, 1), shift1.reshape(in_planes, 1),
        w1_all, r=r, planes=planes, h=h, w=w, has_shortcut=has_shortcut)

    # --- BN2 batch statistics from the fused epilogue sums -------------------
    cnt2 = f32(n * rr * hw)
    s2 = jnp.sum(stats[:, :, :planes], axis=(0, 1))
    ss2 = jnp.sum(stats[:, :, planes:], axis=(0, 1))
    mean2 = s2 / cnt2
    var2 = jnp.maximum(ss2 / cnt2 - mean2 * mean2, 0.0)
    scale2 = params["gamma2"].astype(f32) / jnp.sqrt(var2 + EPS)
    shift2 = params["beta2"].astype(f32) - mean2 * scale2
    scale2d = jnp.tile(scale2, rr).reshape(rr * planes, 1)
    shift2d = jnp.tile(shift2, rr).reshape(rr * planes, 1)

    # --- fused: BN2+ReLU -> sub-pixel conv2 + residual add -------------------
    residual = sc if has_shortcut else x_flat
    out_d = conv2_fused(out1, residual, scale2d, shift2d, w2_all, h=h, w=w)

    # The only pixel shuffle of the whole block, folded into the NCHW output
    # transpose (single XLA op).
    out = out_d.reshape(n, r, r, planes, h, w).transpose(
        0, 3, 4, 1, 5, 2).reshape(n, planes, h * r, w * r)
    # Dropout2d(p=0.0) (module default) is the identity.
    return out


# ----------------------------------------------------------------------------
# Pure-JAX reference following the PyTorch module structure.
# ----------------------------------------------------------------------------
def _reference_forward(x_nchw, params, *, in_planes, planes, stride):
    r = stride
    f32 = jnp.float32

    def bn_relu(x, gamma, beta):
        mean = jnp.mean(x, axis=(0, 2, 3), keepdims=True)
        var = jnp.mean(jnp.square(x - mean), axis=(0, 2, 3), keepdims=True)
        xh = (x - mean) / jnp.sqrt(var + EPS)
        return jax.nn.relu(xh * gamma.reshape(1, -1, 1, 1)
                           + beta.reshape(1, -1, 1, 1))

    def pixel_shuffle(x):
        n, c, hh, ww = x.shape
        co = c // (r * r)
        return x.reshape(n, co, r, r, hh, ww).transpose(
            0, 1, 4, 2, 5, 3).reshape(n, co, hh * r, ww * r)

    def conv(x, wgt, pad):
        # Same bf16 MXU operands / f32 accumulation as the Pallas kernels.
        return lax.conv_general_dilated(
            x.astype(jnp.bfloat16), wgt.astype(jnp.bfloat16),
            window_strides=(1, 1), padding=[(pad, pad), (pad, pad)],
            dimension_numbers=("NCHW", "OIHW", "NCHW"),
            preferred_element_type=f32)

    x = x_nchw.astype(f32)
    pre1 = bn_relu(x, params["gamma1"], params["beta1"])
    if (stride != 1) or (in_planes != planes):
        shortcut = conv(pixel_shuffle(pre1), params["w_sc"], pad=0)
    else:
        shortcut = x
    out1 = conv(pixel_shuffle(pre1), params["w1"], pad=1)
    pre2 = bn_relu(out1, params["gamma2"], params["beta2"])
    return conv(pre2, params["w2"], pad=1) + shortcut


# ----------------------------------------------------------------------------
if __name__ == "__main__":
    cases = [
        # (name, n, in_planes, planes, stride, h, w)
        ("r2_shortcut", 2, 16, 8, 2, 16, 16),
        ("r1_identity", 2, 8, 8, 1, 16, 8),    # no shortcut, non-square
        ("r3_shortcut", 2, 18, 4, 3, 8, 8),
    ]
    root = jax.random.PRNGKey(0)
    for case_id, (name, n, in_planes, planes, stride, h, w) in enumerate(cases):
        key = jax.random.fold_in(root, case_id)
        kx, kw1, kw2, kwsc, kg1, kb1, kg2, kb2 = jax.random.split(key, 8)
        cps = in_planes // stride ** 2
        has_shortcut = (stride != 1) or (in_planes != planes)

        x_nchw = jax.random.normal(kx, (n, in_planes, h, w), jnp.float32)
        params = {
            "gamma1": 1.0 + 0.1 * jax.random.normal(kg1, (in_planes,), jnp.float32),
            "beta1": 0.1 * jax.random.normal(kb1, (in_planes,), jnp.float32),
            "w1": 0.1 * jax.random.normal(kw1, (planes, cps, 3, 3), jnp.float32),
            "gamma2": 1.0 + 0.1 * jax.random.normal(kg2, (planes,), jnp.float32),
            "beta2": 0.1 * jax.random.normal(kb2, (planes,), jnp.float32),
            "w2": 0.1 * jax.random.normal(kw2, (planes, planes, 3, 3), jnp.float32),
        }
        if has_shortcut:
            params["w_sc"] = 0.1 * jax.random.normal(
                kwsc, (planes, cps, 1, 1), jnp.float32)

        fwd = jax.jit(functools.partial(preact_block_up_forward,
                                        in_planes=in_planes, planes=planes,
                                        stride=stride))
        out = jax.block_until_ready(fwd(x_nchw, params))

        assert out.shape == (n, planes, h * stride, w * stride), (name, out.shape)
        assert bool(jnp.all(jnp.isfinite(out))), name

        ref = _reference_forward(x_nchw, params, in_planes=in_planes,
                                 planes=planes, stride=stride)
        err = float(jnp.max(jnp.abs(out - ref)))
        assert err < 2e-2, f"{name}: max |pallas - reference| = {err}"

    print("KERNEL_OK")
</pallas_src>

<mosaic_0001>
module attributes {stable_mosaic.version = 11 : i64} {
  func.func @_conv1_kernel(%arg0: i32, %arg1: memref<1x16x256xf32, #tpu.memory_space<vmem>>, %arg2: memref<16x1xf32, #tpu.memory_space<vmem>>, %arg3: memref<16x1xf32, #tpu.memory_space<vmem>>, %arg4: memref<9x64x16xbf16, #tpu.memory_space<vmem>>, %arg5: memref<1x32x256xf32, #tpu.memory_space<vmem>>, %arg6: memref<1x32x256xf32, #tpu.memory_space<vmem>>, %arg7: memref<1x1x16xf32, #tpu.memory_space<vmem>>, %arg8: memref<16x512xbf16, #tpu.memory_space<vmem>>) attributes {dimension_semantics = [#tpu.dimension_semantics<parallel>], iteration_bounds = array<i64: 2>, scalar_prefetch = 0 : i64, scratch_operands = 1 : i64, tpu.core_type = #tpu.core_type<tc>, window_params = [{transform_indices = @transform_0, window_bounds = array<i64: 1, 16, 256>}, {pipeline_mode = #tpu.pipeline_mode<synchronous>, transform_indices = @transform_1, window_bounds = array<i64: 16, 1>}, {pipeline_mode = #tpu.pipeline_mode<synchronous>, transform_indices = @transform_2, window_bounds = array<i64: 16, 1>}, {pipeline_mode = #tpu.pipeline_mode<synchronous>, transform_indices = @transform_3, window_bounds = array<i64: 9, 64, 16>}, {transform_indices = @transform_4, window_bounds = array<i64: 1, 32, 256>}, {transform_indices = @transform_5, window_bounds = array<i64: 1, 32, 256>}, {transform_indices = @transform_6, window_bounds = array<i64: 1, 1, 16>}]} {
    %c0 = arith.constant 0 : index
    %c0_0 = arith.constant 0 : index
    %c0_1 = arith.constant 0 : index
    %0 = vector.load %arg1[%c0, %c0_0, %c0_1] : memref<1x16x256xf32, #tpu.memory_space<vmem>>, vector<1x16x256xf32>
    %1 = vector.shape_cast %0 : vector<1x16x256xf32> to vector<16x256xf32>
    %c0_2 = arith.constant 0 : index
    %c0_3 = arith.constant 0 : index
    %2 = vector.load %arg2[%c0_2, %c0_3] : memref<16x1xf32, #tpu.memory_space<vmem>>, vector<16x1xf32>
    %3 = vector.broadcast %2 : vector<16x1xf32> to vector<16x256xf32>
    %4 = arith.mulf %1, %3 : vector<16x256xf32>
    %c0_4 = arith.constant 0 : index
    %c0_5 = arith.constant 0 : index
    %5 = vector.load %arg3[%c0_4, %c0_5] : memref<16x1xf32, #tpu.memory_space<vmem>>, vector<16x1xf32>
    %6 = vector.broadcast %5 : vector<16x1xf32> to vector<16x256xf32>
    %7 = arith.addf %4, %6 : vector<16x256xf32>
    %cst = arith.constant 0.000000e+00 : f32
    %8 = vector.broadcast %cst : f32 to vector<16x256xf32>
    %9 = arith.maximumf %7, %8 : vector<16x256xf32>
    %cst_6 = arith.constant 0.000000e+00 : bf16
    %10 = vector.broadcast %cst_6 : bf16 to vector<16x128xbf16>
    %c0_7 = arith.constant 0 : index
    %c0_8 = arith.constant 0 : index
    %11 = vector.load %arg8[%c0_7, %c0_8] : memref<16x512xbf16, #tpu.memory_space<vmem>>, vector<16x128xbf16>
    tpu.vector_store %arg8[%c0_7, %c0_8], %10 {strides = array<i32>} : memref<16x512xbf16, #tpu.memory_space<vmem>>, vector<16x128xbf16>,
    %cst_9 = arith.constant 0.000000e+00 : bf16
    %12 = vector.broadcast %cst_9 : bf16 to vector<16x128xbf16>
    %c0_10 = arith.constant 0 : index
    %c384 = arith.constant 384 : index
    %13 = vector.load %arg8[%c0_10, %c384] : memref<16x512xbf16, #tpu.memory_space<vmem>>, vector<16x128xbf16>
    tpu.vector_store %arg8[%c0_10, %c384], %12 {strides = array<i32>} : memref<16x512xbf16, #tpu.memory_space<vmem>>, vector<16x128xbf16>,
    %14 = arith.truncf %9 : vector<16x256xf32> to vector<16x256xbf16>
    %c0_11 = arith.constant 0 : index
    %c128 = arith.constant 128 : index
    %15 = vector.load %arg8[%c0_11, %c128] : memref<16x512xbf16, #tpu.memory_space<vmem>>, vector<16x256xbf16>
    tpu.vector_store %arg8[%c0_11, %c128], %14 {strides = array<i32>} : memref<16x512xbf16, #tpu.memory_space<vmem>>, vector<16x256xbf16>,
    %cst_12 = arith.constant 0.000000e+00 : f32
    %16 = vector.broadcast %cst_12 : f32 to vector<64x256xf32>
    %17 = tpu.iota {dimensions = array<i32: 1>} : vector<1x256xi32>
    %c16_i32 = arith.constant 16 : i32
    %c0_i32 = arith.constant 0 : i32
    %18 = arith.cmpi eq, %c16_i32, %c0_i32 : i32
    %c1_i32 = arith.constant 1 : i32
    %19 = arith.select %18, %c1_i32, %c16_i32 : i32
    %20 = vector.broadcast %19 : i32 to vector<1x256xi32>
    %21 = arith.remsi %17, %20 : vector<1x256xi32>
    %c0_i32_13 = arith.constant 0 : i32
    %22 = vector.broadcast %c0_i32_13 : i32 to vector<1x256xi32>
    %23 = arith.cmpi ne, %21, %22 : vector<1x256xi32>
    %c0_i32_14 = arith.constant 0 : i32
    %24 = vector.broadcast %c0_i32_14 : i32 to vector<1x256xi32>
    %25 = arith.cmpi slt, %21, %24 : vector<1x256xi32>
    %c0_i32_15 = arith.constant 0 : i32
    %26 = arith.cmpi slt, %19, %c0_i32_15 : i32
    %27 = vector.broadcast %26 : i1 to vector<1x256xi1>
    %28 = vector.broadcast %27 : vector<1x256xi1> to vector<1x256xi1>
    %29 = arith.xori %25, %28 : vector<1x256xi1>
    %30 = arith.andi %29, %23 : vector<1x256xi1>
    %31 = vector.broadcast %19 : i32 to vector<1x256xi32>
    %32 = arith.addi %21, %31 : vector<1x256xi32>
    %33 = arith.select %30, %32, %21 : vector<1x256xi1>, vector<1x256xi32>
    %c1_i32_16 = arith.constant 1 : i32
    %34 = vector.broadcast %c1_i32_16 : i32 to vector<1x256xi32>
    %35 = arith.cmpi sge, %33, %34 : vector<1x256xi32>
    %c15_i32 = arith.constant 15 : i32
    %36 = vector.broadcast %c15_i32 : i32 to vector<1x256xi32>
    %37 = arith.cmpi slt, %33, %36 : vector<1x256xi32>
    %c0_17 = arith.constant 0 : index
    %c111 = arith.constant 111 : index
    %38 = vector.load %arg8[%c0_17, %c111] : memref<16x512xbf16, #tpu.memory_space<vmem>>, vector<16x256xbf16>
    %cst_18 = arith.constant 0.000000e+00 : bf16
    %39 = vector.broadcast %cst_18 : bf16 to vector<16x256xbf16>
    %40 = vector.shape_cast %35 : vector<1x256xi1> to vector<1x256xi1>
    %41 = vector.broadcast %40 : vector<1x256xi1> to vector<16x256xi1>
    %42 = arith.select %41, %38, %39 : vector<16x256xi1>, vector<16x256xbf16>
    %c0_19 = arith.constant 0 : index
    %c0_20 = arith.constant 0 : index
    %c0_21 = arith.constant 0 : index
    %43 = vector.load %arg4[%c0_19, %c0_20, %c0_21] : memref<9x64x16xbf16, #tpu.memory_space<vmem>>, vector<1x64x16xbf16>
    %44 = vector.shape_cast %43 : vector<1x64x16xbf16> to vector<64x16xbf16>
    %cst_22 = arith.constant dense<0.000000e+00> : vector<64x256xf32>
    %45 = tpu.matmul %44, %42, %cst_22 {dimension_numbers = #tpu.dot_dimension_numbers<[1], [0], [0], [1], [0, 0, 1, 1], [], []>} : vector<64x16xbf16>, vector<16x256xbf16>, vector<64x256xf32> -> vector<64x256xf32>
    %46 = arith.addf %16, %45 : vector<64x256xf32>
    %c0_23 = arith.constant 0 : index
    %c112 = arith.constant 112 : index
    %47 = vector.load %arg8[%c0_23, %c112] : memref<16x512xbf16, #tpu.memory_space<vmem>>, vector<16x256xbf16>
    %c1 = arith.constant 1 : index
    %c0_24 = arith.constant 0 : index
    %c0_25 = arith.constant 0 : index
    %48 = vector.load %arg4[%c1, %c0_24, %c0_25] : memref<9x64x16xbf16, #tpu.memory_space<vmem>>, vector<1x64x16xbf16>
    %49 = vector.shape_cast %48 : vector<1x64x16xbf16> to vector<64x16xbf16>
    %cst_26 = arith.constant dense<0.000000e+00> : vector<64x256xf32>
    %50 = tpu.matmul %49, %47, %cst_26 {dimension_numbers = #tpu.dot_dimension_numbers<[1], [0], [0], [1], [0, 0, 1, 1], [], []>} : vector<64x16xbf16>, vector<16x256xbf16>, vector<64x256xf32> -> vector<64x256xf32>
    %51 = arith.addf %46, %50 : vector<64x256xf32>
    %c0_27 = arith.constant 0 : index
    %c113 = arith.constant 113 : index
    %52 = vector.load %arg8[%c0_27, %c113] : memref<16x512xbf16, #tpu.memory_space<vmem>>, vector<16x256xbf16>
    %cst_28 = arith.constant 0.000000e+00 : bf16
    %53 = vector.broadcast %cst_28 : bf16 to vector<16x256xbf16>
    %54 = vector.shape_cast %37 : vector<1x256xi1> to vector<1x256xi1>
    %55 = vector.broadcast %54 : vector<1x256xi1> to vector<16x256xi1>
    %56 = arith.select %55, %52, %53 : vector<16x256xi1>, vector<16x256xbf16>
    %c2 = arith.constant 2 : index
    %c0_29 = arith.constant 0 : index
    %c0_30 = arith.constant 0 : index
    %57 = vector.load %arg4[%c2, %c0_29, %c0_30] : memref<9x64x16xbf16, #tpu.memory_space<vmem>>, vector<1x64x16xbf16>
    %58 = vector.shape_cast %57 : vector<1x64x16xbf16> to vector<64x16xbf16>
    %cst_31 = arith.constant dense<0.000000e+00> : vector<64x256xf32>
    %59 = tpu.matmul %58, %56, %cst_31 {dimension_numbers = #tpu.dot_dimension_numbers<[1], [0], [0], [1], [0, 0, 1, 1], [], []>} : vector<64x16xbf16>, vector<16x256xbf16>, vector<64x256xf32> -> vector<64x256xf32>
    %60 = arith.addf %51, %59 : vector<64x256xf32>
    %c0_32 = arith.constant 0 : index
    %c127 = arith.constant 127 : index
    %61 = vector.load %arg8[%c0_32, %c127] : memref<16x512xbf16, #tpu.memory_space<vmem>>, vector<16x256xbf16>
    %cst_33 = arith.constant 0.000000e+00 : bf16
    %62 = vector.broadcast %cst_33 : bf16 to vector<16x256xbf16>
    %63 = vector.shape_cast %35 : vector<1x256xi1> to vector<1x256xi1>
    %64 = vector.broadcast %63 : vector<1x256xi1> to vector<16x256xi1>
    %65 = arith.select %64, %61, %62 : vector<16x256xi1>, vector<16x256xbf16>
    %c3 = arith.constant 3 : index
    %c0_34 = arith.constant 0 : index
    %c0_35 = arith.constant 0 : index
    %66 = vector.load %arg4[%c3, %c0_34, %c0_35] : memref<9x64x16xbf16, #tpu.memory_space<vmem>>, vector<1x64x16xbf16>
    %67 = vector.shape_cast %66 : vector<1x64x16xbf16> to vector<64x16xbf16>
    %cst_36 = arith.constant dense<0.000000e+00> : vector<64x256xf32>
    %68 = tpu.matmul %67, %65, %cst_36 {dimension_numbers = #tpu.dot_dimension_numbers<[1], [0], [0], [1], [0, 0, 1, 1], [], []>} : vector<64x16xbf16>, vector<16x256xbf16>, vector<64x256xf32> -> vector<64x256xf32>
    %69 = arith.addf %60, %68 : vector<64x256xf32>
    %c0_37 = arith.constant 0 : index
    %c128_38 = arith.constant 128 : index
    %70 = vector.load %arg8[%c0_37, %c128_38] : memref<16x512xbf16, #tpu.memory_space<vmem>>, vector<16x256xbf16>
    %c4 = arith.constant 4 : index
    %c0_39 = arith.constant 0 : index
    %c0_40 = arith.constant 0 : index
    %71 = vector.load %arg4[%c4, %c0_39, %c0_40] : memref<9x64x16xbf16, #tpu.memory_space<vmem>>, vector<1x64x16xbf16>
    %72 = vector.shape_cast %71 : vector<1x64x16xbf16> to vector<64x16xbf16>
    %cst_41 = arith.constant dense<0.000000e+00> : vector<64x256xf32>
    %73 = tpu.matmul %72, %70, %cst_41 {dimension_numbers = #tpu.dot_dimension_numbers<[1], [0], [0], [1], [0, 0, 1, 1], [], []>} : vector<64x16xbf16>, vector<16x256xbf16>, vector<64x256xf32> -> vector<64x256xf32>
    %74 = arith.addf %69, %73 : vector<64x256xf32>
    %c0_42 = arith.constant 0 : index
    %c129 = arith.constant 129 : index
    %75 = vector.load %arg8[%c0_42, %c129] : memref<16x512xbf16, #tpu.memory_space<vmem>>, vector<16x256xbf16>
    %cst_43 = arith.constant 0.000000e+00 : bf16
    %76 = vector.broadcast %cst_43 : bf16 to vector<16x256xbf16>
    %77 = vector.shape_cast %37 : vector<1x256xi1> to vector<1x256xi1>
    %78 = vector.broadcast %77 : vector<1x256xi1> to vector<16x256xi1>
    %79 = arith.select %78, %75, %76 : vector<16x256xi1>, vector<16x256xbf16>
    %c5 = arith.constant 5 : index
    %c0_44 = arith.constant 0 : index
    %c0_45 = arith.constant 0 : index
    %80 = vector.load %arg4[%c5, %c0_44, %c0_45] : memref<9x64x16xbf16, #tpu.memory_space<vmem>>, vector<1x64x16xbf16>
    %81 = vector.shape_cast %80 : vector<1x64x16xbf16> to vector<64x16xbf16>
    %cst_46 = arith.constant dense<0.000000e+00> : vector<64x256xf32>
    %82 = tpu.matmul %81, %79, %cst_46 {dimension_numbers = #tpu.dot_dimension_numbers<[1], [0], [0], [1], [0, 0, 1, 1], [], []>} : vector<64x16xbf16>, vector<16x256xbf16>, vector<64x256xf32> -> vector<64x256xf32>
    %83 = arith.addf %74, %82 : vector<64x256xf32>
    %c0_47 = arith.constant 0 : index
    %c143 = arith.constant 143 : index
    %84 = vector.load %arg8[%c0_47, %c143] : memref<16x512xbf16, #tpu.memory_space<vmem>>, vector<16x256xbf16>
    %cst_48 = arith.constant 0.000000e+00 : bf16
    %85 = vector.broadcast %cst_48 : bf16 to vector<16x256xbf16>
    %86 = vector.shape_cast %35 : vector<1x256xi1> to vector<1x256xi1>
    %87 = vector.broadcast %86 : vector<1x256xi1> to vector<16x256xi1>
    %88 = arith.select %87, %84, %85 : vector<16x256xi1>, vector<16x256xbf16>
    %c6 = arith.constant 6 : index
    %c0_49 = arith.constant 0 : index
    %c0_50 = arith.constant 0 : index
    %89 = vector.load %arg4[%c6, %c0_49, %c0_50] : memref<9x64x16xbf16, #tpu.memory_space<vmem>>, vector<1x64x16xbf16>
    %90 = vector.shape_cast %89 : vector<1x64x16xbf16> to vector<64x16xbf16>
    %cst_51 = arith.constant dense<0.000000e+00> : vector<64x256xf32>
    %91 = tpu.matmul %90, %88, %cst_51 {dimension_numbers = #tpu.dot_dimension_numbers<[1], [0], [0], [1], [0, 0, 1, 1], [], []>} : vector<64x16xbf16>, vector<16x256xbf16>, vector<64x256xf32> -> vector<64x256xf32>
    %92 = arith.addf %83, %91 : vector<64x256xf32>
    %c0_52 = arith.constant 0 : index
    %c144 = arith.constant 144 : index
    %93 = vector.load %arg8[%c0_52, %c144] : memref<16x512xbf16, #tpu.memory_space<vmem>>, vector<16x256xbf16>
    %c7 = arith.constant 7 : index
    %c0_53 = arith.constant 0 : index
    %c0_54 = arith.constant 0 : index
    %94 = vector.load %arg4[%c7, %c0_53, %c0_54] : memref<9x64x16xbf16, #tpu.memory_space<vmem>>, vector<1x64x16xbf16>
    %95 = vector.shape_cast %94 : vector<1x64x16xbf16> to vector<64x16xbf16>
    %cst_55 = arith.constant dense<0.000000e+00> : vector<64x256xf32>
    %96 = tpu.matmul %95, %93, %cst_55 {dimension_numbers = #tpu.dot_dimension_numbers<[1], [0], [0], [1], [0, 0, 1, 1], [], []>} : vector<64x16xbf16>, vector<16x256xbf16>, vector<64x256xf32> -> vector<64x256xf32>
    %97 = arith.addf %92, %96 : vector<64x256xf32>
    %c0_56 = arith.constant 0 : index
    %c145 = arith.constant 145 : index
    %98 = vector.load %arg8[%c0_56, %c145] : memref<16x512xbf16, #tpu.memory_space<vmem>>, vector<16x256xbf16>
    %cst_57 = arith.constant 0.000000e+00 : bf16
    %99 = vector.broadcast %cst_57 : bf16 to vector<16x256xbf16>
    %100 = vector.shape_cast %37 : vector<1x256xi1> to vector<1x256xi1>
    %101 = vector.broadcast %100 : vector<1x256xi1> to vector<16x256xi1>
    %102 = arith.select %101, %98, %99 : vector<16x256xi1>, vector<16x256xbf16>
    %c8 = arith.constant 8 : index
    %c0_58 = arith.constant 0 : index
    %c0_59 = arith.constant 0 : index
    %103 = vector.load %arg4[%c8, %c0_58, %c0_59] : memref<9x64x16xbf16, #tpu.memory_space<vmem>>, vector<1x64x16xbf16>
    %104 = vector.shape_cast %103 : vector<1x64x16xbf16> to vector<64x16xbf16>
    %cst_60 = arith.constant dense<0.000000e+00> : vector<64x256xf32>
    %105 = tpu.matmul %104, %102, %cst_60 {dimension_numbers = #tpu.dot_dimension_numbers<[1], [0], [0], [1], [0, 0, 1, 1], [], []>} : vector<64x16xbf16>, vector<16x256xbf16>, vector<64x256xf32> -> vector<64x256xf32>
    %106 = arith.addf %97, %105 : vector<64x256xf32>
    %107 = vector.extract_strided_slice %106 {offsets = [0, 0], sizes = [32, 256], strides = [1, 1]} : vector<64x256xf32> to vector<32x256xf32>
    %c0_61 = arith.constant 0 : index
    %c0_62 = arith.constant 0 : index
    %c0_63 = arith.constant 0 : index
    %108 = vector.load %arg5[%c0_61, %c0_62, %c0_63] : memref<1x32x256xf32, #tpu.memory_space<vmem>>, vector<1x32x256xf32>
    %109 = vector.shape_cast %108 : vector<1x32x256xf32> to vector<32x256xf32>
    %110 = vector.shape_cast %107 : vector<32x256xf32> to vector<1x32x256xf32>
    tpu.vector_store %arg5[%c0_61, %c0_62, %c0_63], %110 {strides = array<i32>} : memref<1x32x256xf32, #tpu.memory_space<vmem>>, vector<1x32x256xf32>,
    %111 = vector.extract_strided_slice %106 {offsets = [32, 0], sizes = [32, 256], strides = [1, 1]} : vector<64x256xf32> to vector<32x256xf32>
    %c0_64 = arith.constant 0 : index
    %c0_65 = arith.constant 0 : index
    %c0_66 = arith.constant 0 : index
    %112 = vector.load %arg6[%c0_64, %c0_65, %c0_66] : memref<1x32x256xf32, #tpu.memory_space<vmem>>, vector<1x32x256xf32>
    %113 = vector.shape_cast %112 : vector<1x32x256xf32> to vector<32x256xf32>
    %114 = vector.shape_cast %111 : vector<32x256xf32> to vector<1x32x256xf32>
    tpu.vector_store %arg6[%c0_64, %c0_65, %c0_66], %114 {strides = array<i32>} : memref<1x32x256xf32, #tpu.memory_space<vmem>>, vector<1x32x256xf32>,
    %115 = vector.shape_cast %107 : vector<32x256xf32> to vector<4x8x256xf32>
    %cst_67 = arith.constant dense<0.000000e+00> : vector<8xf32>
    %116 = vector.multi_reduction <add>, %115, %cst_67 [0, 2] : vector<4x8x256xf32> to vector<8xf32>
    %117 = vector.shape_cast %116 : vector<8xf32> to vector<1x8xf32>
    %118 = arith.mulf %115, %115 : vector<4x8x256xf32>
    %cst_68 = arith.constant dense<0.000000e+00> : vector<8xf32>
    %119 = vector.multi_reduction <add>, %118, %cst_68 [0, 2] : vector<4x8x256xf32> to vector<8xf32>
    %120 = vector.shape_cast %119 : vector<8xf32> to vector<1x8xf32>
    %121 = tpu.concatenate %117, %120 in 1 : vector<1x8xf32>, vector<1x8xf32> -> vector<1x16xf32>
    %c0_69 = arith.constant 0 : index
    %c0_70 = arith.constant 0 : index
    %c0_71 = arith.constant 0 : index
    %122 = vector.load %arg7[%c0_69, %c0_70, %c0_71] : memref<1x1x16xf32, #tpu.memory_space<vmem>>, vector<1x1x16xf32>
    %123 = vector.shape_cast %122 : vector<1x1x16xf32> to vector<1x16xf32>
    %124 = vector.shape_cast %121 : vector<1x16xf32> to vector<1x1x16xf32>
    tpu.vector_store %arg7[%c0_69, %c0_70, %c0_71], %124 {strides = array<i32>} : memref<1x1x16xf32, #tpu.memory_space<vmem>>, vector<1x1x16xf32>,
    return
  }
  func.func @transform_0(%arg0: i32) -> (i32, i32, i32) {
    %c0_i32 = arith.constant 0 : i32
    %c0_i32_0 = arith.constant 0 : i32
    %c0_i32_1 = arith.constant 0 : i32
    return %arg0, %c0_i32, %c0_i32_0 : i32, i32, i32
  }
  func.func @transform_1(%arg0: i32) -> (i32, i32) {
    %c0_i32 = arith.constant 0 : i32
    %c0_i32_0 = arith.constant 0 : i32
    %c0_i32_1 = arith.constant 0 : i32
    return %c0_i32, %c0_i32_0 : i32, i32
  }
  func.func @transform_2(%arg0: i32) -> (i32, i32) {
    %c0_i32 = arith.constant 0 : i32
    %c0_i32_0 = arith.constant 0 : i32
    %c0_i32_1 = arith.constant 0 : i32
    return %c0_i32, %c0_i32_0 : i32, i32
  }
  func.func @transform_3(%arg0: i32) -> (i32, i32, i32) {
    %c0_i32 = arith.constant 0 : i32
    %c0_i32_0 = arith.constant 0 : i32
    %c0_i32_1 = arith.constant 0 : i32
    %c0_i32_2 = arith.constant 0 : i32
    return %c0_i32, %c0_i32_0, %c0_i32_1 : i32, i32, i32
  }
  func.func @transform_4(%arg0: i32) -> (i32, i32, i32) {
    %c0_i32 = arith.constant 0 : i32
    %c0_i32_0 = arith.constant 0 : i32
    %c0_i32_1 = arith.constant 0 : i32
    return %arg0, %c0_i32, %c0_i32_0 : i32, i32, i32
  }
  func.func @transform_5(%arg0: i32) -> (i32, i32, i32) {
    %c0_i32 = arith.constant 0 : i32
    %c0_i32_0 = arith.constant 0 : i32
    %c0_i32_1 = arith.constant 0 : i32
    return %arg0, %c0_i32, %c0_i32_0 : i32, i32, i32
  }
  func.func @transform_6(%arg0: i32) -> (i32, i32, i32) {
    %c0_i32 = arith.constant 0 : i32
    %c0_i32_0 = arith.constant 0 : i32
    %c0_i32_1 = arith.constant 0 : i32
    return %arg0, %c0_i32, %c0_i32_0 : i32, i32, i32
  }
}

module attributes {stable_mosaic.version = 11 : i64} {
  func.func @_conv2_kernel(%arg0: i32, %arg1: memref<1x32x256xf32, #tpu.memory_space<vmem>>, %arg2: memref<1x32x256xf32, #tpu.memory_space<vmem>>, %arg3: memref<32x1xf32, #tpu.memory_space<vmem>>, %arg4: memref<32x1xf32, #tpu.memory_space<vmem>>, %arg5: memref<9x32x32xbf16, #tpu.memory_space<vmem>>, %arg6: memref<1x32x256xf32, #tpu.memory_space<vmem>>, %arg7: memref<32x512xbf16, #tpu.memory_space<vmem>>) attributes {dimension_semantics = [#tpu.dimension_semantics<parallel>], iteration_bounds = array<i64: 2>, scalar_prefetch = 0 : i64, scratch_operands = 1 : i64, tpu.core_type = #tpu.core_type<tc>, window_params = [{transform_indices = @transform_0, window_bounds = array<i64: 1, 32, 256>}, {transform_indices = @transform_1, window_bounds = array<i64: 1, 32, 256>}, {pipeline_mode = #tpu.pipeline_mode<synchronous>, transform_indices = @transform_2, window_bounds = array<i64: 32, 1>}, {pipeline_mode = #tpu.pipeline_mode<synchronous>, transform_indices = @transform_3, window_bounds = array<i64: 32, 1>}, {pipeline_mode = #tpu.pipeline_mode<synchronous>, transform_indices = @transform_4, window_bounds = array<i64: 9, 32, 32>}, {transform_indices = @transform_5, window_bounds = array<i64: 1, 32, 256>}]} {
    %c0 = arith.constant 0 : index
    %c0_0 = arith.constant 0 : index
    %c0_1 = arith.constant 0 : index
    %0 = vector.load %arg1[%c0, %c0_0, %c0_1] : memref<1x32x256xf32, #tpu.memory_space<vmem>>, vector<1x32x256xf32>
    %1 = vector.shape_cast %0 : vector<1x32x256xf32> to vector<32x256xf32>
    %c0_2 = arith.constant 0 : index
    %c0_3 = arith.constant 0 : index
    %2 = vector.load %arg3[%c0_2, %c0_3] : memref<32x1xf32, #tpu.memory_space<vmem>>, vector<32x1xf32>
    %3 = vector.broadcast %2 : vector<32x1xf32> to vector<32x256xf32>
    %4 = arith.mulf %1, %3 : vector<32x256xf32>
    %c0_4 = arith.constant 0 : index
    %c0_5 = arith.constant 0 : index
    %5 = vector.load %arg4[%c0_4, %c0_5] : memref<32x1xf32, #tpu.memory_space<vmem>>, vector<32x1xf32>
    %6 = vector.broadcast %5 : vector<32x1xf32> to vector<32x256xf32>
    %7 = arith.addf %4, %6 : vector<32x256xf32>
    %cst = arith.constant 0.000000e+00 : f32
    %8 = vector.broadcast %cst : f32 to vector<32x256xf32>
    %9 = arith.maximumf %7, %8 : vector<32x256xf32>
    %cst_6 = arith.constant 0.000000e+00 : bf16
    %10 = vector.broadcast %cst_6 : bf16 to vector<32x128xbf16>
    %c0_7 = arith.constant 0 : index
    %c0_8 = arith.constant 0 : index
    %11 = vector.load %arg7[%c0_7, %c0_8] : memref<32x512xbf16, #tpu.memory_space<vmem>>, vector<32x128xbf16>
    tpu.vector_store %arg7[%c0_7, %c0_8], %10 {strides = array<i32>} : memref<32x512xbf16, #tpu.memory_space<vmem>>, vector<32x128xbf16>,
    %cst_9 = arith.constant 0.000000e+00 : bf16
    %12 = vector.broadcast %cst_9 : bf16 to vector<32x128xbf16>
    %c0_10 = arith.constant 0 : index
    %c384 = arith.constant 384 : index
    %13 = vector.load %arg7[%c0_10, %c384] : memref<32x512xbf16, #tpu.memory_space<vmem>>, vector<32x128xbf16>
    tpu.vector_store %arg7[%c0_10, %c384], %12 {strides = array<i32>} : memref<32x512xbf16, #tpu.memory_space<vmem>>, vector<32x128xbf16>,
    %14 = arith.truncf %9 : vector<32x256xf32> to vector<32x256xbf16>
    %c0_11 = arith.constant 0 : index
    %c128 = arith.constant 128 : index
    %15 = vector.load %arg7[%c0_11, %c128] : memref<32x512xbf16, #tpu.memory_space<vmem>>, vector<32x256xbf16>
    tpu.vector_store %arg7[%c0_11, %c128], %14 {strides = array<i32>} : memref<32x512xbf16, #tpu.memory_space<vmem>>, vector<32x256xbf16>,
    %c0_12 = arith.constant 0 : index
    %c0_13 = arith.constant 0 : index
    %c0_14 = arith.constant 0 : index
    %16 = vector.load %arg2[%c0_12, %c0_13, %c0_14] : memref<1x32x256xf32, #tpu.memory_space<vmem>>, vector<1x32x256xf32>
    %17 = vector.shape_cast %16 : vector<1x32x256xf32> to vector<32x256xf32>
    %18 = tpu.iota {dimensions = array<i32: 1>} : vector<1x256xi32>
    %c16_i32 = arith.constant 16 : i32
    %c0_i32 = arith.constant 0 : i32
    %19 = arith.cmpi eq, %c16_i32, %c0_i32 : i32
    %c1_i32 = arith.constant 1 : i32
    %20 = arith.select %19, %c1_i32, %c16_i32 : i32
    %21 = vector.broadcast %20 : i32 to vector<1x256xi32>
    %22 = arith.remsi %18, %21 : vector<1x256xi32>
    %c0_i32_15 = arith.constant 0 : i32
    %23 = vector.broadcast %c0_i32_15 : i32 to vector<1x256xi32>
    %24 = arith.cmpi ne, %22, %23 : vector<1x256xi32>
    %c0_i32_16 = arith.constant 0 : i32
    %25 = vector.broadcast %c0_i32_16 : i32 to vector<1x256xi32>
    %26 = arith.cmpi slt, %22, %25 : vector<1x256xi32>
    %c0_i32_17 = arith.constant 0 : i32
    %27 = arith.cmpi slt, %20, %c0_i32_17 : i32
    %28 = vector.broadcast %27 : i1 to vector<1x256xi1>
    %29 = vector.broadcast %28 : vector<1x256xi1> to vector<1x256xi1>
    %30 = arith.xori %26, %29 : vector<1x256xi1>
    %31 = arith.andi %30, %24 : vector<1x256xi1>
    %32 = vector.broadcast %20 : i32 to vector<1x256xi32>
    %33 = arith.addi %22, %32 : vector<1x256xi32>
    %34 = arith.select %31, %33, %22 : vector<1x256xi1>, vector<1x256xi32>
    %c1_i32_18 = arith.constant 1 : i32
    %35 = vector.broadcast %c1_i32_18 : i32 to vector<1x256xi32>
    %36 = arith.cmpi sge, %34, %35 : vector<1x256xi32>
    %c15_i32 = arith.constant 15 : i32
    %37 = vector.broadcast %c15_i32 : i32 to vector<1x256xi32>
    %38 = arith.cmpi slt, %34, %37 : vector<1x256xi32>
    %c0_19 = arith.constant 0 : index
    %c111 = arith.constant 111 : index
    %39 = vector.load %arg7[%c0_19, %c111] : memref<32x512xbf16, #tpu.memory_space<vmem>>, vector<32x256xbf16>
    %cst_20 = arith.constant 0.000000e+00 : bf16
    %40 = vector.broadcast %cst_20 : bf16 to vector<32x256xbf16>
    %41 = vector.shape_cast %36 : vector<1x256xi1> to vector<1x256xi1>
    %42 = vector.broadcast %41 : vector<1x256xi1> to vector<32x256xi1>
    %43 = arith.select %42, %39, %40 : vector<32x256xi1>, vector<32x256xbf16>
    %c0_21 = arith.constant 0 : index
    %c0_22 = arith.constant 0 : index
    %c0_23 = arith.constant 0 : index
    %44 = vector.load %arg5[%c0_21, %c0_22, %c0_23] : memref<9x32x32xbf16, #tpu.memory_space<vmem>>, vector<1x32x32xbf16>
    %45 = vector.shape_cast %44 : vector<1x32x32xbf16> to vector<32x32xbf16>
    %cst_24 = arith.constant dense<0.000000e+00> : vector<32x256xf32>
    %46 = tpu.matmul %45, %43, %cst_24 {dimension_numbers = #tpu.dot_dimension_numbers<[1], [0], [0], [1], [0, 0, 1, 1], [], []>} : vector<32x32xbf16>, vector<32x256xbf16>, vector<32x256xf32> -> vector<32x256xf32>
    %47 = arith.addf %17, %46 : vector<32x256xf32>
    %c0_25 = arith.constant 0 : index
    %c112 = arith.constant 112 : index
    %48 = vector.load %arg7[%c0_25, %c112] : memref<32x512xbf16, #tpu.memory_space<vmem>>, vector<32x256xbf16>
    %c1 = arith.constant 1 : index
    %c0_26 = arith.constant 0 : index
    %c0_27 = arith.constant 0 : index
    %49 = vector.load %arg5[%c1, %c0_26, %c0_27] : memref<9x32x32xbf16, #tpu.memory_space<vmem>>, vector<1x32x32xbf16>
    %50 = vector.shape_cast %49 : vector<1x32x32xbf16> to vector<32x32xbf16>
    %cst_28 = arith.constant dense<0.000000e+00> : vector<32x256xf32>
    %51 = tpu.matmul %50, %48, %cst_28 {dimension_numbers = #tpu.dot_dimension_numbers<[1], [0], [0], [1], [0, 0, 1, 1], [], []>} : vector<32x32xbf16>, vector<32x256xbf16>, vector<32x256xf32> -> vector<32x256xf32>
    %52 = arith.addf %47, %51 : vector<32x256xf32>
    %c0_29 = arith.constant 0 : index
    %c113 = arith.constant 113 : index
    %53 = vector.load %arg7[%c0_29, %c113] : memref<32x512xbf16, #tpu.memory_space<vmem>>, vector<32x256xbf16>
    %cst_30 = arith.constant 0.000000e+00 : bf16
    %54 = vector.broadcast %cst_30 : bf16 to vector<32x256xbf16>
    %55 = vector.shape_cast %38 : vector<1x256xi1> to vector<1x256xi1>
    %56 = vector.broadcast %55 : vector<1x256xi1> to vector<32x256xi1>
    %57 = arith.select %56, %53, %54 : vector<32x256xi1>, vector<32x256xbf16>
    %c2 = arith.constant 2 : index
    %c0_31 = arith.constant 0 : index
    %c0_32 = arith.constant 0 : index
    %58 = vector.load %arg5[%c2, %c0_31, %c0_32] : memref<9x32x32xbf16, #tpu.memory_space<vmem>>, vector<1x32x32xbf16>
    %59 = vector.shape_cast %58 : vector<1x32x32xbf16> to vector<32x32xbf16>
    %cst_33 = arith.constant dense<0.000000e+00> : vector<32x256xf32>
    %60 = tpu.matmul %59, %57, %cst_33 {dimension_numbers = #tpu.dot_dimension_numbers<[1], [0], [0], [1], [0, 0, 1, 1], [], []>} : vector<32x32xbf16>, vector<32x256xbf16>, vector<32x256xf32> -> vector<32x256xf32>
    %61 = arith.addf %52, %60 : vector<32x256xf32>
    %c0_34 = arith.constant 0 : index
    %c127 = arith.constant 127 : index
    %62 = vector.load %arg7[%c0_34, %c127] : memref<32x512xbf16, #tpu.memory_space<vmem>>, vector<32x256xbf16>
    %cst_35 = arith.constant 0.000000e+00 : bf16
    %63 = vector.broadcast %cst_35 : bf16 to vector<32x256xbf16>
    %64 = vector.shape_cast %36 : vector<1x256xi1> to vector<1x256xi1>
    %65 = vector.broadcast %64 : vector<1x256xi1> to vector<32x256xi1>
    %66 = arith.select %65, %62, %63 : vector<32x256xi1>, vector<32x256xbf16>
    %c3 = arith.constant 3 : index
    %c0_36 = arith.constant 0 : index
    %c0_37 = arith.constant 0 : index
    %67 = vector.load %arg5[%c3, %c0_36, %c0_37] : memref<9x32x32xbf16, #tpu.memory_space<vmem>>, vector<1x32x32xbf16>
    %68 = vector.shape_cast %67 : vector<1x32x32xbf16> to vector<32x32xbf16>
    %cst_38 = arith.constant dense<0.000000e+00> : vector<32x256xf32>
    %69 = tpu.matmul %68, %66, %cst_38 {dimension_numbers = #tpu.dot_dimension_numbers<[1], [0], [0], [1], [0, 0, 1, 1], [], []>} : vector<32x32xbf16>, vector<32x256xbf16>, vector<32x256xf32> -> vector<32x256xf32>
    %70 = arith.addf %61, %69 : vector<32x256xf32>
    %c0_39 = arith.constant 0 : index
    %c128_40 = arith.constant 128 : index
    %71 = vector.load %arg7[%c0_39, %c128_40] : memref<32x512xbf16, #tpu.memory_space<vmem>>, vector<32x256xbf16>
    %c4 = arith.constant 4 : index
    %c0_41 = arith.constant 0 : index
    %c0_42 = arith.constant 0 : index
    %72 = vector.load %arg5[%c4, %c0_41, %c0_42] : memref<9x32x32xbf16, #tpu.memory_space<vmem>>, vector<1x32x32xbf16>
    %73 = vector.shape_cast %72 : vector<1x32x32xbf16> to vector<32x32xbf16>
    %cst_43 = arith.constant dense<0.000000e+00> : vector<32x256xf32>
    %74 = tpu.matmul %73, %71, %cst_43 {dimension_numbers = #tpu.dot_dimension_numbers<[1], [0], [0], [1], [0, 0, 1, 1], [], []>} : vector<32x32xbf16>, vector<32x256xbf16>, vector<32x256xf32> -> vector<32x256xf32>
    %75 = arith.addf %70, %74 : vector<32x256xf32>
    %c0_44 = arith.constant 0 : index
    %c129 = arith.constant 129 : index
    %76 = vector.load %arg7[%c0_44, %c129] : memref<32x512xbf16, #tpu.memory_space<vmem>>, vector<32x256xbf16>
    %cst_45 = arith.constant 0.000000e+00 : bf16
    %77 = vector.broadcast %cst_45 : bf16 to vector<32x256xbf16>
    %78 = vector.shape_cast %38 : vector<1x256xi1> to vector<1x256xi1>
    %79 = vector.broadcast %78 : vector<1x256xi1> to vector<32x256xi1>
    %80 = arith.select %79, %76, %77 : vector<32x256xi1>, vector<32x256xbf16>
    %c5 = arith.constant 5 : index
    %c0_46 = arith.constant 0 : index
    %c0_47 = arith.constant 0 : index
    %81 = vector.load %arg5[%c5, %c0_46, %c0_47] : memref<9x32x32xbf16, #tpu.memory_space<vmem>>, vector<1x32x32xbf16>
    %82 = vector.shape_cast %81 : vector<1x32x32xbf16> to vector<32x32xbf16>
    %cst_48 = arith.constant dense<0.000000e+00> : vector<32x256xf32>
    %83 = tpu.matmul %82, %80, %cst_48 {dimension_numbers = #tpu.dot_dimension_numbers<[1], [0], [0], [1], [0, 0, 1, 1], [], []>} : vector<32x32xbf16>, vector<32x256xbf16>, vector<32x256xf32> -> vector<32x256xf32>
    %84 = arith.addf %75, %83 : vector<32x256xf32>
    %c0_49 = arith.constant 0 : index
    %c143 = arith.constant 143 : index
    %85 = vector.load %arg7[%c0_49, %c143] : memref<32x512xbf16, #tpu.memory_space<vmem>>, vector<32x256xbf16>
    %cst_50 = arith.constant 0.000000e+00 : bf16
    %86 = vector.broadcast %cst_50 : bf16 to vector<32x256xbf16>
    %87 = vector.shape_cast %36 : vector<1x256xi1> to vector<1x256xi1>
    %88 = vector.broadcast %87 : vector<1x256xi1> to vector<32x256xi1>
    %89 = arith.select %88, %85, %86 : vector<32x256xi1>, vector<32x256xbf16>
    %c6 = arith.constant 6 : index
    %c0_51 = arith.constant 0 : index
    %c0_52 = arith.constant 0 : index
    %90 = vector.load %arg5[%c6, %c0_51, %c0_52] : memref<9x32x32xbf16, #tpu.memory_space<vmem>>, vector<1x32x32xbf16>
    %91 = vector.shape_cast %90 : vector<1x32x32xbf16> to vector<32x32xbf16>
    %cst_53 = arith.constant dense<0.000000e+00> : vector<32x256xf32>
    %92 = tpu.matmul %91, %89, %cst_53 {dimension_numbers = #tpu.dot_dimension_numbers<[1], [0], [0], [1], [0, 0, 1, 1], [], []>} : vector<32x32xbf16>, vector<32x256xbf16>, vector<32x256xf32> -> vector<32x256xf32>
    %93 = arith.addf %84, %92 : vector<32x256xf32>
    %c0_54 = arith.constant 0 : index
    %c144 = arith.constant 144 : index
    %94 = vector.load %arg7[%c0_54, %c144] : memref<32x512xbf16, #tpu.memory_space<vmem>>, vector<32x256xbf16>
    %c7 = arith.constant 7 : index
    %c0_55 = arith.constant 0 : index
    %c0_56 = arith.constant 0 : index
    %95 = vector.load %arg5[%c7, %c0_55, %c0_56] : memref<9x32x32xbf16, #tpu.memory_space<vmem>>, vector<1x32x32xbf16>
    %96 = vector.shape_cast %95 : vector<1x32x32xbf16> to vector<32x32xbf16>
    %cst_57 = arith.constant dense<0.000000e+00> : vector<32x256xf32>
    %97 = tpu.matmul %96, %94, %cst_57 {dimension_numbers = #tpu.dot_dimension_numbers<[1], [0], [0], [1], [0, 0, 1, 1], [], []>} : vector<32x32xbf16>, vector<32x256xbf16>, vector<32x256xf32> -> vector<32x256xf32>
    %98 = arith.addf %93, %97 : vector<32x256xf32>
    %c0_58 = arith.constant 0 : index
    %c145 = arith.constant 145 : index
    %99 = vector.load %arg7[%c0_58, %c145] : memref<32x512xbf16, #tpu.memory_space<vmem>>, vector<32x256xbf16>
    %cst_59 = arith.constant 0.000000e+00 : bf16
    %100 = vector.broadcast %cst_59 : bf16 to vector<32x256xbf16>
    %101 = vector.shape_cast %38 : vector<1x256xi1> to vector<1x256xi1>
    %102 = vector.broadcast %101 : vector<1x256xi1> to vector<32x256xi1>
    %103 = arith.select %102, %99, %100 : vector<32x256xi1>, vector<32x256xbf16>
    %c8 = arith.constant 8 : index
    %c0_60 = arith.constant 0 : index
    %c0_61 = arith.constant 0 : index
    %104 = vector.load %arg5[%c8, %c0_60, %c0_61] : memref<9x32x32xbf16, #tpu.memory_space<vmem>>, vector<1x32x32xbf16>
    %105 = vector.shape_cast %104 : vector<1x32x32xbf16> to vector<32x32xbf16>
    %cst_62 = arith.constant dense<0.000000e+00> : vector<32x256xf32>
    %106 = tpu.matmul %105, %103, %cst_62 {dimension_numbers = #tpu.dot_dimension_numbers<[1], [0], [0], [1], [0, 0, 1, 1], [], []>} : vector<32x32xbf16>, vector<32x256xbf16>, vector<32x256xf32> -> vector<32x256xf32>
    %107 = arith.addf %98, %106 : vector<32x256xf32>
    %c0_63 = arith.constant 0 : index
    %c0_64 = arith.constant 0 : index
    %c0_65 = arith.constant 0 : index
    %108 = vector.load %arg6[%c0_63, %c0_64, %c0_65] : memref<1x32x256xf32, #tpu.memory_space<vmem>>, vector<1x32x256xf32>
    %109 = vector.shape_cast %108 : vector<1x32x256xf32> to vector<32x256xf32>
    %110 = vector.shape_cast %107 : vector<32x256xf32> to vector<1x32x256xf32>
    tpu.vector_store %arg6[%c0_63, %c0_64, %c0_65], %110 {strides = array<i32>} : memref<1x32x256xf32, #tpu.memory_space<vmem>>, vector<1x32x256xf32>,
    return
  }
  func.func @transform_0(%arg0: i32) -> (i32, i32, i32) {
    %c0_i32 = arith.constant 0 : i32
    %c0_i32_0 = arith.constant 0 : i32
    %c0_i32_1 = arith.constant 0 : i32
    return %arg0, %c0_i32, %c0_i32_0 : i32, i32, i32
  }
  func.func @transform_1(%arg0: i32) -> (i32, i32, i32) {
    %c0_i32 = arith.constant 0 : i32
    %c0_i32_0 = arith.constant 0 : i32
    %c0_i32_1 = arith.constant 0 : i32
    return %arg0, %c0_i32, %c0_i32_0 : i32, i32, i32
  }
  func.func @transform_2(%arg0: i32) -> (i32, i32) {
    %c0_i32 = arith.constant 0 : i32
    %c0_i32_0 = arith.constant 0 : i32
    %c0_i32_1 = arith.constant 0 : i32
    return %c0_i32, %c0_i32_0 : i32, i32
  }
  func.func @transform_3(%arg0: i32) -> (i32, i32) {
    %c0_i32 = arith.constant 0 : i32
    %c0_i32_0 = arith.constant 0 : i32
    %c0_i32_1 = arith.constant 0 : i32
    return %c0_i32, %c0_i32_0 : i32, i32
  }
  func.func @transform_4(%arg0: i32) -> (i32, i32, i32) {
    %c0_i32 = arith.constant 0 : i32
    %c0_i32_0 = arith.constant 0 : i32
    %c0_i32_1 = arith.constant 0 : i32
    %c0_i32_2 = arith.constant 0 : i32
    return %c0_i32, %c0_i32_0, %c0_i32_1 : i32, i32, i32
  }
  func.func @transform_5(%arg0: i32) -> (i32, i32, i32) {
    %c0_i32 = arith.constant 0 : i32
    %c0_i32_0 = arith.constant 0 : i32
    %c0_i32_1 = arith.constant 0 : i32
    return %arg0, %c0_i32, %c0_i32_0 : i32, i32, i32
  }
}

</mosaic_0001>

<bundles_post_ra>
// kernel: tile.18
= control target key start
LH: loop header
LB: loop body
LE: loop exit
PB: predicated region body
PF: predicated region fallthrough
CT: control target
= control target key end

     0   :  { %s22_s0 = inlined_call_operand.vmem [shape: f32[8], index: 0, kind: input, shape index: {}]   ;;  %s23_s1 = inlined_call_operand.vmem [shape: f32[4,8], index: 1, kind: output, shape index: {}]  }
   0x1   :  { %v4_v0 = vld [vmem:[%s22_s0] ss:$0 sm:$0xff] }
   0x2   :  { %5 = vst [vmem:[%s23_s1] sm:$0xf] %v4_v0 }

// kernel: tile.0
= control target key start
LH: loop header
LB: loop body
LE: loop exit
PB: predicated region body
PF: predicated region fallthrough
CT: control target
= control target key end

     0   :  { %s66_s8 = smov 125   ;;  %s67_s9 = smov 123   ;;  %vm7_vm0 = vcmask 7168   ;;  %s117_s0 = inlined_call_operand.vmem [shape: f32[4,8], index: 0, kind: input, shape index: {}]   ;;  %s118_s1 = inlined_call_operand.vmem [shape: f32[32,1], index: 1, kind: output, shape index: {}]  }
   0x1   :  { %v4_v0 = vld [vmem:[%s117_s0] sm:$0xf]  ;;  %s65_s0 = smov 127   ;;  %s68_s10 = smov 126  }
   0x2   :  { %5 = vst [vmem:[#allocation0] sm:$0xf] %v4_v0  ;;  %s69_s11 = smov 124   ;;  %s70_s12 = smov 122  }
   0x3   :  { %s71_s13 = smov 121  }
   0x9   :  { %v9_v1 = vld [vmem:[#allocation0] sm:$0xf]  }
   0xa   :  { %v21_v2 = vld [vmem:[#allocation0] sm:$0xf]   ;;  %10 = vrot.lane.b32.xlu0 %v9_v1, %s65_s0 }
   0xb   :  { %22 = vrot.lane.b32.xlu1 %v21_v2, %s66_s8  ;;  %v33_v3 = vld [vmem:[#allocation0] sm:$0xf]  }
   0xc   :  { %34 = vrot.lane.b32.xlu2 %v33_v3, %s67_s9  ;;  %v15_v4 = vld [vmem:[#allocation0] sm:$0xf]  }
   0xd   :  { %v27_v5 = vld [vmem:[#allocation0] sm:$0xf]  }
   0xe   :  { %v39_v6 = vld [vmem:[#allocation0] sm:$0xf]  }
   0xf   :  { %v45_v7 = vld [vmem:[#allocation0] sm:$0xf]  }
  0x10   :  { %v6_v8 = vld [vmem:[#allocation0] sm:$0xf]  }
  0x11   :  { %8 = vst.msk [vmem:[%s118_s1] ss:$8 sm:$0xf] %vm7_vm0, %v6_v8  }
  0x12   :  { %16 = vrot.lane.b32.xlu0 %v15_v4, %s68_s10 }
  0x13   :  { %28 = vrot.lane.b32.xlu1 %v27_v5, %s69_s11 }
  0x14   :  { %40 = vrot.lane.b32.xlu2 %v39_v6, %s70_s12 }
  0x1a   :  { %46 = vrot.lane.b32.xlu0 %v45_v7, %s71_s13 }
  0x66   :  { %v35_v9 = vpop.permute.xlu2 %34  }
  0x67   :  { %55 = vst.msk [vmem:[%s118_s1 + $0x5] ss:$8 sm:$0xf] %vm7_vm0, %v35_v9  }
  0x6e   :  { %v41_v10 = vpop.permute.xlu2 %40  }
  0x6f   :  { %56 = vst.msk [vmem:[%s118_s1 + $0x6] ss:$8 sm:$0xf] %vm7_vm0, %v41_v10  }
  0x7c   :  { %v11_v11 = vpop.permute.xlu0 %10  }
  0x7d   :  { %v23_v12 = vpop.permute.xlu1 %22   ;;  %51 = vst.msk [vmem:[%s118_s1 + $0x1] ss:$8 sm:$0xf] %vm7_vm0, %v11_v11  }
  0x7e   :  { %53 = vst.msk [vmem:[%s118_s1 + $0x3] ss:$8 sm:$0xf] %vm7_vm0, %v23_v12  }
  0x84   :  { %v17_v13 = vpop.permute.xlu0 %16  }
  0x85   :  { %v29_v14 = vpop.permute.xlu1 %28   ;;  %52 = vst.msk [vmem:[%s118_s1 + $0x2] ss:$8 sm:$0xf] %vm7_vm0, %v17_v13  }
  0x86   :  { %54 = vst.msk [vmem:[%s118_s1 + $0x4] ss:$8 sm:$0xf] %vm7_vm0, %v29_v14  }
  0x8c   :  { %v47_v15 = vpop.permute.xlu0 %46  }
  0x8d   :  { %57 = vst.msk [vmem:[%s118_s1 + $0x7] ss:$8 sm:$0xf] %vm7_vm0, %v47_v15  }

// kernel: preact_block_up_forward.2
= control target key start
LH: loop header
LB: loop body
LE: loop exit
PB: predicated region body
PF: predicated region fallthrough
CT: control target
= control target key end

     0   :  { %s2325_s21 = smov 0   ;;  %s3060_s0 = inlined_call_operand.vmem [shape: f32[2,16,256], index: 0, kind: input, shape index: {}]   ;;  %s3061_s1 = inlined_call_operand.vmem [shape: f32[16,1], index: 1, kind: input, shape index: {}]   ;;  %s3062_s2 = inlined_call_operand.vmem [shape: f32[16,1], index: 2, kind: input, shape index: {}]   ;;  %s3063_s3 = inlined_call_operand.vmem [shape: bf16[9,64,16], index: 3, kind: input, shape index: {}]   ;;  %s3064_s4 = inlined_call_operand.vmem [shape: f32[2,32,256], index: 4, kind: output, shape index: {0}]   ;;  %s3065_s5 = inlined_call_operand.vmem [shape: f32[2,32,256], index: 5, kind: output, shape index: {1}]   ;;  %s3066_s6 = inlined_call_operand.vmem [shape: f32[2,1,16], index: 6, kind: output, shape index: {2}]  }
   0x1 LB: > { %s1880_s22 = sadd.s32 4294967295, %s2279_s21   ;;  %p1884_p0 = scmp.ge.s32.totalorder %s2279_s21, 1  ;;  %s2279_s21 = sphi %s2325_s21, %s17_s21  }
   0x2   : > { %p217_p1 = scmp.lt.s32.totalorder %s2279_s21, 3 }
   0x4   : > { %p218_p2 = pnand %p1884_p0, %p217_p1 }
   0x6   : > { %221 = sbr.rel (%p218_p2) target bundleno = 976 (0x3d0), region = 36 }
   0xb   : > { %v296_v0 = vld [vmem:[%s3062_s2] sm:$0xff]  ;;  %v324_v2 = vlaneseq  ;;  %v2281_v3 = vmov 0   ;;  %v297_v8 = vld [vmem:[%s3062_s2 + $0x8] sm:$0xff]  ;;  %s2282_s7 = smov 111   ;;  %s2283_s8 = smov 113   ;;  %vm368_vm6 = vcmask 908288  }
   0xc   : > { %v280_v1 = vld [vmem:[%s3061_s1] sm:$0xff]  ;;  %2272 = vset.pattern.permute.xlu1 %v2281_v3  ;;  %316 = vst [vmem:[#allocation2] sm:$0xf] %v2281_v3  ;;  %2271 = vset.pattern.permute.xlu0 %v2281_v3  ;;  %v281_v9 = vld [vmem:[%s3061_s1 + $0x8] sm:$0xff]  ;;  %p255_p3 = scmp.lt.s32.totalorder %s1880_s22, 1  ;;  %s2284_s9 = smov 16   ;;  %v2381_v38 = vunpack.c.l.b16 %v2281_v3  ;;  %v2384_v39 = vunpack.c.h.b16 %v2281_v3 }
   0xd   : > { %317 = vst [vmem:[#allocation2 + $0x10] sm:$0xf] %v2281_v3  ;;  %300 = vperm.xlu1 %2272, %v296_v0   ;;  %284 = vperm.xlu0 %2271, %v280_v1   ;;  %v2343_v4 = vand.u32 127, %v324_v2  ;;  %vm643_vm7 = vcmask 924672   ;;  %s2285_s14 = smov 17   ;;  %s2286_s15 = smov 15  }
   0xe   : > { %318 = vst [vmem:[#allocation2 + $0xc] sm:$0xf] %v2281_v3  ;;  %s3106_s22 = smov (!%p255_p3, %s1880_s22), 1  ;;  %s2287_s16 = smov 127  }
   0xf   : > { %3069 = vst [vmem:[#allocation3_spill] sm:$0xff] %v2343_v4  ;;  %v326_v5 = vadd.s32 128, %v2343_v4  ;;  %v331_v6 = vand.u32 15, %v2343_v4  ;;  %s2205_s10 = sshll.u32 %s3106_s22, 5  ;;  %s2288_s19 = smov 1  }
  0x10   : > { %319 = vst [vmem:[#allocation2 + $0x1c] sm:$0xf] %v2281_v3  ;;  %s259_s13 = scalar_lea.vmem %s3060_s0, %s2205_s10  ;;  %s272_s18 = scalar_lea.vmem %s3066_s6, %s3106_s22 }
  0x11   : > { %v338_v7 = vand.u32 15, %v326_v5  ;;  %vm351_vm0 = vcmp.ge.s32.totalorder %v331_v6, 1  ;;  %vm353_vm3 = vcmp.lt.s32.totalorder %v331_v6, 15  ;;  %v276_v15 = vld [vmem:[%s259_s13] sm:$0xff]  ;;  %v277_v16 = vld [vmem:[%s259_s13 + $0x8] sm:$0xff]  ;;  %v278_v27 = vld [vmem:[%s259_s13 + $0x10] sm:$0xff] }
  0x12   : > { %v279_v28 = vld [vmem:[%s259_s13 + $0x18] sm:$0xff] }
  0x13   : > { %vm352_vm1 = vcmp.ge.s32.totalorder %v338_v7, 1  ;;  %vm354_vm4 = vcmp.lt.s32.totalorder %v338_v7, 15  ;;  %v1917_v12 = vld [vmem:[#allocation2] sm:$0xf] }
  0x14   : > { %vm363_vm2 = vmpackc.low %vm352_vm1, %vm351_vm0  ;;  %v2209_v13 = vld [vmem:[#allocation2 + $0xc] sm:$0xf0] }
  0x15   : > { %305 = vperm.xlu1 %2272, %v297_v8   ;;  %289 = vperm.xlu0 %2271, %v281_v9   ;;  %v2356_v10 = vsel %vm363_vm2, 65537, %v2281_v3  ;;  %vm638_vm5 = vmpackc.low %vm354_vm4, %vm353_vm3  ;;  %v1918_v14 = vor.u32 %v2209_v13, %v1917_v12  ;;  %vm444_vm4 = vcmask 130048  }
  0x16   : > { %365 = vrot.lane.b32.xlu2 %v2356_v10, %s2282_s7  ;;  %v2361_v11 = vsel %vm638_vm5, 65537, %v2281_v3  ;;  %vm559_vm5 = vcmask 138240  }
  0x1d   : > { %438 = vrot.lane.b32.xlu0 %v1918_v14, %s2284_s9 }
  0x1e   : > { %640 = vrot.lane.b32.xlu2 %v2361_v11, %s2283_s8 }
  0x70   : > { %v366_v17 = vpop.permute.xlu2 %365 }
  0x71   : > { %v367_v26 = vrot.slane %v366_v17, 4 }
  0x73   : > { %v369_v31 = vsel %vm368_vm6, %v367_v26, %v366_v17  ;;  %v377_v49 = vunpack.c.l.b16 %v367_v26  ;;  %v378_v50 = vunpack.c.h.b16 %v367_v26 }
  0x74   : > { %v370_v40 = vunpack.c.l.b16 %v369_v31  ;;  %v371_v41 = vunpack.c.h.b16 %v369_v31 }
  0x75   : > { %vm2407_vm11 = vcmp.ne.s32.totalorder %v377_v49, %v2381_v38  ;;  %vm2412_vm12 = vcmp.ne.s32.totalorder %v378_v50, %v2384_v39 }
  0x76   : > { %vm2389_vm8 = vcmp.ne.s32.totalorder %v370_v40, %v2381_v38  ;;  %vm2394_vm9 = vcmp.ne.s32.totalorder %v371_v41, %v2384_v39  ;;  %vm383_vm15 = vmpackc.low %vm2412_vm12, %vm2407_vm11 }
  0x77   : > { %vm376_vm10 = vmpackc.low %vm2394_vm9, %vm2389_vm8  ;;  %vm711_vm8 = vcmask 121856   ;;  %vm805_vm9 = vcmask 1039360  }
  0x78   : > { %v641_v35 = vpop.permute.xlu2 %640 }
  0x79   : > { %v642_v44 = vrot.slane %v641_v35, 4 }
  0x7b   : > { %v644_v48 = vsel %vm643_vm7, %v642_v44, %v641_v35  ;;  %v652_v61 = vunpack.c.l.b16 %v642_v44  ;;  %v653_v7 = vunpack.c.h.b16 %v642_v44 }
  0x7c   : > { %v645_v52 = vunpack.c.l.b16 %v644_v48  ;;  %v646_v53 = vunpack.c.h.b16 %v644_v48 }
  0x7d   : > { %vm656_vm1 = vcmp.ne.s32.totalorder %v652_v61, %v2381_v38  ;;  %vm657_vm2 = vcmp.ne.s32.totalorder %v653_v7, %v2384_v39 }
  0x7e   : > { %vm2425_vm13 = vcmp.ne.s32.totalorder %v645_v52, %v2381_v38  ;;  %vm2430_vm14 = vcmp.ne.s32.totalorder %v646_v53, %v2384_v39  ;;  %vm658_vm3 = vmpackc.low %vm657_vm2, %vm656_vm1 }
  0x7f   : > { %v301_v18 = vpop.permute.xlu1 %300  ;;  %v285_v19 = vpop.permute.xlu0 %284  ;;  %vm651_vm0 = vmpackc.low %vm2430_vm14, %vm2425_vm13 }
  0x80   : > { %v292_v20 = vmul.f32 %v285_v19, %v276_v15  ;;  %v293_v21 = vmul.f32 %v285_v19, %v277_v16 }
  0x82   : > { %v308_v22 = vadd.f32 %v301_v18, %v292_v20  ;;  %v309_v23 = vadd.f32 %v301_v18, %v293_v21 }
  0x84   : > { %v312_v24 = vmax.f32 %v308_v22, 0.0  ;;  %v313_v25 = vmax.f32 %v309_v23, 0.0 }
  0x86   : > { %v2376_v29 = vpack.c.bf16 %v313_v25, %v312_v24 }
  0x87   : > { %v290_v30 = vpop.permute.xlu0 %289  ;;  %v306_v34 = vpop.permute.xlu1 %305 }
  0x88   : > { %322 = vst [vmem:[#allocation2 + $0x4] sm:$0xff] %v2376_v29  ;;  %v294_v32 = vmul.f32 %v290_v30, %v278_v27  ;;  %v295_v33 = vmul.f32 %v290_v30, %v279_v28 }
  0x8a   : > { %v310_v36 = vadd.f32 %v306_v34, %v294_v32  ;;  %v311_v37 = vadd.f32 %v306_v34, %v295_v33 }
  0x8c   : > { %v314_v42 = vmax.f32 %v310_v36, 0.0  ;;  %v315_v43 = vmax.f32 %v311_v37, 0.0 }
  0x8e   : > { %v2386_v45 = vpack.c.bf16 %v315_v43, %v314_v42  ;;  %v2215_v42 = vld [vmem:[%s3063_s3 + $0x20] sm:$0xff] }
  0x8f   : > { %v2400_v51 = vld [vmem:[#allocation2] sm:$0xff]  ;;  %v1925_v57 = vld [vmem:[#allocation2 + $0x8] sm:$0xf]  ;;  %v439_v35 = vpop.permute.xlu0 %438 }
  0x90   : > { %323 = vst [vmem:[#allocation2 + $0x14] sm:$0xff] %v2386_v45  ;;  %v384_v56 = vsel %vm376_vm10, %v2400_v51, 0  ;;  %v2208_v58 = vld [vmem:[#allocation2 + $0x4] sm:$0xf]  ;;  %v2440_v5 = vld [vmem:[#allocation2 + $0x8] sm:$0xf] }
  0x91   : > { %v544_v8 = vunpack.c.l.b16 %v384_v56  ;;  %v385_v14 = vsel %vm383_vm15, %v2440_v5, 0  ;;  %v659_v18 = vsel %vm651_vm0, %v2400_v51, 0  ;;  %v545_v20 = vunpack.c.h.b16 %v384_v56  ;;  %v2049_v55 = vld [vmem:[#allocation2 + $0x4] sm:$0xf]  ;;  %v2227_v56 = vld [vmem:[#allocation2 + $0x8] sm:$0xf] }
  0x92   : > { %v546_v19 = vunpack.c.l.b16 %v385_v14  ;;  %v696_v24 = vunpack.c.l.b16 %v659_v18  ;;  %v660_v27 = vsel %vm658_vm3, %v2440_v5, 0  ;;  %v697_v32 = vunpack.c.h.b16 %v659_v18 }
  0x93   : > { %v698_v31 = vunpack.c.l.b16 %v660_v27  ;;  %v2214_v27 = vld [vmem:[%s3063_s3 + $0x18] sm:$0xff] }
  0x97   : > { %v2422_v59 = vld [vmem:[#allocation2 + $0x10] sm:$0xff]  ;;  %v2210_v62 = vld [vmem:[#allocation2 + $0x14] sm:$0xf0] }
  0x98   : > { %v1919_v63 = vld [vmem:[#allocation2 + $0x10] sm:$0xf0]  ;;  %v1926_v1 = vor.u32 %v2210_v62, %v1925_v57  ;;  %v386_v3 = vsel %vm376_vm10, %v2422_v59, 0  ;;  %v2442_v6 = vld [vmem:[#allocation2 + $0x18] sm:$0xf]  ;;  %v661_v15 = vsel %vm651_vm0, %v2422_v59, 0 }
  0x99   : > { %v1922_v2 = vor.u32 %v2208_v58, %v1919_v63  ;;  %v547_v9 = vunpack.c.l.b16 %v386_v3  ;;  %v387_v12 = vsel %vm383_vm15, %v2442_v6, 0  ;;  %v548_v17 = vunpack.c.h.b16 %v386_v3  ;;  %v2228_v50 = vld [vmem:[#allocation2 + $0x10] sm:$0xf0]  ;;  %v2051_v52 = vld [vmem:[#allocation2 + $0x14] sm:$0xf0] }
  0x9a   : > { %442 = vrot.lane.b32.xlu2 %v1926_v1, %s2284_s9  ;;  %v549_v16 = vunpack.c.l.b16 %v387_v12  ;;  %v699_v21 = vunpack.c.l.b16 %v661_v15  ;;  %v662_v25 = vsel %vm658_vm3, %v2442_v6, 0  ;;  %v700_v30 = vunpack.c.h.b16 %v661_v15 }
  0x9b   : > { %440 = vrot.lane.b32.xlu1 %v1922_v2, %s2284_s9  ;;  %v550_v13 = vpack.c.b16 %v547_v9, %v544_v8  ;;  %v551_v23 = vpack.c.b16 %v548_v17, %v545_v20  ;;  %v701_v28 = vunpack.c.l.b16 %v662_v25  ;;  %v2050_v60 = vor.u32 %v2228_v50, %v2049_v55  ;;  %v2213_v25 = vld [vmem:[%s3063_s3 + $0x10] sm:$0xff] }
  0x9c   : > { %v552_v22 = vpack.c.b16 %v549_v16, %v546_v19  ;;  %v702_v26 = vpack.c.b16 %v699_v21, %v696_v24  ;;  %v703_v34 = vpack.c.b16 %v700_v30, %v697_v32  ;;  %v2054_v61 = vor.u32 %v2227_v56, %v2051_v52  ;;  %v2220_v24 = vld [vmem:[%s3063_s3 + $0x48] sm:$0xff] }
  0x9d   : > { %553 = vrot.lane.b32.xlu0 %v550_v13, %s2285_s14  ;;  %v704_v33 = vpack.c.b16 %v701_v28, %v698_v31  ;;  %v2222_v28 = vld [vmem:[%s3063_s3 + $0x58] sm:$0xff]  ;;  %v2229_v31 = vld [vmem:[%s3063_s3 + $0x80] sm:$0xff]  ;;  %vm873_vm0 = vcmask 7168   ;;  %v2230_v52 = vld [vmem:[%s3063_s3 + $0x88] sm:$0xff] }
  0xa2   : > { %557 = vrot.lane.b32.xlu2 %v552_v22, %s2285_s14 }
  0xa3   : > { %555 = vrot.lane.b32.xlu1 %v551_v23, %s2285_s14  ;;  %v2212_v23 = vld [vmem:[%s3063_s3 + $0x8] sm:$0xff] }
  0xa5   : > { %705 = vrot.lane.b32.xlu0 %v702_v26, %s2286_s15  ;;  %v2221_v26 = vld [vmem:[%s3063_s3 + $0x50] sm:$0xff] }
  0xaa   : > { %709 = vrot.lane.b32.xlu2 %v704_v33, %s2286_s15 }
  0xab   : > { %707 = vrot.lane.b32.xlu1 %v703_v34, %s2286_s15 }
  0xad   : > { %802 = vrot.lane.b32.xlu0 %v2356_v10, %s2287_s16 }
  0xf4   : > { %v443_v36 = vpop.permute.xlu2 %442 }
  0xfc   : > { %v558_v44 = vpop.permute.xlu2 %557 }
 0x104   : > { %v710_v53 = vpop.permute.xlu2 %709 }
 0x10d   : > { %v441_v37 = vpop.permute.xlu1 %440 }
 0x10e   : > { %v445_v40 = vsel %vm444_vm4, %v439_v35, %v441_v37  ;;  %v446_v41 = vsel %vm444_vm4, %v441_v37, %v443_v36  ;;  %v2223_v37 = vld [vmem:[%s3063_s3 + $0x60] sm:$0xff] }
 0x10f   : > { %469 = vmatpush.bf16.msra.mxu0 %v445_v40  ;;  %2252 = vmatpush.bf16.msra.mxu2 %v445_v40  ;;  %v554_v43 = vpop.permute.xlu0 %553 }
 0x110   : > { %498 = vmatpush.bf16.msra.mxu1 %v446_v41  ;;  %2253 = vmatpush.bf16.msra.mxu3 %v446_v41 }
 0x112   : > { %1927 = vmatmul.msk.bf16.vlgmr.msra.gmra.mxu0 %vm444_vm4, %v2215_v42 }
 0x113   : > { %1931 = vmatmul.msk.bf16.vlgmr.msra.gmra.mxu1 %vm444_vm4, %v2215_v42 }
 0x115   : > { %v556_v46 = vpop.permute.xlu1 %555 }
 0x116   : > { %v560_v47 = vsel %vm559_vm5, %v554_v43, %v556_v46  ;;  %v561_v48 = vsel %vm559_vm5, %v556_v46, %v558_v44 }
 0x117   : > { %583 = vmatpush.bf16.msrb.mxu2 %v560_v47  ;;  %612 = vmatpush.bf16.msrb.mxu3 %v561_v48  ;;  %v706_v49 = vpop.permute.xlu0 %705  ;;  %v2235_v47 = vld [vmem:[#allocation2 + $0x18] sm:$0xf0] }
 0x11d   : > { %v708_v54 = vpop.permute.xlu1 %707 }
 0x11e   : > { %v712_v57 = vsel %vm711_vm8, %v706_v49, %v708_v54  ;;  %v713_v58 = vsel %vm711_vm8, %v708_v54, %v710_v53 }
 0x11f   : > { %735 = vmatpush.bf16.msrb.mxu0 %v712_v57  ;;  %764 = vmatpush.bf16.msrb.mxu1 %v713_v58  ;;  %v803_v62 = vpop.permute.xlu0 %802  ;;  %v2575_v58 = vld [vmem:[#allocation2 + $0xc] sm:$0xf] }
 0x120   : > { %v804_v63 = vrot.slane %v803_v62, 4 }
 0x122   : > { %v806_v0 = vsel %vm805_vm9, %v804_v63, %v803_v62  ;;  %v814_v1 = vunpack.c.l.b16 %v804_v63  ;;  %v815_v2 = vunpack.c.h.b16 %v804_v63 }
 0x123   : > { %1024 = vmatpush.bf16.msra.mxu0 %v2050_v60  ;;  %1053 = vmatpush.bf16.msra.mxu1 %v2054_v61  ;;  %v807_v3 = vunpack.c.l.b16 %v806_v0  ;;  %v808_v7 = vunpack.c.h.b16 %v806_v0  ;;  %v2577_v60 = vld [vmem:[#allocation2 + $0x1c] sm:$0xf] }
 0x124   : > { %vm818_vm10 = vcmp.ne.s32.totalorder %v814_v1, %v2381_v38  ;;  %vm819_vm11 = vcmp.ne.s32.totalorder %v815_v2, %v2384_v39 }
 0x125   : > { %vm811_vm12 = vcmp.ne.s32.totalorder %v807_v3, %v2381_v38  ;;  %vm812_vm13 = vcmp.ne.s32.totalorder %v808_v7, %v2384_v39  ;;  %vm820_vm14 = vmpackc.low %vm819_vm11, %vm818_vm10 }
 0x126   : > { %vm813_vm15 = vmpackc.low %vm812_vm13, %vm811_vm12  ;;  %v822_v8 = vsel %vm820_vm14, %v2440_v5, 0  ;;  %v824_v9 = vsel %vm820_vm14, %v2442_v6, 0  ;;  %v2217_v5 = vld [vmem:[%s3063_s3 + $0x30] sm:$0xff]  ;;  %v2219_v6 = vld [vmem:[%s3063_s3 + $0x40] sm:$0xff] }
 0x127   : > { %v821_v12 = vsel %vm813_vm15, %v2400_v51, 0  ;;  %v823_v13 = vsel %vm813_vm15, %v2422_v59, 0  ;;  %v860_v14 = vunpack.c.l.b16 %v822_v8  ;;  %v863_v15 = vunpack.c.l.b16 %v824_v9  ;;  %1929 = vmatmul.msk.bf16.vlgmr.msra.gmra.mxu2 %vm444_vm4, %v2217_v5  ;;  %1933 = vmatmul.msk.bf16.vlgmr.msra.gmra.mxu3 %vm444_vm4, %v2217_v5  ;;  %v2218_v51 = vld [vmem:[%s3063_s3 + $0x38] sm:$0xff]  ;;  %v2216_v59 = vld [vmem:[%s3063_s3 + $0x28] sm:$0xff] }
 0x128   : > { %v859_v16 = vunpack.c.h.b16 %v821_v12  ;;  %v862_v17 = vunpack.c.h.b16 %v823_v13  ;;  %v858_v18 = vunpack.c.l.b16 %v821_v12  ;;  %v861_v19 = vunpack.c.l.b16 %v823_v13  ;;  %1928 = vmatmul.msk.bf16.gmra.mxu0 %vm444_vm4, %v2216_v59  ;;  %1932 = vmatmul.msk.bf16.gmra.mxu1 %vm444_vm4, %v2216_v59 }
 0x129   : > { %v866_v20 = vpack.c.b16 %v863_v15, %v860_v14 }
 0x12a   : > { %v865_v21 = vpack.c.b16 %v862_v17, %v859_v16  ;;  %v864_v22 = vpack.c.b16 %v861_v19, %v858_v18  ;;  %v2224_v17 = vld [vmem:[%s3063_s3 + $0x68] sm:$0xff] }
 0x12b   : > { %871 = vrot.lane.b32.xlu0 %v866_v20, %s2288_s19 }
 0x12c   : > { %869 = vrot.lane.b32.xlu2 %v865_v21, %s2288_s19  ;;  %867 = vrot.lane.b32.xlu1 %v864_v22, %s2288_s19 }
 0x134   : > { %1255 = vrot.lane.b32.xlu2 %v2356_v10, %s2286_s15  ;;  %1095 = vrot.lane.b32.xlu1 %v2361_v11, %s2288_s19  ;;  %v2211_v10 = vld [vmem:[%s3063_s3] sm:$0xff] }
 0x137   : > { %1930 = vmatmul.msk.bf16.gmra.mxu2 %vm444_vm4, %v2218_v51  ;;  %1934 = vmatmul.msk.bf16.gmra.mxu3 %vm444_vm4, %v2218_v51 }
 0x138   : > { %1983 = vmatmul.msk.bf16.vlgmr.msrb.gmra.mxu0 %vm444_vm4, %v2219_v6  ;;  %1987 = vmatmul.msk.bf16.vlgmr.msrb.gmra.mxu1 %vm444_vm4, %v2219_v6 }
 0x147   : > { %1951 = vmatmul.msk.bf16.vlgmr.msrb.gmra.mxu2 %vm444_vm4, %v2211_v10  ;;  %1955 = vmatmul.msk.bf16.vlgmr.msrb.gmra.mxu3 %vm444_vm4, %v2211_v10 }
 0x148   : > { %1984 = vmatmul.msk.bf16.gmra.mxu0 %vm444_vm4, %v2220_v24  ;;  %1988 = vmatmul.msk.bf16.gmra.mxu1 %vm444_vm4, %v2220_v24 }
 0x157   : > { %1952 = vmatmul.msk.bf16.gmra.mxu2 %vm444_vm4, %v2212_v23  ;;  %1956 = vmatmul.msk.bf16.gmra.mxu3 %vm444_vm4, %v2212_v23 }
 0x158   : > { %1985 = vmatmul.msk.bf16.gmra.mxu0 %vm444_vm4, %v2221_v26  ;;  %1989 = vmatmul.msk.bf16.gmra.mxu1 %vm444_vm4, %v2221_v26 }
 0x167   : > { %1953 = vmatmul.msk.bf16.gmra.mxu2 %vm444_vm4, %v2213_v25  ;;  %1957 = vmatmul.msk.bf16.gmra.mxu3 %vm444_vm4, %v2213_v25 }
 0x168   : > { %1986 = vmatmul.msk.bf16.gmra.mxu0 %vm444_vm4, %v2222_v28  ;;  %1990 = vmatmul.msk.bf16.gmra.mxu1 %vm444_vm4, %v2222_v28 }
 0x177   : > { %1954 = vmatmul.msk.bf16.gmra.mxu2 %vm444_vm4, %v2214_v27  ;;  %1958 = vmatmul.msk.bf16.gmra.mxu3 %vm444_vm4, %v2214_v27  ;;  %v2231_v27 = vld [vmem:[%s3063_s3 + $0x90] sm:$0xff] }
 0x178   : > { %2055 = vmatmul.msk.bf16.vlgmr.msra.gmra.mxu0 %vm444_vm4, %v2229_v31  ;;  %2059 = vmatmul.msk.bf16.vlgmr.msra.gmra.mxu1 %vm444_vm4, %v2229_v31 }
 0x186   : > { %v870_v30 = vpop.permute.xlu2 %869 }
 0x188   : > { %2056 = vmatmul.msk.bf16.gmra.mxu0 %vm444_vm4, %v2230_v52  ;;  %2060 = vmatmul.msk.bf16.gmra.mxu1 %vm444_vm4, %v2230_v52 }
 0x18e   : > { %v1256_v33 = vpop.permute.xlu2 %1255 }
 0x18f   : > { %v1257_v40 = vrot.slane %v1256_v33, 4  ;;  %v2623_v26 = vpop.f32.mrf.mxu0 }
 0x190   : > { %v2628_v31 = vpop.f32.mrf.mxu1 }
 0x191   : > { %v1266_v41 = vunpack.c.l.b16 %v1257_v40  ;;  %v1267_v42 = vunpack.c.h.b16 %v1257_v40  ;;  %v1258_v43 = vsel %vm711_vm8, %v1257_v40, %v1256_v33 }
 0x192   : > { %v1259_v49 = vunpack.c.l.b16 %v1258_v43  ;;  %v1260_v50 = vunpack.c.h.b16 %v1258_v43 }
 0x193   : > { %vm2562_vm1 = vcmp.ne.s32.totalorder %v1266_v41, %v2381_v38  ;;  %vm2567_vm2 = vcmp.ne.s32.totalorder %v1267_v42, %v2384_v39  ;;  %v2153_v41 = vld [vmem:[#allocation2 + $0x4] sm:$0xf]  ;;  %v2225_v42 = vld [vmem:[%s3063_s3 + $0x70] sm:$0xff] }
 0x194   : > { %vm1272_vm3 = vmpackc.low %vm2567_vm2, %vm2562_vm1  ;;  %vm2588_vm11 = vcmp.ne.s32.totalorder %v1259_v49, %v2381_v38  ;;  %vm2593_vm12 = vcmp.ne.s32.totalorder %v1260_v50, %v2384_v39 }
 0x195   : > { %v1274_v1 = vsel %vm1272_vm3, %v2575_v58, 0  ;;  %v1276_v2 = vsel %vm1272_vm3, %v2577_v60, 0  ;;  %vm1265_vm1 = vmpackc.low %vm2593_vm12, %vm2588_vm11 }
 0x196   : > { %v1273_v20 = vsel %vm1265_vm1, %v2376_v29, 0  ;;  %v1275_v21 = vsel %vm1265_vm1, %v2386_v45, 0  ;;  %v1312_v22 = vunpack.c.l.b16 %v1274_v1  ;;  %v1315_v5 = vunpack.c.l.b16 %v1276_v2 }
 0x197   : > { %v1311_v51 = vunpack.c.h.b16 %v1273_v20  ;;  %v1314_v59 = vunpack.c.h.b16 %v1275_v21  ;;  %v1310_v10 = vunpack.c.l.b16 %v1273_v20  ;;  %v1313_v6 = vunpack.c.l.b16 %v1275_v21 }
 0x198   : > { %v1318_v24 = vpack.c.b16 %v1315_v5, %v1312_v22  ;;  %2057 = vmatmul.msk.bf16.gmra.mxu0 %vm444_vm4, %v2231_v27  ;;  %2061 = vmatmul.msk.bf16.gmra.mxu1 %vm444_vm4, %v2231_v27 }
 0x199   : > { %v1317_v28 = vpack.c.b16 %v1314_v59, %v1311_v51 }
 0x19d   : > { %v872_v32 = vpop.permute.xlu0 %871 }
 0x19e   : > { %v875_v34 = vsel %vm873_vm0, %v870_v30, %v872_v32  ;;  %v868_v35 = vpop.permute.xlu1 %867  ;;  %v2155_v32 = vld [vmem:[#allocation2 + $0x14] sm:$0xf0] }
 0x19f   : > { %v874_v36 = vsel %vm873_vm0, %v868_v35, %v870_v30  ;;  %926 = vmatpush.bf16.msra.mxu3 %v875_v34  ;;  %v1316_v30 = vpack.c.b16 %v1313_v6, %v1310_v10  ;;  %v2234_v34 = vld [vmem:[#allocation2 + $0x10] sm:$0xf0]  ;;  %v2233_v35 = vld [vmem:[#allocation2 + $0x8] sm:$0xf] }
 0x1a0   : > { %897 = vmatpush.bf16.msra.mxu2 %v874_v36  ;;  %v2158_v40 = vor.u32 %v2233_v35, %v2155_v32  ;;  %v2154_v43 = vor.u32 %v2234_v34, %v2153_v41 }
 0x1a2   : > { %2019 = vmatmul.msk.bf16.vlgmr.msra.gmra.mxu3 %vm444_vm4, %v2223_v37 }
 0x1a3   : > { %2015 = vmatmul.msk.bf16.vlgmr.msra.gmra.mxu2 %vm444_vm4, %v2223_v37  ;;  %v2639_v37 = vpop.f32.mrf.mxu0 }
 0x1a6   : > { %v1096_v44 = vpop.permute.xlu1 %1095 }
 0x1a7   : > { %v1097_v46 = vrot.slane %v1096_v44, 4 }
 0x1a9   : > { %v1098_v53 = vsel %vm873_vm0, %v1097_v46, %v1096_v44  ;;  %v1106_v54 = vunpack.c.l.b16 %v1097_v46  ;;  %v1107_v55 = vunpack.c.h.b16 %v1097_v46  ;;  %v2644_v44 = vpop.f32.mrf.mxu1  ;;  %v2161_v46 = vld [vmem:[#allocation2 + $0xc] sm:$0xf] }
 0x1aa   : > { %v1099_v56 = vunpack.c.l.b16 %v1098_v53  ;;  %v1100_v57 = vunpack.c.h.b16 %v1098_v53  ;;  %v2619_v23 = vpop.f32.mrf.mxu2  ;;  %v2621_v25 = vpop.f32.mrf.mxu3  ;;  %v2162_v49 = vor.u32 %v2235_v47, %v2161_v46  ;;  %v2232_v53 = vld [vmem:[%s3063_s3 + $0x98] sm:$0xff] }
 0x1ab   : > { %vm1110_vm8 = vcmp.ne.s32.totalorder %v1106_v54, %v2381_v38  ;;  %vm1111_vm10 = vcmp.ne.s32.totalorder %v1107_v55, %v2384_v39  ;;  %v476_v52 = vpop.f32.mrf.mxu0  ;;  %2058 = vmatmul.msk.bf16.gmra.mxu0 %vm444_vm4, %v2232_v53  ;;  %2062 = vmatmul.msk.bf16.gmra.mxu1 %vm444_vm4, %v2232_v53 }
 0x1ac   : > { %vm1103_vm13 = vcmp.ne.s32.totalorder %v1099_v56, %v2381_v38  ;;  %vm1104_vm14 = vcmp.ne.s32.totalorder %v1100_v57, %v2384_v39  ;;  %vm1112_vm15 = vmpackc.low %vm1111_vm10, %vm1110_vm8  ;;  %v2226_v57 = vld [vmem:[%s3063_s3 + $0x78] sm:$0xff] }
 0x1ad   : > { %vm1105_vm0 = vmpackc.low %vm1104_vm14, %vm1103_vm13  ;;  %v1114_v63 = vsel %vm1112_vm15, %v2575_v58, 0  ;;  %v1116_v0 = vsel %vm1112_vm15, %v2577_v60, 0 }
 0x1ae   : > { %v1113_v3 = vsel %vm1105_vm0, %v2376_v29, 0  ;;  %v1115_v7 = vsel %vm1105_vm0, %v2386_v45, 0  ;;  %v1152_v8 = vunpack.c.l.b16 %v1114_v63  ;;  %v1155_v9 = vunpack.c.l.b16 %v1116_v0 }
 0x1af   : > { %v1151_v12 = vunpack.c.h.b16 %v1113_v3  ;;  %v1154_v13 = vunpack.c.h.b16 %v1115_v7  ;;  %v1150_v14 = vunpack.c.l.b16 %v1113_v3  ;;  %v1153_v15 = vunpack.c.l.b16 %v1115_v7 }
 0x1b0   : > { %v1158_v16 = vpack.c.b16 %v1155_v9, %v1152_v8 }
 0x1b1   : > { %v1157_v18 = vpack.c.b16 %v1154_v13, %v1151_v12  ;;  %v1156_v19 = vpack.c.b16 %v1153_v15, %v1150_v14  ;;  %v505_v54 = vpop.f32.mrf.mxu1 }
 0x1b2   : > { %1163 = vrot.lane.b32.xlu2 %v1158_v16, %s2287_s16  ;;  %2020 = vmatmul.msk.bf16.gmra.mxu3 %vm444_vm4, %v2224_v17  ;;  %v2635_v33 = vpop.f32.mrf.mxu2  ;;  %v2637_v36 = vpop.f32.mrf.mxu3 }
 0x1b3   : > { %1161 = vrot.lane.b32.xlu1 %v1157_v18, %s2287_s16  ;;  %1159 = vrot.lane.b32.xlu0 %v1156_v19, %s2287_s16  ;;  %v2663_v56 = vpop.f32.mrf.mxu0 }
 0x1b4   : > { %2016 = vmatmul.msk.bf16.gmra.mxu2 %vm444_vm4, %v2224_v17 }
 0x1b9   : > { %v2668_v61 = vpop.f32.mrf.mxu1 }
 0x1ba   : > { %1323 = vrot.lane.b32.xlu2 %v1318_v24, %s2283_s8  ;;  %v2650_v48 = vpop.f32.mrf.mxu2  ;;  %v2652_v50 = vpop.f32.mrf.mxu3 }
 0x1bb   : > { %1321 = vrot.lane.b32.xlu1 %v1317_v28, %s2283_s8  ;;  %1319 = vrot.lane.b32.xlu0 %v1316_v30, %s2283_s8  ;;  %s2289_s8 = smov 112   ;;  %v737_v0 = vpop.f32.mrf.mxu0 }
 0x1c1   : > { %v766_v1 = vpop.f32.mrf.mxu1 }
 0x1c2   : > { %1459 = vrot.lane.b32.xlu2 %v2158_v40, %s2289_s8  ;;  %2021 = vmatmul.msk.bf16.gmra.mxu3 %vm444_vm4, %v2225_v42  ;;  %v2661_v55 = vpop.f32.mrf.mxu3 }
 0x1c3   : > { %1457 = vrot.lane.b32.xlu1 %v2154_v43, %s2289_s8  ;;  %1554 = vrot.lane.b32.xlu0 %v2361_v11, %s2285_s14  ;;  %v2659_v11 = vpop.f32.mrf.mxu2  ;;  %v2672_v2 = vpop.f32.mrf.mxu0 }
 0x1c4   : > { %2017 = vmatmul.msk.bf16.gmra.mxu2 %vm444_vm4, %v2225_v42 }
 0x1c9   : > { %v2678_v8 = vpop.f32.mrf.mxu1 }
 0x1ca   : > { %v614_v63 = vpop.f32.mrf.mxu3 }
 0x1cb   : > { %1461 = vrot.lane.b32.xlu0 %v2162_v49, %s2289_s8  ;;  %v585_v62 = vpop.f32.mrf.mxu2  ;;  %v742_v9 = vpop.f32.mrf.mxu0  ;;  %v615_v28 = vadd.f32 %v614_v63, %v2628_v31 }
 0x1cc   : > { %v586_v27 = vadd.f32 %v585_v62, %v2623_v26 }
 0x1cd   : > { %v2704_v32 = vadd.f32 %v766_v1, %v615_v28 }
 0x1ce   : > { %v2702_v30 = vadd.f32 %v737_v0, %v586_v27 }
 0x1d1   : > { %v771_v12 = vpop.f32.mrf.mxu1 }
 0x1d2   : > { %2022 = vmatmul.msk.bf16.gmra.mxu3 %vm444_vm4, %v2226_v57  ;;  %v2676_v7 = vpop.f32.mrf.mxu3 }
 0x1d3   : > { %v2674_v3 = vpop.f32.mrf.mxu2  ;;  %v2680_v15 = vpop.f32.mrf.mxu0 }
 0x1d4   : > { %2018 = vmatmul.msk.bf16.gmra.mxu2 %vm444_vm4, %v2226_v57 }
 0x1d9   : > { %v2682_v16 = vpop.f32.mrf.mxu1 }
 0x1da   : > { %v619_v14 = vpop.f32.mrf.mxu3 }
 0x1db   : > { %v590_v13 = vpop.f32.mrf.mxu2  ;;  %v747_v19 = vpop.f32.mrf.mxu0  ;;  %v620_v31 = vadd.f32 %v619_v14, %v505_v54 }
 0x1dc   : > { %v591_v26 = vadd.f32 %v590_v13, %v476_v52  ;;  %v2236_v52 = vld [vmem:[%s3063_s3 + $0xa0] sm:$0xff] }
 0x1dd   : > { %v2724_v53 = vadd.f32 %v771_v12, %v620_v31 }
 0x1de   : > { %v2722_v49 = vadd.f32 %v742_v9, %v591_v26 }
 0x1e1   : > { %v776_v20 = vpop.f32.mrf.mxu1 }
 0x1e2   : > { %v2686_v18 = vpop.f32.mrf.mxu3 }
 0x1e3   : > { %v2684_v17 = vpop.f32.mrf.mxu2  ;;  %v2688_v5 = vpop.f32.mrf.mxu0 }
 0x1e9   : > { %v2690_v51 = vpop.f32.mrf.mxu1 }
 0x1ea   : > { %v624_v22 = vpop.f32.mrf.mxu3 }
 0x1eb   : > { %v595_v21 = vpop.f32.mrf.mxu2  ;;  %v2696_v6 = vpop.f32.mrf.mxu0  ;;  %v625_v28 = vadd.f32 %v624_v22, %v2621_v25 }
 0x1ec   : > { %v596_v14 = vadd.f32 %v595_v21, %v2619_v23 }
 0x1ed   : > { %v2745_v31 = vadd.f32 %v776_v20, %v625_v28 }
 0x1ee   : > { %v2743_v26 = vadd.f32 %v747_v19, %v596_v14  ;;  %v2237_v14 = vld [vmem:[%s3063_s3 + $0xa8] sm:$0xff] }
 0x1f1   : > { %v2698_v24 = vpop.f32.mrf.mxu1 }
 0x1f2   : > { %v2694_v10 = vpop.f32.mrf.mxu3 }
 0x1f3   : > { %v2692_v59 = vpop.f32.mrf.mxu2  ;;  %v2712_v41 = vpop.f32.mrf.mxu0 }
 0x1f4   : > { %3091 = vst [vmem:[#allocation5_spill] sm:$0xff] %v2712_v41 }
 0x1f9   : > { %v2706_v34 = vpop.f32.mrf.mxu1 }
 0x1fa   : > { %3090 = vst [vmem:[#allocation4_spill] sm:$0xff] %v2706_v34  ;;  %v2710_v40 = vpop.f32.mrf.mxu3 }
 0x1fb   : > { %v2708_v35 = vpop.f32.mrf.mxu2  ;;  %v2720_v47 = vpop.f32.mrf.mxu0 }
 0x201   : > { %v2714_v42 = vpop.f32.mrf.mxu1 }
 0x202   : > { %v2718_v46 = vpop.f32.mrf.mxu3 }
 0x203   : > { %v2716_v43 = vpop.f32.mrf.mxu2  ;;  %v2737_v9 = vpop.f32.mrf.mxu0 }
 0x209   : > { %v2726_v62 = vpop.f32.mrf.mxu1 }
 0x20b   : > { %v2756_v25 = vpop.f32.mrf.mxu0 }
 0x20c   : > { %v1164_v57 = vpop.permute.xlu2 %1163 }
 0x211   : > { %v2754_v23 = vpop.f32.mrf.mxu1 }
 0x214   : > { %v1324_v12 = vpop.permute.xlu2 %1323 }
 0x21c   : > { %v1460_v19 = vpop.permute.xlu2 %1459 }
 0x225   : > { %v1162_v63 = vpop.permute.xlu1 %1161  ;;  %v1160_v0 = vpop.permute.xlu0 %1159 }
 0x226   : > { %v1166_v1 = vsel %vm805_vm9, %v1162_v63, %v1164_v57  ;;  %v1165_v27 = vsel %vm805_vm9, %v1160_v0, %v1162_v63  ;;  %v2733_v54 = vpop.f32.mrf.mxu2  ;;  %v2735_v13 = vpop.f32.mrf.mxu3  ;;  %vm1463_vm9 = vcmask 916480  }
 0x227   : > { %1188 = vmatpush.bf16.msrb.mxu2 %v1165_v27  ;;  %1217 = vmatpush.bf16.msrb.mxu3 %v1166_v1  ;;  %v2240_v27 = vld [vmem:[%s3063_s3 + $0xc0] sm:$0xff] }
 0x22a   : > { %2087 = vmatmul.msk.bf16.vlgmr.msrb.gmra.mxu2 %vm444_vm4, %v2236_v52  ;;  %2091 = vmatmul.msk.bf16.vlgmr.msrb.gmra.mxu3 %vm444_vm4, %v2236_v52 }
 0x22d   : > { %v1322_v57 = vpop.permute.xlu1 %1321  ;;  %v1320_v63 = vpop.permute.xlu0 %1319 }
 0x22e   : > { %v1326_v0 = vsel %vm643_vm7, %v1322_v57, %v1324_v12  ;;  %v1325_v1 = vsel %vm643_vm7, %v1320_v63, %v1322_v57  ;;  %v901_v4 = vpop.f32.mrf.mxu2  ;;  %v2752_v52 = vpop.f32.mrf.mxu3  ;;  %v588_v63 = vadd.f32 %v2674_v3, %v2639_v37  ;;  %v617_v37 = vadd.f32 %v2676_v7, %v2644_v44 }
 0x22f   : > { %1348 = vmatpush.bf16.msrb.mxu0 %v1325_v1  ;;  %1377 = vmatpush.bf16.msrb.mxu1 %v1326_v0  ;;  %v630_v3 = vadd.f32 %v2710_v40, %v2652_v50 }
 0x232   : > { %2119 = vmatmul.msk.bf16.vlgmr.msrb.gmra.mxu0 %vm444_vm4, %v2240_v27  ;;  %2123 = vmatmul.msk.bf16.vlgmr.msrb.gmra.mxu1 %vm444_vm4, %v2240_v27 }
 0x235   : > { %v1458_v20 = vpop.permute.xlu1 %1457  ;;  %v1555_v21 = vpop.permute.xlu0 %1554 }
 0x236   : > { %v1464_v22 = vsel %vm1463_vm9, %v1458_v20, %v1460_v19  ;;  %v1556_v12 = vrot.slane %v1555_v21, 4  ;;  %v2764_v28 = vpop.f32.mrf.mxu3  ;;  %v601_v20 = vadd.f32 %v2708_v35, %v2650_v48 }
 0x237   : > { %1487 = vmatpush.bf16.msra.mxu2 %v1464_v22  ;;  %v2766_v57 = vpop.f32.mrf.mxu2  ;;  %v2777_v22 = vpop.f32.mrf.mxu1 }
 0x238   : > { %v1557_v0 = vsel %vm559_vm5, %v1556_v12, %v1555_v21  ;;  %v1565_v1 = vunpack.c.l.b16 %v1556_v12  ;;  %v1566_v27 = vunpack.c.h.b16 %v1556_v12  ;;  %v2785_v21 = vpop.f32.mrf.mxu0  ;;  %v788_v12 = vadd.f32 %v2672_v2, %v588_v63  ;;  %v2241_v2 = vld [vmem:[%s3063_s3 + $0xc8] sm:$0xff] }
 0x239   : > { %v1558_v41 = vunpack.c.l.b16 %v1557_v0  ;;  %v1559_v34 = vunpack.c.h.b16 %v1557_v0 }
 0x23a   : > { %2088 = vmatmul.msk.bf16.gmra.mxu2 %vm444_vm4, %v2237_v14  ;;  %2092 = vmatmul.msk.bf16.gmra.mxu3 %vm444_vm4, %v2237_v14  ;;  %vm1569_vm7 = vcmp.ne.s32.totalorder %v1565_v1, %v2381_v38  ;;  %vm1570_vm2 = vcmp.ne.s32.totalorder %v1566_v27, %v2384_v39  ;;  %v2791_v14 = vadd.f32 %v2696_v6, %v601_v20 }
 0x23b   : > { %vm1562_vm5 = vcmp.ne.s32.totalorder %v1558_v41, %v2381_v38  ;;  %vm1563_vm3 = vcmp.ne.s32.totalorder %v1559_v34, %v2384_v39  ;;  %vm1571_vm8 = vmpackc.low %vm1570_vm2, %vm1569_vm7  ;;  %v789_v6 = vadd.f32 %v2678_v8, %v617_v37  ;;  %v950_v27 = vadd.f32 %v901_v4, %v788_v12 }
 0x23c   : > { %vm1564_vm10 = vmpackc.low %vm1563_vm3, %vm1562_vm5  ;;  %v1573_v48 = vsel %vm1571_vm8, %v2575_v58, 0  ;;  %v1575_v35 = vsel %vm1571_vm8, %v2577_v60, 0  ;;  %v949_v8 = vadd.f32 %v2735_v13, %v2704_v32  ;;  %v2238_v13 = vld [vmem:[%s3063_s3 + $0xb0] sm:$0xff] }
 0x23d   : > { %v1572_v38 = vsel %vm1564_vm10, %v2376_v29, 0  ;;  %v1574_v39 = vsel %vm1564_vm10, %v2386_v45, 0  ;;  %v1462_v44 = vpop.permute.xlu0 %1461  ;;  %v1611_v7 = vunpack.c.l.b16 %v1573_v48  ;;  %v1614_v34 = vunpack.c.l.b16 %v1575_v35 }
 0x23e   : > { %v1465_v50 = vsel %vm1463_vm9, %v1460_v19, %v1462_v44  ;;  %v1610_v40 = vunpack.c.h.b16 %v1572_v38  ;;  %v1613_v58 = vunpack.c.h.b16 %v1574_v39  ;;  %v1609_v41 = vunpack.c.l.b16 %v1572_v38  ;;  %v935_v60 = vpop.f32.mrf.mxu3 }
 0x23f   : > { %1516 = vmatpush.bf16.msra.mxu3 %v1465_v50  ;;  %v1617_v63 = vpack.c.b16 %v1614_v34, %v1611_v7  ;;  %v1612_v29 = vunpack.c.l.b16 %v1574_v39  ;;  %v799_v45 = vadd.f32 %v2698_v24, %v630_v3  ;;  %v906_v0 = vpop.f32.mrf.mxu2  ;;  %v948_v19 = vadd.f32 %v2733_v54, %v2702_v30  ;;  %v1065_v37 = vpop.f32.mrf.mxu1 }
 0x240   : > { %v1616_v1 = vpack.c.b16 %v1613_v58, %v1610_v40  ;;  %v951_v30 = vadd.f32 %v2752_v52, %v789_v6  ;;  %v2815_v4 = vadd.f32 %v2737_v9, %v950_v27  ;;  %v2818_v54 = vadd.f32 %v2714_v42, %v949_v8  ;;  %v1036_v32 = vpop.f32.mrf.mxu0  ;;  %v2239_v40 = vld [vmem:[%s3063_s3 + $0xb8] sm:$0xff]  ;;  %v2245_v6 = vld [vmem:[%s3063_s3 + $0xe8] sm:$0xff] }
 0x241   : > { %1622 = vrot.lane.b32.xlu0 %v1617_v63, %s2282_s7  ;;  %v1615_v20 = vpack.c.b16 %v1612_v29, %v1609_v41  ;;  %v2811_v24 = vadd.f32 %v2720_v47, %v948_v19  ;;  %v627_v47 = vadd.f32 %v2694_v10, %v2637_v36  ;;  %v593_v42 = vadd.f32 %v2684_v17, %v2663_v56  ;;  %v2246_v63 = vld [vmem:[%s3063_s3 + $0xf0] sm:$0xff]  ;;  %v2247_v29 = vld [vmem:[%s3063_s3 + $0xf8] sm:$0xff]  ;;  %v2248_v19 = vld [vmem:[%s3063_s3 + $0x100] sm:$0xff] }
 0x242   : > { %2120 = vmatmul.msk.bf16.gmra.mxu0 %vm444_vm4, %v2241_v2  ;;  %2124 = vmatmul.msk.bf16.gmra.mxu1 %vm444_vm4, %v2241_v2  ;;  %v2821_v3 = vadd.f32 %v2726_v62, %v951_v30  ;;  %v598_v48 = vadd.f32 %v2692_v59, %v2635_v33  ;;  %v622_v38 = vadd.f32 %v2686_v18, %v2668_v61  ;;  %v2242_v59 = vld [vmem:[%s3063_s3 + $0xd0] sm:$0xff]  ;;  %v2249_v8 = vld [vmem:[%s3063_s3 + $0x108] sm:$0xff] }
 0x243   : > { %1620 = vrot.lane.b32.xlu2 %v1616_v1, %s2282_s7  ;;  %1618 = vrot.lane.b32.xlu1 %v1615_v20, %s2282_s7  ;;  %v797_v10 = vadd.f32 %v2690_v51, %v627_v47  ;;  %v792_v56 = vadd.f32 %v2680_v15, %v593_v42  ;;  %v952_v44 = vadd.f32 %v2766_v57, %v2722_v49  ;;  %s2206_s7 = sshll.u32 %s3106_s22, 6 }
 0x244   : > { %v796_v17 = vadd.f32 %v2688_v5, %v598_v48  ;;  %v793_v33 = vadd.f32 %v2682_v16, %v622_v38  ;;  %v953_v15 = vadd.f32 %v2764_v28, %v2724_v53  ;;  %v2251_v48 = vld [vmem:[%s3063_s3 + $0x118] sm:$0xff]  ;;  %s2984_s12 = scalar_lea.vmem %s3064_s4, %s2206_s7  ;;  %s3015_s15 = scalar_lea.vmem %s3065_s5, %s2206_s7 }
 0x245   : > { %v954_v7 = vadd.f32 %v906_v0, %v792_v56  ;;  %v2858_v16 = vadd.f32 %v2756_v25, %v952_v44 }
 0x246   : > { %v938_v12 = vpop.f32.mrf.mxu3  ;;  %v955_v5 = vadd.f32 %v935_v60, %v793_v33  ;;  %v2866_v49 = vadd.f32 %v2754_v23, %v953_v15 }
 0x247   : > { %v909_v52 = vpop.f32.mrf.mxu2  ;;  %v957_v9 = vadd.f32 %v938_v12, %v2745_v31  ;;  %v1067_v61 = vpop.f32.mrf.mxu1  ;;  %v2861_v50 = vadd.f32 %v2785_v21, %v954_v7 }
 0x248   : > { %v956_v62 = vadd.f32 %v909_v52, %v2743_v26  ;;  %v1038_v39 = vpop.f32.mrf.mxu0  ;;  %v2869_v57 = vadd.f32 %v2777_v22, %v955_v5  ;;  %v2243_v22 = vld [vmem:[%s3063_s3 + $0xd8] sm:$0xff] }
 0x249   : > { %v2834_v35 = vadd.f32 %v1065_v37, %v957_v9 }
 0x24a   : > { %2089 = vmatmul.msk.bf16.gmra.mxu2 %vm444_vm4, %v2238_v13  ;;  %2093 = vmatmul.msk.bf16.gmra.mxu3 %vm444_vm4, %v2238_v13  ;;  %v2840_v36 = vadd.f32 %v1036_v32, %v956_v62  ;;  %v2250_v13 = vld [vmem:[%s3063_s3 + $0x110] sm:$0xff] }
 0x24e   : > { %v940_v26 = vpop.f32.mrf.mxu3 }
 0x24f   : > { %v911_v18 = vpop.f32.mrf.mxu2  ;;  %v959_v31 = vadd.f32 %v940_v26, %v797_v10  ;;  %v1070_v41 = vpop.f32.mrf.mxu1 }
 0x250   : > { %v958_v51 = vadd.f32 %v911_v18, %v796_v17  ;;  %v1041_v21 = vpop.f32.mrf.mxu0 }
 0x251   : > { %v2851_v34 = vadd.f32 %v1067_v61, %v959_v31 }
 0x252   : > { %2121 = vmatmul.msk.bf16.gmra.mxu0 %vm444_vm4, %v2242_v59  ;;  %2125 = vmatmul.msk.bf16.gmra.mxu1 %vm444_vm4, %v2242_v59  ;;  %v2863_v2 = vadd.f32 %v1038_v39, %v958_v51 }
 0x256   : > { %v943_v53 = vpop.f32.mrf.mxu3 }
 0x257   : > { %v914_v28 = vpop.f32.mrf.mxu2  ;;  %v961_v25 = vadd.f32 %v943_v53, %v799_v45  ;;  %v2927_v52 = vpop.f32.mrf.mxu1 }
 0x258   : > { %v960_v58 = vadd.f32 %v914_v28, %v2791_v14  ;;  %v2244_v14 = vld [vmem:[%s3063_s3 + $0xe0] sm:$0xff]  ;;  %v2929_v42 = vpop.f32.mrf.mxu0 }
 0x259   : > { %v2875_v60 = vadd.f32 %v1070_v41, %v961_v25  ;;  %3092 = vst [vmem:[#allocation6_spill] sm:$0xff] %v2929_v42 }
 0x25a   : > { %2090 = vmatmul.msk.bf16.gmra.mxu2 %vm444_vm4, %v2239_v40  ;;  %2094 = vmatmul.msk.bf16.gmra.mxu3 %vm444_vm4, %v2239_v40  ;;  %v2879_v23 = vadd.f32 %v1041_v21, %v960_v58 }
 0x25e   : > { %v2918_v30 = vpop.f32.mrf.mxu3 }
 0x25f   : > { %v2920_v37 = vpop.f32.mrf.mxu2 }
 0x262   : > { %2122 = vmatmul.msk.bf16.gmra.mxu0 %vm444_vm4, %v2243_v22  ;;  %2126 = vmatmul.msk.bf16.gmra.mxu1 %vm444_vm4, %v2243_v22 }
 0x26a   : > { %2163 = vmatmul.msk.bf16.vlgmr.msra.gmra.mxu2 %vm444_vm4, %v2244_v14  ;;  %2167 = vmatmul.msk.bf16.vlgmr.msra.gmra.mxu3 %vm444_vm4, %v2244_v14 }
 0x27a   : > { %2164 = vmatmul.msk.bf16.gmra.mxu2 %vm444_vm4, %v2245_v6  ;;  %2168 = vmatmul.msk.bf16.gmra.mxu3 %vm444_vm4, %v2245_v6 }
 0x28a   : > { %2165 = vmatmul.msk.bf16.gmra.mxu2 %vm444_vm4, %v2246_v63  ;;  %2169 = vmatmul.msk.bf16.gmra.mxu3 %vm444_vm4, %v2246_v63 }
 0x29a   : > { %2166 = vmatmul.msk.bf16.gmra.mxu2 %vm444_vm4, %v2247_v29  ;;  %2170 = vmatmul.msk.bf16.gmra.mxu3 %vm444_vm4, %v2247_v29 }
 0x29d   : > { %v1621_v45 = vpop.permute.xlu2 %1620 }
 0x2ad   : > { %v1219_v32 = vpop.f32.mrf.mxu3  ;;  %v1190_v12 = vpop.f32.mrf.mxu2 }
 0x2af   : > { %v1379_v62 = vpop.f32.mrf.mxu1  ;;  %v1350_v10 = vpop.f32.mrf.mxu0 }
 0x2b3   : > { %v1623_v0 = vpop.permute.xlu0 %1622 }
 0x2b4   : > { %v1625_v1 = vsel %vm368_vm6, %v1621_v45, %v1623_v0  ;;  %v1240_v0 = vadd.f32 %v1219_v32, %v2818_v54 }
 0x2b5   : > { %v1619_v27 = vpop.permute.xlu1 %1618  ;;  %1676 = vmatpush.bf16.msra.mxu1 %v1625_v1  ;;  %v1221_v47 = vpop.f32.mrf.mxu3 }
 0x2b6   : > { %v1624_v20 = vsel %vm368_vm6, %v1619_v27, %v1621_v45  ;;  %v1192_v9 = vpop.f32.mrf.mxu2  ;;  %v1239_v27 = vadd.f32 %v1190_v12, %v2811_v24  ;;  %v1242_v54 = vadd.f32 %v1221_v47, %v2821_v3  ;;  %vm1763_vm6 = vcmask 64512  }
 0x2b7   : > { %1647 = vmatpush.bf16.msra.mxu0 %v1624_v20  ;;  %v1381_v17 = vpop.f32.mrf.mxu1  ;;  %v1352_v59 = vpop.f32.mrf.mxu0  ;;  %v1400_v20 = vadd.f32 %v1379_v62, %v1240_v0  ;;  %v1241_v24 = vadd.f32 %v1192_v9, %v2815_v4 }
 0x2b8   : > { %2199 = vmatmul.msk.bf16.vlgmr.msra.gmra.mxu1 %vm444_vm4, %v2248_v19 }
 0x2ba   : > { %2195 = vmatmul.msk.bf16.vlgmr.msra.gmra.mxu0 %vm444_vm4, %v2248_v19 }
 0x2bd   : > { %v1224_v38 = vpop.f32.mrf.mxu3 }
 0x2be   : > { %v1195_v56 = vpop.f32.mrf.mxu2  ;;  %v1244_v47 = vadd.f32 %v1224_v38, %v2866_v49 }
 0x2bf   : > { %v1384_v61 = vpop.f32.mrf.mxu1  ;;  %v1355_v31 = vpop.f32.mrf.mxu0  ;;  %v1243_v4 = vadd.f32 %v1195_v56, %v2858_v16 }
 0x2c5   : > { %v2936_v33 = vpop.f32.mrf.mxu3 }
 0x2c6   : > { %v2938_v26 = vpop.f32.mrf.mxu2  ;;  %v1246_v16 = vadd.f32 %v2936_v33, %v2869_v57 }
 0x2c7   : > { %v2944_v44 = vpop.f32.mrf.mxu1  ;;  %v2948_v51 = vpop.f32.mrf.mxu0 }
 0x2c8   : > { %2200 = vmatmul.msk.bf16.gmra.mxu1 %vm444_vm4, %v2249_v8 }
 0x2ca   : > { %2196 = vmatmul.msk.bf16.gmra.mxu0 %vm444_vm4, %v2249_v8  ;;  %v1399_v8 = vadd.f32 %v1350_v10, %v1239_v27 }
 0x2cd   : > { %v2940_v18 = vpop.f32.mrf.mxu3 }
 0x2ce   : > { %v2942_v39 = vpop.f32.mrf.mxu2 }
 0x2cf   : > { %v2952_v5 = vpop.f32.mrf.mxu1  ;;  %v2956_v53 = vpop.f32.mrf.mxu0 }
 0x2d5   : > { %v2946_v7 = vpop.f32.mrf.mxu3 }
 0x2d6   : > { %v2950_v15 = vpop.f32.mrf.mxu2 }
 0x2d7   : > { %v2960_v25 = vpop.f32.mrf.mxu1  ;;  %v2964_v41 = vpop.f32.mrf.mxu0 }
 0x2d8   : > { %2201 = vmatmul.msk.bf16.gmra.mxu1 %vm444_vm4, %v2250_v13 }
 0x2da   : > { %2197 = vmatmul.msk.bf16.gmra.mxu0 %vm444_vm4, %v2250_v13 }
 0x2dd   : > { %v2954_v40 = vpop.f32.mrf.mxu3 }
 0x2de   : > { %v2958_v28 = vpop.f32.mrf.mxu2 }
 0x2df   : > { %v2968_v22 = vpop.f32.mrf.mxu1  ;;  %v2970_v6 = vpop.f32.mrf.mxu0 }
 0x2e5   : > { %v2962_v58 = vpop.f32.mrf.mxu3 }
 0x2e6   : > { %3093 = vst [vmem:[#allocation7_spill] sm:$0xff] %v2962_v58  ;;  %v2966_v21 = vpop.f32.mrf.mxu2 }
 0x2e7   : > { %3094 = vst [vmem:[#allocation8_spill] sm:$0xff] %v2966_v21  ;;  %v2972_v29 = vpop.f32.mrf.mxu1  ;;  %v2975_v1 = vpop.f32.mrf.mxu0 }
 0x2e8   : > { %2202 = vmatmul.msk.bf16.gmra.mxu1 %vm444_vm4, %v2251_v48  ;;  %3095 = vst [vmem:[#allocation9_spill] sm:$0xff] %v2972_v29 }
 0x2e9   : > { %3096 = vst [vmem:[#allocation10_spill] sm:$0xff] %v2975_v1 }
 0x2ea   : > { %2198 = vmatmul.msk.bf16.gmra.mxu0 %vm444_vm4, %v2251_v48  ;;  %vm1765_vm4 = vcmask 122880  }
 0x2ed   : > { %v1518_v14 = vpop.f32.mrf.mxu3 }
 0x2ee   : > { %v1489_v63 = vpop.f32.mrf.mxu2  ;;  %v1539_v13 = vadd.f32 %v1518_v14, %v1400_v20  ;;  %v1402_v14 = vadd.f32 %v1381_v17, %v1242_v54  ;;  %v1401_v20 = vadd.f32 %v1352_v59, %v1241_v24  ;;  %v1403_v54 = vadd.f32 %v1355_v31, %v1243_v4 }
 0x2ef   : > { %v1538_v32 = vadd.f32 %v1489_v63, %v1399_v8  ;;  %v1406_v31 = vadd.f32 %v2944_v44, %v1246_v16 }
 0x2f5   : > { %v1520_v45 = vpop.f32.mrf.mxu3 }
 0x2f6   : > { %v1491_v19 = vpop.f32.mrf.mxu2  ;;  %v1541_v58 = vadd.f32 %v1520_v45, %v1402_v14 }
 0x2f7   : > { %v1540_v63 = vadd.f32 %v1491_v19, %v1401_v20 }
 0x2fd   : > { %v1523_v29 = vpop.f32.mrf.mxu3 }
 0x2fe   : > { %v1494_v10 = vpop.f32.mrf.mxu2 }
 0x2ff   : > { %v1542_v56 = vadd.f32 %v1494_v10, %v1403_v54 }
 0x306   : > { %v1496_v59 = vpop.f32.mrf.mxu2 }
 0x30e   : > { %v1499_v20 = vpop.f32.mrf.mxu2 }
 0x335   : > { %v1678_v48 = vpop.f32.mrf.mxu1 }
 0x336   : > { %v1699_v1 = vadd.f32 %v1678_v48, %v1539_v13  ;;  %v1404_v48 = vadd.f32 %v1384_v61, %v1244_v47  ;;  %v1245_v61 = vadd.f32 %v2938_v26, %v2861_v50  ;;  %v1248_v50 = vadd.f32 %v2940_v18, %v2834_v35 }
 0x337   : > { %v1649_v21 = vpop.f32.mrf.mxu0 }
 0x338   : > { %1715 = vst [vmem:[%s2984_s12 + $0x8] sm:$0xff] %v1699_v1  ;;  %v1740_v12 = vmul.f32 %v1699_v1, %v1699_v1  ;;  %v1698_v62 = vadd.f32 %v1649_v21, %v1538_v32  ;;  %v1525_v21 = vpop.f32.mrf.mxu3  ;;  %v1543_v45 = vadd.f32 %v1523_v29, %v1404_v48  ;;  %v1405_v14 = vadd.f32 %v2948_v51, %v1245_v61 }
 0x339   : > { %v1545_v57 = vadd.f32 %v1525_v21, %v1406_v31  ;;  %v1408_v4 = vadd.f32 %v2952_v5, %v1248_v50  ;;  %v1250_v5 = vadd.f32 %v2946_v7, %v2851_v34  ;;  %v3097_v7 = vld [vmem:[#allocation4_spill] sm:$0xff]  ;;  %v3103_v50 = vld [vmem:[#allocation10_spill] sm:$0xff] }
 0x33a   : > { %1714 = vst [vmem:[%s2984_s12] sm:$0xff] %v1698_v62  ;;  %v1730_v0 = vadd.f32 %v1699_v1, %v1698_v62  ;;  %v1739_v27 = vmul.f32 %v1698_v62, %v1698_v62  ;;  %v1544_v26 = vadd.f32 %v1496_v59, %v1405_v14  ;;  %v1501_v59 = vpop.f32.mrf.mxu2 }
 0x33b   : > { %v1410_v34 = vadd.f32 %v2960_v25, %v1250_v5 }
 0x33c   : > { %v1747_v42 = vadd.f32 %v1740_v12, %v1739_v27 }
 0x33d   : > { %v1680_v3 = vpop.f32.mrf.mxu1 }
 0x33e   : > { %v1701_v8 = vadd.f32 %v1680_v3, %v1541_v58 }
 0x33f   : > { %v1651_v9 = vpop.f32.mrf.mxu0 }
 0x340   : > { %1717 = vst [vmem:[%s2984_s12 + $0x18] sm:$0xff] %v1701_v8  ;;  %v1700_v13 = vadd.f32 %v1651_v9, %v1540_v63  ;;  %v1742_v32 = vmul.f32 %v1701_v8, %v1701_v8  ;;  %v1247_v63 = vadd.f32 %v2942_v39, %v2840_v36 }
 0x342   : > { %1716 = vst [vmem:[%s2984_s12 + $0x10] sm:$0xff] %v1700_v13  ;;  %v1731_v17 = vadd.f32 %v1730_v0, %v1700_v13  ;;  %v1741_v1 = vmul.f32 %v1700_v13, %v1700_v13  ;;  %v1528_v0 = vpop.f32.mrf.mxu3  ;;  %v1407_v21 = vadd.f32 %v2956_v53, %v1247_v63 }
 0x343   : > { %v1547_v48 = vadd.f32 %v1528_v0, %v1408_v4 }
 0x344   : > { %v1748_v24 = vadd.f32 %v1747_v42, %v1741_v1  ;;  %v1732_v49 = vadd.f32 %v1731_v17, %v1701_v8  ;;  %v1546_v1 = vadd.f32 %v1499_v20, %v1407_v21 }
 0x345   : > { %v1683_v38 = vpop.f32.mrf.mxu1 }
 0x346   : > { %v1703_v58 = vadd.f32 %v1683_v38, %v1543_v45  ;;  %v1749_v19 = vadd.f32 %v1748_v24, %v1742_v32  ;;  %v632_v32 = vadd.f32 %v2718_v46, %v2661_v55  ;;  %v1249_v24 = vadd.f32 %v2950_v15, %v2863_v2  ;;  %v3098_v46 = vld [vmem:[#allocation5_spill] sm:$0xff] }
 0x347   : > { %v1654_v12 = vpop.f32.mrf.mxu0  ;;  %v603_v38 = vadd.f32 %v2716_v43, %v2659_v11  ;;  %v1252_v2 = vadd.f32 %v2954_v40, %v2875_v60  ;;  %v1251_v43 = vadd.f32 %v2958_v28, %v2879_v23 }
 0x348   : > { %1719 = vst [vmem:[%s2984_s12 + $0x28] sm:$0xff] %v1703_v58  ;;  %v1702_v62 = vadd.f32 %v1654_v12, %v1542_v56  ;;  %v1744_v33 = vmul.f32 %v1703_v58, %v1703_v58  ;;  %v801_v16 = vadd.f32 %v3097_v7, %v632_v32  ;;  %v1409_v56 = vadd.f32 %v2964_v41, %v1249_v24  ;;  %v1504_v41 = vpop.f32.mrf.mxu2 }
 0x349   : > { %v1411_v40 = vadd.f32 %v2970_v6, %v1251_v43 }
 0x34a   : > { %1718 = vst [vmem:[%s2984_s12 + $0x20] sm:$0xff] %v1702_v62  ;;  %v1733_v29 = vadd.f32 %v1732_v49, %v1702_v62  ;;  %v1743_v42 = vmul.f32 %v1702_v62, %v1702_v62  ;;  %v1530_v36 = vpop.f32.mrf.mxu3  ;;  %v1548_v15 = vadd.f32 %v1501_v59, %v1409_v56  ;;  %v963_v11 = vadd.f32 %v2918_v30, %v801_v16  ;;  %v3099_v30 = vld [vmem:[#allocation6_spill] sm:$0xff] }
 0x34b   : > { %v1550_v28 = vadd.f32 %v1504_v41, %v1411_v40 }
 0x34c   : > { %v1750_v10 = vadd.f32 %v1749_v19, %v1743_v42  ;;  %v1734_v27 = vadd.f32 %v1733_v29, %v1703_v58  ;;  %v1549_v58 = vadd.f32 %v1530_v36, %v1410_v34  ;;  %v800_v19 = vadd.f32 %v3098_v46, %v603_v38 }
 0x34d   : > { %v1685_v3 = vpop.f32.mrf.mxu1  ;;  %v1412_v29 = vadd.f32 %v2968_v22, %v1252_v2  ;;  %v1090_v60 = vadd.f32 %v2927_v52, %v963_v11 }
 0x34e   : > { %v1705_v44 = vadd.f32 %v1685_v3, %v1545_v57  ;;  %v1751_v47 = vadd.f32 %v1750_v10, %v1744_v33  ;;  %v962_v31 = vadd.f32 %v2920_v37, %v800_v19  ;;  %v3100_v57 = vld [vmem:[#allocation7_spill] sm:$0xff]  ;;  %v3102_v3 = vld [vmem:[#allocation9_spill] sm:$0xff] }
 0x34f   : > { %v1656_v8 = vpop.f32.mrf.mxu0  ;;  %v1254_v23 = vadd.f32 %v3100_v57, %v1090_v60 }
 0x350   : > { %1721 = vst [vmem:[%s2984_s12 + $0x38] sm:$0xff] %v1705_v44  ;;  %v1704_v51 = vadd.f32 %v1656_v8, %v1544_v26  ;;  %v1746_v35 = vmul.f32 %v1705_v44, %v1705_v44  ;;  %v1089_v0 = vadd.f32 %v3099_v30, %v962_v31  ;;  %v1506_v6 = vpop.f32.mrf.mxu2 }
 0x351   : > { %v1414_v52 = vadd.f32 %v3102_v3, %v1254_v23 }
 0x352   : > { %1720 = vst [vmem:[%s2984_s12 + $0x30] sm:$0xff] %v1704_v51  ;;  %v1745_v9 = vmul.f32 %v1704_v51, %v1704_v51  ;;  %v1735_v13 = vadd.f32 %v1734_v27, %v1704_v51  ;;  %v1533_v12 = vpop.f32.mrf.mxu3  ;;  %v3101_v27 = vld [vmem:[#allocation8_spill] sm:$0xff] }
 0x353   : > { %v1551_v42 = vadd.f32 %v1533_v12, %v1412_v29  ;;  %v1253_v37 = vadd.f32 %v3101_v27, %v1089_v0 }
 0x354   : > { %v1736_v17 = vadd.f32 %v1735_v13, %v1705_v44  ;;  %v1752_v18 = vadd.f32 %v1751_v47, %v1745_v9  ;;  %v3104_v9 = vld [vmem:[#allocation3_spill] sm:$0xff] }
 0x355   : > { %v1688_v39 = vpop.f32.mrf.mxu1  ;;  %v1413_v26 = vadd.f32 %v3103_v50, %v1253_v37  ;;  %v1760_v13 = vadd.s32 4294967288, %v3104_v9 }
 0x356   : > { %1737 = vadd.xlane.f32.xlu1 %v1736_v17  ;;  %v1707_v53 = vadd.f32 %v1688_v39, %v1547_v48  ;;  %v1753_v54 = vadd.f32 %v1752_v18, %v1746_v35 }
 0x357   : > { %v1659_v45 = vpop.f32.mrf.mxu0  ;;  %v1552_v63 = vadd.f32 %v1506_v6, %v1413_v26 }
 0x358   : > { %1723 = vst [vmem:[%s3015_s15 + $0x8] sm:$0xff] %v1707_v53  ;;  %v1706_v49 = vadd.f32 %v1659_v45, %v1546_v1  ;;  %1754 = vadd.xlane.f32.xlu2 %v1753_v54 }
 0x35a   : > { %1722 = vst [vmem:[%s3015_s15] sm:$0xff] %v1706_v49  ;;  %v1535_v20 = vpop.f32.mrf.mxu3 }
 0x35b   : > { %v1553_v44 = vadd.f32 %v1535_v20, %v1414_v52 }
 0x35d   : > { %v1690_v55 = vpop.f32.mrf.mxu1 }
 0x35e   : > { %v1709_v61 = vadd.f32 %v1690_v55, %v1549_v58 }
 0x35f   : > { %v1661_v62 = vpop.f32.mrf.mxu0 }
 0x360   : > { %1725 = vst [vmem:[%s3015_s15 + $0x18] sm:$0xff] %v1709_v61  ;;  %v1708_v25 = vadd.f32 %v1661_v62, %v1548_v15 }
 0x362   : > { %1724 = vst [vmem:[%s3015_s15 + $0x10] sm:$0xff] %v1708_v25 }
 0x365   : > { %v1693_v14 = vpop.f32.mrf.mxu1 }
 0x366   : > { %v1711_v33 = vadd.f32 %v1693_v14, %v1551_v42 }
 0x367   : > { %v1664_v10 = vpop.f32.mrf.mxu0 }
 0x368   : > { %1727 = vst [vmem:[%s3015_s15 + $0x28] sm:$0xff] %v1711_v33  ;;  %v1710_v22 = vadd.f32 %v1664_v10, %v1550_v28 }
 0x36a   : > { %1726 = vst [vmem:[%s3015_s15 + $0x20] sm:$0xff] %v1710_v22 }
 0x36d   : > { %v1695_v47 = vpop.f32.mrf.mxu1 }
 0x36e   : > { %v1713_v8 = vadd.f32 %v1695_v47, %v1553_v44 }
 0x36f   : > { %v1666_v51 = vpop.f32.mrf.mxu0 }
 0x370   : > { %1729 = vst [vmem:[%s3015_s15 + $0x38] sm:$0xff] %v1713_v8  ;;  %v1712_v4 = vadd.f32 %v1666_v51, %v1552_v63 }
 0x372   : > { %1728 = vst [vmem:[%s3015_s15 + $0x30] sm:$0xff] %v1712_v4 }
 0x3c9   : > { %v1738_v21 = vpop.xlane.xlu1 %1737 }
 0x3ca   : > { %v1757_v17 = vperm.slane %v1738_v21, %v3104_v9 }
 0x3cb   : > { %v1755_v48 = vpop.xlane.xlu2 %1754 }
 0x3cc   : > { %v1761_v35 = vperm.slane %v1755_v48, %v1760_v13 }
 0x3ce   : > { %v1764_v18 = vsel %vm1763_vm6, %v1757_v17, %v1761_v35 }
 0x3cf   : > { %1766 = vst.msk [vmem:[%s272_s18] sm:$0x1] %vm1765_vm4, %v1764_v18 }
 0x3d0 PF: > { %s17_s21 = sadd.s32 1, %s2279_s21  }
 0x3d1   : > { %p14_p4 = scmp.ge.s32.totalorder %s17_s21, 4  }
 0x3d3   :  { %16 = sbr.rel (!%p14_p4) target bundleno = 1 (0x1), region = 98 }

// kernel: preact_block_up_forward.3
= control target key start
LH: loop header
LB: loop body
LE: loop exit
PB: predicated region body
PF: predicated region fallthrough
CT: control target
= control target key end

     0   :  { %s1970_s18 = smov 0   ;;  %s2553_s0 = inlined_call_operand.vmem [shape: f32[2,32,256], index: 0, kind: input, shape index: {}]   ;;  %s2554_s1 = inlined_call_operand.vmem [shape: f32[2,32,256], index: 1, kind: input, shape index: {}]   ;;  %s2555_s2 = inlined_call_operand.vmem [shape: f32[32,1], index: 2, kind: input, shape index: {}]   ;;  %s2556_s3 = inlined_call_operand.vmem [shape: f32[32,1], index: 3, kind: input, shape index: {}]   ;;  %s2557_s4 = inlined_call_operand.vmem [shape: bf16[9,32,32], index: 4, kind: input, shape index: {}]   ;;  %s2558_s5 = inlined_call_operand.vmem [shape: f32[2,32,256], index: 5, kind: output, shape index: {}]  }
   0x1 LB: > { %s1645_s19 = sadd.s32 4294967295, %s1929_s18   ;;  %p1649_p0 = scmp.ge.s32.totalorder %s1929_s18, 1  ;;  %s1929_s18 = sphi %s1970_s18, %s15_s18  }
   0x2   : > { %p197_p1 = scmp.lt.s32.totalorder %s1929_s18, 3 }
   0x4   : > { %p198_p2 = pnand %p1649_p0, %p197_p1 }
   0x5   : > { %s1932_s11 = smov (!%p198_p2), 111   ;;  %s1933_s12 = smov (!%p198_p2), 127  }
   0x6   : > { %201 = sbr.rel (%p198_p2) target bundleno = 643 (0x283), region = 40  ;;  %s1934_s13 = smov (!%p198_p2), 113  }
   0x7   : > { %p230_p3 = scmp.lt.s32.totalorder (!%p198_p2), %s1645_s19, 1  ;;  %s1935_s14 = smov (!%p198_p2), 16  }
   0x8   : > { %s1937_s21 = smov (!%p198_p2), 15   ;;  %s1938_s22 = smov (!%p198_p2), 1  }
   0xb   : > { %v290_v0 = vld [vmem:[%s2556_s3 + $0x10] sm:$0xff]  ;;  %v352_v2 = vlaneseq  ;;  %v1931_v3 = vmov 0   ;;  %v256_v4 = vld [vmem:[%s2555_s2] sm:$0xff]  ;;  %v291_v7 = vld [vmem:[%s2556_s3 + $0x18] sm:$0xff]  ;;  %s2584_s19 = smov (!%p230_p3, %s1645_s19), 1  ;;  %vm400_vm6 = vcmask 908288  }
   0xc   : > { %v258_v1 = vld [vmem:[%s2555_s2 + $0x10] sm:$0xff]  ;;  %1921 = vset.pattern.permute.xlu1 %v1931_v3  ;;  %328 = vst [vmem:[#allocation2] sm:$0xf] %v1931_v3  ;;  %1920 = vset.pattern.permute.xlu0 %v1931_v3  ;;  %v259_v8 = vld [vmem:[%s2555_s2 + $0x18] sm:$0xff]  ;;  %v257_v11 = vld [vmem:[%s2555_s2 + $0x8] sm:$0xff]  ;;  %s2030_s15 = sshll.u32 %s2584_s19, 6  ;;  %v2041_v50 = vunpack.c.l.b16 %v1931_v3  ;;  %v2044_v51 = vunpack.c.h.b16 %v1931_v3 }
   0xd   : > { %329 = vst [vmem:[#allocation2 + $0x10] sm:$0xf] %v1931_v3  ;;  %304 = vperm.xlu1 %1921, %v290_v0   ;;  %272 = vperm.xlu0 %1920, %v258_v1   ;;  %v353_v5 = vand.u32 127, %v352_v2  ;;  %v289_v12 = vld [vmem:[%s2556_s3 + $0x8] sm:$0xff]  ;;  %v288_v13 = vld [vmem:[%s2556_s3] sm:$0xff]  ;;  %s234_s20 = scalar_lea.vmem %s2553_s0, %s2030_s15  ;;  %vm661_vm13 = vcmask 924672   ;;  %s2435_s25 = scalar_lea.vmem %s2554_s1, %s2030_s15 }
   0xe   : > { %330 = vst [vmem:[#allocation2 + $0x20] sm:$0xf] %v1931_v3  ;;  %1922 = vset.pattern.permute.xlu2 %v1931_v3  ;;  %v252_v21 = vld [vmem:[%s234_s20 + $0x20] sm:$0xff]  ;;  %v253_v22 = vld [vmem:[%s234_s20 + $0x28] sm:$0xff]  ;;  %v254_v31 = vld [vmem:[%s234_s20 + $0x30] sm:$0xff]  ;;  %s1936_s19 = smov 17  }
   0xf   : > { %331 = vst [vmem:[#allocation2 + $0x30] sm:$0xf] %v1931_v3  ;;  %262 = vperm.xlu2 %1922, %v256_v4   ;;  %v354_v6 = vadd.s32 128, %v353_v5  ;;  %v359_v9 = vand.u32 15, %v353_v5  ;;  %v255_v32 = vld [vmem:[%s234_s20 + $0x38] sm:$0xff]  ;;  %v248_v40 = vld [vmem:[%s234_s20] sm:$0xff] }
  0x10   : > { %332 = vst [vmem:[#allocation2 + $0xc] sm:$0xf] %v1931_v3  ;;  %v249_v43 = vld [vmem:[%s234_s20 + $0x8] sm:$0xff]  ;;  %v250_v44 = vld [vmem:[%s234_s20 + $0x10] sm:$0xff]  ;;  %v251_v45 = vld [vmem:[%s234_s20 + $0x18] sm:$0xff] }
  0x11   : > { %333 = vst [vmem:[#allocation2 + $0x1c] sm:$0xf] %v1931_v3  ;;  %v366_v10 = vand.u32 15, %v354_v6  ;;  %vm379_vm0 = vcmp.ge.s32.totalorder %v359_v9, 1  ;;  %vm381_vm3 = vcmp.lt.s32.totalorder %v359_v9, 15 }
  0x12   : > { %334 = vst [vmem:[#allocation2 + $0x2c] sm:$0xf] %v1931_v3 }
  0x13   : > { %335 = vst [vmem:[#allocation2 + $0x3c] sm:$0xf] %v1931_v3  ;;  %vm380_vm1 = vcmp.ge.s32.totalorder %v366_v10, 1  ;;  %vm382_vm4 = vcmp.lt.s32.totalorder %v366_v10, 15 }
  0x14   : > { %vm395_vm2 = vmpackc.low %vm380_vm1, %vm379_vm0 }
  0x15   : > { %309 = vperm.xlu1 %1921, %v291_v7   ;;  %277 = vperm.xlu0 %1920, %v259_v8   ;;  %v2014_v14 = vsel %vm395_vm2, 65537, %v1931_v3  ;;  %vm656_vm5 = vmpackc.low %vm382_vm4, %vm381_vm3  ;;  %v1694_v17 = vld [vmem:[#allocation2 + $0x20] sm:$0xf]  ;;  %vm802_vm4 = vcmask 1039360  }
  0x16   : > { %v2019_v15 = vsel %vm656_vm5, 65537, %v1931_v3  ;;  %v1869_v18 = vld [vmem:[#allocation2 + $0x2c] sm:$0xf0] }
  0x17   : > { %267 = vperm.xlu2 %1922, %v257_v11   ;;  %v1695_v19 = vor.u32 %v1869_v18, %v1694_v17 }
  0x1d   : > { %299 = vperm.xlu1 %1921, %v289_v12   ;;  %294 = vperm.xlu0 %1920, %v288_v13  }
  0x1f   : > { %397 = vrot.lane.b32.xlu2 %v2014_v14, %s1932_s11 }
  0x25   : > { %799 = vrot.lane.b32.xlu1 %v2014_v14, %s1933_s12  ;;  %658 = vrot.lane.b32.xlu0 %v2019_v15, %s1934_s13 }
  0x27   : > { %585 = vrot.lane.b32.xlu2 %v1695_v19, %s1935_s14 }
  0x69   : > { %v263_v16 = vpop.permute.xlu2 %262 }
  0x6a   : > { %v280_v46 = vmul.f32 %v263_v16, %v248_v40  ;;  %v281_v54 = vmul.f32 %v263_v16, %v249_v43 }
  0x71   : > { %v268_v20 = vpop.permute.xlu2 %267 }
  0x72   : > { %v282_v55 = vmul.f32 %v268_v20, %v250_v44  ;;  %v283_v56 = vmul.f32 %v268_v20, %v251_v45 }
  0x79   : > { %v398_v33 = vpop.permute.xlu2 %397 }
  0x7a   : > { %v399_v39 = vrot.slane %v398_v33, 4 }
  0x7c   : > { %v401_v49 = vsel %vm400_vm6, %v399_v39, %v398_v33  ;;  %v409_v52 = vunpack.c.l.b16 %v399_v39  ;;  %v410_v53 = vunpack.c.h.b16 %v399_v39 }
  0x7d   : > { %v402_v58 = vunpack.c.l.b16 %v401_v49  ;;  %v403_v59 = vunpack.c.h.b16 %v401_v49 }
  0x7e   : > { %vm413_vm7 = vcmp.ne.s32.totalorder %v409_v52, %v2041_v50  ;;  %vm414_vm8 = vcmp.ne.s32.totalorder %v410_v53, %v2044_v51 }
  0x7f   : > { %v305_v23 = vpop.permute.xlu1 %304  ;;  %v273_v24 = vpop.permute.xlu0 %272  ;;  %vm406_vm9 = vcmp.ne.s32.totalorder %v402_v58, %v2041_v50  ;;  %vm407_vm10 = vcmp.ne.s32.totalorder %v403_v59, %v2044_v51  ;;  %vm2057_vm11 = vmpackc.low %vm414_vm8, %vm413_vm7 }
  0x80   : > { %v284_v25 = vmul.f32 %v273_v24, %v252_v21  ;;  %v285_v26 = vmul.f32 %v273_v24, %v253_v22  ;;  %vm2061_vm12 = vmpackc.low %vm407_vm10, %vm406_vm9 }
  0x82   : > { %v316_v27 = vadd.f32 %v305_v23, %v284_v25  ;;  %v317_v28 = vadd.f32 %v305_v23, %v285_v26 }
  0x84   : > { %v324_v29 = vmax.f32 %v316_v27, 0.0  ;;  %v325_v30 = vmax.f32 %v317_v28, 0.0 }
  0x86   : > { %v2036_v34 = vpack.c.bf16 %v325_v30, %v324_v29 }
  0x87   : > { %v310_v35 = vpop.permute.xlu1 %309  ;;  %v278_v36 = vpop.permute.xlu0 %277 }
  0x88   : > { %342 = vst [vmem:[#allocation2 + $0x24] sm:$0xff] %v2036_v34  ;;  %v286_v37 = vmul.f32 %v278_v36, %v254_v31  ;;  %v287_v38 = vmul.f32 %v278_v36, %v255_v32 }
  0x8a   : > { %v318_v41 = vadd.f32 %v310_v35, %v286_v37  ;;  %v319_v42 = vadd.f32 %v310_v35, %v287_v38 }
  0x8c   : > { %v326_v47 = vmax.f32 %v318_v41, 0.0  ;;  %v327_v48 = vmax.f32 %v319_v42, 0.0 }
  0x8e   : > { %v2046_v57 = vpack.c.bf16 %v327_v48, %v326_v47 }
  0x8f   : > { %v300_v60 = vpop.permute.xlu1 %299  ;;  %v295_v61 = vpop.permute.xlu0 %294  ;;  %v1702_v10 = vld [vmem:[#allocation2 + $0x28] sm:$0xf]  ;;  %v1868_v11 = vld [vmem:[#allocation2 + $0x24] sm:$0xf] }
  0x90   : > { %343 = vst [vmem:[#allocation2 + $0x34] sm:$0xff] %v2046_v57  ;;  %v314_v62 = vadd.f32 %v300_v60, %v282_v55  ;;  %v315_v63 = vadd.f32 %v300_v60, %v283_v56  ;;  %v312_v0 = vadd.f32 %v295_v61, %v280_v46  ;;  %v313_v1 = vadd.f32 %v295_v61, %v281_v54  ;;  %v2067_v16 = vld [vmem:[#allocation2 + $0x20] sm:$0xff]  ;;  %v2071_v20 = vld [vmem:[#allocation2 + $0x28] sm:$0xf] }
  0x91   : > { %v420_v22 = vsel %vm2061_vm12, %v2067_v16, 0  ;;  %v421_v25 = vsel %vm2057_vm11, %v2071_v20, 0 }
  0x92   : > { %v322_v2 = vmax.f32 %v314_v62, 0.0  ;;  %v323_v3 = vmax.f32 %v315_v63, 0.0  ;;  %v320_v4 = vmax.f32 %v312_v0, 0.0  ;;  %v321_v5 = vmax.f32 %v313_v1, 0.0  ;;  %v1682_v63 = vld [vmem:[#allocation2] sm:$0xf] }
  0x93   : > { %v452_v27 = vunpack.c.l.b16 %v420_v22  ;;  %v454_v31 = vunpack.c.l.b16 %v421_v25  ;;  %v453_v37 = vunpack.c.h.b16 %v420_v22  ;;  %v1866_v0 = vld [vmem:[#allocation2 + $0xc] sm:$0xf0] }
  0x94   : > { %v2053_v6 = vpack.c.bf16 %v323_v3, %v322_v2  ;;  %v2055_v7 = vpack.c.bf16 %v321_v5, %v320_v4 }
  0x96   : > { %341 = vst [vmem:[#allocation2 + $0x14] sm:$0xff] %v2053_v6 }
  0x97   : > { %340 = vst [vmem:[#allocation2 + $0x4] sm:$0xff] %v2055_v7  ;;  %v1870_v12 = vld [vmem:[#allocation2 + $0x34] sm:$0xf0]  ;;  %v1696_v13 = vld [vmem:[#allocation2 + $0x30] sm:$0xf0]  ;;  %v659_v23 = vpop.permute.xlu0 %658  ;;  %v800_v1 = vpop.permute.xlu1 %799 }
  0x98   : > { %v1703_v17 = vor.u32 %v1870_v12, %v1702_v10  ;;  %v1699_v18 = vor.u32 %v1868_v11, %v1696_v13  ;;  %v2069_v19 = vld [vmem:[#allocation2 + $0x30] sm:$0xff]  ;;  %v2073_v21 = vld [vmem:[#allocation2 + $0x38] sm:$0xf]  ;;  %v660_v29 = vrot.slane %v659_v23, 4  ;;  %v1683_v10 = vor.u32 %v1866_v0, %v1682_v63 }
  0x99   : > { %v422_v24 = vsel %vm2061_vm12, %v2069_v19, 0  ;;  %v423_v26 = vsel %vm2057_vm11, %v2073_v21, 0  ;;  %v801_v11 = vrot.slane %v800_v1, 4 }
  0x9a   : > { %589 = vrot.lane.b32.xlu1 %v1703_v17, %s1935_s14  ;;  %587 = vrot.lane.b32.xlu0 %v1699_v18, %s1935_s14  ;;  %v455_v30 = vunpack.c.l.b16 %v422_v24  ;;  %v457_v32 = vunpack.c.l.b16 %v423_v26  ;;  %v456_v38 = vunpack.c.h.b16 %v422_v24  ;;  %v662_v46 = vsel %vm661_vm13, %v660_v29, %v659_v23 }
  0x9b   : > { %v663_v53 = vunpack.c.l.b16 %v662_v46  ;;  %v664_v54 = vunpack.c.h.b16 %v662_v46  ;;  %v670_v58 = vunpack.c.l.b16 %v660_v29  ;;  %v671_v59 = vunpack.c.h.b16 %v660_v29 }
  0x9c   : > { %v461_v39 = vpack.c.b16 %v455_v30, %v452_v27  ;;  %v463_v40 = vpack.c.b16 %v457_v32, %v454_v31  ;;  %v462_v42 = vpack.c.b16 %v456_v38, %v453_v37  ;;  %v803_v24 = vsel %vm802_vm4, %v801_v11, %v800_v1 }
  0x9d   : > { %v2089_v28 = vld [vmem:[#allocation2 + $0x10] sm:$0xff]  ;;  %v2095_v36 = vld [vmem:[#allocation2 + $0x18] sm:$0xf]  ;;  %vm667_vm14 = vcmp.ne.s32.totalorder %v663_v53, %v2041_v50  ;;  %vm668_vm15 = vcmp.ne.s32.totalorder %v664_v54, %v2044_v51  ;;  %vm674_vm0 = vcmp.ne.s32.totalorder %v670_v58, %v2041_v50  ;;  %vm675_vm1 = vcmp.ne.s32.totalorder %v671_v59, %v2044_v51 }
  0x9e   : > { %v2091_v33 = vld [vmem:[#allocation2] sm:$0xff]  ;;  %v2093_v35 = vld [vmem:[#allocation2 + $0x8] sm:$0xf]  ;;  %v418_v43 = vsel %vm2061_vm12, %v2089_v28, 0  ;;  %v419_v45 = vsel %vm2057_vm11, %v2095_v36, 0  ;;  %470 = vrot.lane.b32.xlu2 %v461_v39, %s1936_s19  ;;  %vm2120_vm2 = vmpackc.low %vm668_vm15, %vm667_vm14  ;;  %v804_v32 = vunpack.c.l.b16 %v803_v24  ;;  %v805_v37 = vunpack.c.h.b16 %v803_v24  ;;  %v586_v24 = vpop.permute.xlu2 %585 }
  0x9f   : > { %v416_v41 = vsel %vm2061_vm12, %v2091_v33, 0  ;;  %v417_v44 = vsel %vm2057_vm11, %v2093_v35, 0  ;;  %v449_v48 = vunpack.c.l.b16 %v418_v43  ;;  %v451_v52 = vunpack.c.l.b16 %v419_v45  ;;  %v1690_v3 = vld [vmem:[#allocation2 + $0x8] sm:$0xf]  ;;  %v1867_v4 = vld [vmem:[#allocation2 + $0x14] sm:$0xf0]  ;;  %vm2124_vm3 = vmpackc.low %vm675_vm1, %vm674_vm0 }
  0xa0   : > { %v446_v47 = vunpack.c.l.b16 %v416_v41  ;;  %v448_v49 = vunpack.c.l.b16 %v417_v44  ;;  %v447_v55 = vunpack.c.h.b16 %v416_v41  ;;  %v450_v56 = vunpack.c.h.b16 %v418_v43  ;;  %v1865_v5 = vld [vmem:[#allocation2 + $0x4] sm:$0xf]  ;;  %v1684_v8 = vld [vmem:[#allocation2 + $0x10] sm:$0xf0] }
  0xa1   : > { %v1691_v12 = vor.u32 %v1867_v4, %v1690_v3  ;;  %v1687_v13 = vor.u32 %v1865_v5, %v1684_v8  ;;  %v681_v17 = vsel %vm2120_vm2, %v2067_v16, 0  ;;  %v683_v18 = vsel %vm2120_vm2, %v2069_v19, 0 }
  0xa2   : > { %474 = vrot.lane.b32.xlu1 %v463_v40, %s1936_s19  ;;  %472 = vrot.lane.b32.xlu0 %v462_v42, %s1936_s19  ;;  %v458_v60 = vpack.c.b16 %v449_v48, %v446_v47  ;;  %v460_v61 = vpack.c.b16 %v451_v52, %v448_v49  ;;  %v459_v62 = vpack.c.b16 %v450_v56, %v447_v55  ;;  %v682_v22 = vsel %vm2124_vm3, %v2071_v20, 0 }
  0xa3   : > { %v684_v23 = vsel %vm2124_vm3, %v2073_v21, 0  ;;  %v714_v25 = vunpack.c.l.b16 %v681_v17  ;;  %v717_v26 = vunpack.c.l.b16 %v683_v18  ;;  %v716_v27 = vunpack.c.l.b16 %v682_v22 }
  0xa4   : > { %v719_v29 = vunpack.c.l.b16 %v684_v23  ;;  %v715_v30 = vunpack.c.h.b16 %v681_v17  ;;  %v718_v31 = vunpack.c.h.b16 %v683_v18  ;;  %v677_v40 = vsel %vm2120_vm2, %v2091_v33, 0 }
  0xa5   : > { %v723_v38 = vpack.c.b16 %v717_v26, %v714_v25  ;;  %v679_v42 = vsel %vm2120_vm2, %v2089_v28, 0  ;;  %v678_v43 = vsel %vm2124_vm3, %v2093_v35, 0  ;;  %v680_v44 = vsel %vm2124_vm3, %v2095_v36, 0 }
  0xa6   : > { %464 = vrot.lane.b32.xlu2 %v458_v60, %s1936_s19  ;;  %v725_v39 = vpack.c.b16 %v719_v29, %v716_v27  ;;  %v724_v41 = vpack.c.b16 %v718_v31, %v715_v30  ;;  %vm808_vm5 = vcmp.ne.s32.totalorder %v804_v32, %v2041_v50  ;;  %vm809_vm7 = vcmp.ne.s32.totalorder %v805_v37, %v2044_v51 }
  0xa7   : > { %v708_v45 = vunpack.c.l.b16 %v677_v40  ;;  %v711_v46 = vunpack.c.l.b16 %v679_v42  ;;  %v710_v47 = vunpack.c.l.b16 %v678_v43  ;;  %v713_v48 = vunpack.c.l.b16 %v680_v44  ;;  %vm2161_vm8 = vmpackc.low %vm809_vm7, %vm808_vm5 }
  0xa8   : > { %v709_v49 = vunpack.c.h.b16 %v677_v40  ;;  %v712_v52 = vunpack.c.h.b16 %v679_v42  ;;  %v811_v54 = vunpack.c.l.b16 %v801_v11  ;;  %v812_v55 = vunpack.c.h.b16 %v801_v11  ;;  %v1871_v42 = vld [vmem:[%s2557_s4] sm:$0xff] }
  0xa9   : > { %v720_v56 = vpack.c.b16 %v711_v46, %v708_v45  ;;  %v722_v58 = vpack.c.b16 %v713_v48, %v710_v47  ;;  %v822_v60 = vsel %vm2161_vm8, %v2067_v16, 0  ;;  %v820_v1 = vsel %vm2161_vm8, %v2089_v28, 0  ;;  %v1872_v45 = vld [vmem:[%s2557_s4 + $0x8] sm:$0xff] }
  0xaa   : > { %468 = vrot.lane.b32.xlu1 %v460_v61, %s1936_s19  ;;  %466 = vrot.lane.b32.xlu0 %v459_v62, %s1936_s19  ;;  %v721_v59 = vpack.c.b16 %v712_v52, %v709_v49  ;;  %v824_v61 = vsel %vm2161_vm8, %v2069_v19, 0  ;;  %vm815_vm9 = vcmp.ne.s32.totalorder %v811_v54, %v2041_v50  ;;  %vm816_vm10 = vcmp.ne.s32.totalorder %v812_v55, %v2044_v51 }
  0xab   : > { %v855_v62 = vunpack.c.l.b16 %v822_v60  ;;  %v858_v63 = vunpack.c.l.b16 %v824_v61  ;;  %vm2176_vm11 = vmpackc.low %vm816_vm10, %vm815_vm9  ;;  %v818_v19 = vsel %vm2161_vm8, %v2091_v33, 0  ;;  %v856_v33 = vunpack.c.h.b16 %v822_v60 }
  0xac   : > { %v823_v2 = vsel %vm2176_vm11, %v2071_v20, 0  ;;  %v825_v3 = vsel %vm2176_vm11, %v2073_v21, 0  ;;  %v859_v4 = vunpack.c.h.b16 %v824_v61  ;;  %v849_v5 = vunpack.c.l.b16 %v818_v19  ;;  %v2228_v61 = vld [vmem:[#allocation2 + $0x3c] sm:$0xf] }
  0xad   : > { %v864_v16 = vpack.c.b16 %v858_v63, %v855_v62  ;;  %v852_v8 = vunpack.c.l.b16 %v820_v1  ;;  %v857_v28 = vunpack.c.l.b16 %v823_v2  ;;  %v860_v9 = vunpack.c.l.b16 %v825_v3  ;;  %v2230_v62 = vld [vmem:[#allocation2 + $0xc] sm:$0xf]  ;;  %v2232_v63 = vld [vmem:[#allocation2 + $0x1c] sm:$0xf] }
  0xae   : > { %579 = vrot.lane.b32.xlu2 %v1683_v10, %s1935_s14  ;;  %v865_v10 = vpack.c.b16 %v859_v4, %v856_v33  ;;  %v819_v20 = vsel %vm2176_vm11, %v2093_v35, 0  ;;  %v821_v21 = vsel %vm2176_vm11, %v2095_v36, 0  ;;  %vm476_vm12 = vcmask 138240  }
  0xaf   : > { %v861_v11 = vpack.c.b16 %v852_v8, %v849_v5  ;;  %v851_v17 = vunpack.c.l.b16 %v819_v20  ;;  %v854_v18 = vunpack.c.l.b16 %v821_v21  ;;  %vm591_vm14 = vcmask 130048  }
  0xb0   : > { %vm485_vm15 = vcmask 261120   ;;  %vm879_vm0 = vcmask 7168   ;;  %vm738_vm8 = vcmask 121856  }
  0xb1   : > { %v863_v23 = vpack.c.b16 %v854_v18, %v851_v17 }
  0xb2   : > { %583 = vrot.lane.b32.xlu1 %v1691_v12, %s1935_s14  ;;  %581 = vrot.lane.b32.xlu0 %v1687_v13, %s1935_s14  ;;  %v866_v12 = vpack.c.b16 %v860_v9, %v857_v28  ;;  %v853_v13 = vunpack.c.h.b16 %v820_v1 }
  0xb6   : > { %732 = vrot.lane.b32.xlu2 %v723_v38, %s1937_s21 }
  0xba   : > { %736 = vrot.lane.b32.xlu1 %v725_v39, %s1937_s21  ;;  %734 = vrot.lane.b32.xlu0 %v724_v41, %s1937_s21 }
  0xbe   : > { %726 = vrot.lane.b32.xlu2 %v720_v56, %s1937_s21 }
  0xc2   : > { %730 = vrot.lane.b32.xlu1 %v722_v58, %s1937_s21  ;;  %728 = vrot.lane.b32.xlu0 %v721_v59, %s1937_s21  ;;  %v2226_v58 = vld [vmem:[#allocation2 + $0x2c] sm:$0xf] }
  0xc6   : > { %1039 = vrot.lane.b32.xlu2 %v2019_v15, %s1938_s22 }
  0xca   : > { %873 = vrot.lane.b32.xlu1 %v864_v16, %s1938_s22  ;;  %1178 = vrot.lane.b32.xlu0 %v2014_v14, %s1937_s21  ;;  %v850_v14 = vunpack.c.h.b16 %v818_v19 }
  0xcc   : > { %v862_v22 = vpack.c.b16 %v853_v13, %v850_v14 }
  0xce   : > { %875 = vrot.lane.b32.xlu2 %v865_v10, %s1938_s22 }
  0xd2   : > { %867 = vrot.lane.b32.xlu1 %v861_v11, %s1938_s22  ;;  %877 = vrot.lane.b32.xlu0 %v866_v12, %s1938_s22 }
  0xd6   : > { %869 = vrot.lane.b32.xlu2 %v862_v22, %s1938_s22 }
  0xda   : > { %1431 = vrot.lane.b32.xlu1 %v2019_v15, %s1936_s19  ;;  %871 = vrot.lane.b32.xlu0 %v863_v23, %s1938_s22  ;;  %s2530_s19 = scalar_lea.vmem %s2558_s5, %s2030_s15 }
  0xf8   : > { %v471_v25 = vpop.permute.xlu2 %470 }
 0x100   : > { %v465_v26 = vpop.permute.xlu2 %464 }
 0x108   : > { %v580_v35 = vpop.permute.xlu2 %579 }
 0x10c   : > { %v590_v27 = vpop.permute.xlu1 %589  ;;  %v588_v29 = vpop.permute.xlu0 %587 }
 0x10d   : > { %v594_v43 = vsel %vm591_vm14, %v586_v24, %v588_v29  ;;  %v595_v44 = vsel %vm591_vm14, %v588_v29, %v590_v27 }
 0x110   : > { %v2203_v36 = vpop.permute.xlu2 %732 }
 0x114   : > { %v475_v30 = vpop.permute.xlu1 %474  ;;  %v473_v31 = vpop.permute.xlu0 %472 }
 0x115   : > { %v479_v32 = vsel %vm476_vm12, %v471_v25, %v473_v31  ;;  %v480_v37 = vsel %vm476_vm12, %v473_v31, %v475_v30  ;;  %v1873_v30 = vld [vmem:[%s2557_s4 + $0x10] sm:$0xff] }
 0x116   : > { %498 = vmatpush.bf16.msra.mxu0 %v479_v32  ;;  %1899 = vmatpush.bf16.msra.mxu2 %v479_v32 }
 0x117   : > { %517 = vmatpush.bf16.msra.mxu1 %v480_v37  ;;  %1901 = vmatpush.bf16.msra.mxu3 %v480_v37 }
 0x118   : > { %v2207_v15 = vpop.permute.xlu2 %726 }
 0x11c   : > { %v469_v38 = vpop.permute.xlu1 %468  ;;  %v467_v39 = vpop.permute.xlu0 %466 }
 0x11d   : > { %v477_v40 = vsel %vm476_vm12, %v465_v26, %v467_v39  ;;  %v478_v41 = vsel %vm476_vm12, %v467_v39, %v469_v38  ;;  %v1762_v38 = vld [vmem:[#allocation2 + $0x24] sm:$0xf]  ;;  %v1764_v39 = vld [vmem:[#allocation2 + $0x34] sm:$0xf0] }
 0x11e   : > { %499 = vmatpush.bf16.msra.mxu0 %v477_v40  ;;  %1900 = vmatpush.bf16.msra.mxu2 %v477_v40 }
 0x11f   : > { %518 = vmatpush.bf16.msra.mxu1 %v478_v41  ;;  %1902 = vmatpush.bf16.msra.mxu3 %v478_v41 }
 0x120   : > { %v1040_v46 = vpop.permute.xlu2 %1039 }
 0x121   : > { %1664 = vmatmul.msk.bf16.vlgmr.msra.gmra.mxu0 %vm485_vm15, %v1871_v42  ;;  %v1041_v48 = vrot.slane %v1040_v46, 4  ;;  %1665 = vmatmul.msk.bf16.vlgmr.msra.gmra.mxu2 %vm485_vm15, %v1872_v45 }
 0x122   : > { %612 = vmatpush.bf16.msrb.mxu2 %v594_v43  ;;  %1666 = vmatmul.msk.bf16.vlgmr.msra.gmra.mxu1 %vm485_vm15, %v1871_v42 }
 0x123   : > { %631 = vmatpush.bf16.msrb.mxu3 %v595_v44  ;;  %v1042_v54 = vsel %vm879_vm0, %v1041_v48, %v1040_v46  ;;  %v1050_v55 = vunpack.c.l.b16 %v1041_v48  ;;  %v1051_v56 = vunpack.c.h.b16 %v1041_v48  ;;  %v1754_v46 = vld [vmem:[#allocation2 + $0x4] sm:$0xf] }
 0x124   : > { %v584_v47 = vpop.permute.xlu1 %583  ;;  %v582_v49 = vpop.permute.xlu0 %581  ;;  %1667 = vmatmul.msk.bf16.vlgmr.msra.gmra.mxu3 %vm485_vm15, %v1872_v45  ;;  %v1043_v59 = vunpack.c.l.b16 %v1042_v54  ;;  %v1044_v60 = vunpack.c.h.b16 %v1042_v54  ;;  %v1881_v45 = vld [vmem:[#allocation2 + $0x28] sm:$0xf]  ;;  %v1875_v54 = vld [vmem:[%s2557_s4 + $0x20] sm:$0xff] }
 0x125   : > { %v592_v52 = vsel %vm591_vm14, %v580_v35, %v582_v49  ;;  %v593_v53 = vsel %vm591_vm14, %v582_v49, %v584_v47  ;;  %vm1054_vm1 = vcmp.ne.s32.totalorder %v1050_v55, %v2041_v50  ;;  %vm1055_vm2 = vcmp.ne.s32.totalorder %v1051_v56, %v2044_v51  ;;  %v1880_v47 = vld [vmem:[#allocation2 + $0x10] sm:$0xf0]  ;;  %v1879_v49 = vld [vmem:[#allocation2 + $0x8] sm:$0xf] }
 0x126   : > { %613 = vmatpush.bf16.msrb.mxu2 %v592_v52  ;;  %vm1047_vm3 = vcmp.ne.s32.totalorder %v1043_v59, %v2041_v50  ;;  %vm1048_vm5 = vcmp.ne.s32.totalorder %v1044_v60, %v2044_v51  ;;  %vm2238_vm7 = vmpackc.low %vm1055_vm2, %vm1054_vm1  ;;  %v1767_v48 = vor.u32 %v1881_v45, %v1764_v39 }
 0x127   : > { %632 = vmatpush.bf16.msrb.mxu3 %v593_v53  ;;  %vm2242_vm9 = vmpackc.low %vm1048_vm5, %vm1047_vm3  ;;  %v1062_v19 = vsel %vm2238_vm7, %v2226_v58, 0  ;;  %v1064_v1 = vsel %vm2238_vm7, %v2228_v61, 0  ;;  %v1058_v2 = vsel %vm2238_vm7, %v2230_v62, 0  ;;  %v1060_v3 = vsel %vm2238_vm7, %v2232_v63, 0 }
 0x128   : > { %v1096_v4 = vunpack.c.l.b16 %v1062_v19  ;;  %v1099_v5 = vunpack.c.l.b16 %v1064_v1  ;;  %v1061_v8 = vsel %vm2242_vm9, %v2036_v34, 0  ;;  %v1063_v28 = vsel %vm2242_vm9, %v2046_v57, 0  ;;  %v876_v52 = vpop.permute.xlu2 %875 }
 0x129   : > { %v1095_v10 = vunpack.c.h.b16 %v1061_v8  ;;  %v1098_v11 = vunpack.c.h.b16 %v1063_v28  ;;  %v1094_v12 = vunpack.c.l.b16 %v1061_v8  ;;  %v1097_v20 = vunpack.c.l.b16 %v1063_v28 }
 0x12a   : > { %v1105_v21 = vpack.c.b16 %v1099_v5, %v1096_v4  ;;  %v1090_v22 = vunpack.c.l.b16 %v1058_v2  ;;  %v1093_v23 = vunpack.c.l.b16 %v1060_v3  ;;  %v1057_v24 = vsel %vm2242_vm9, %v2055_v7, 0  ;;  %v1874_v4 = vld [vmem:[%s2557_s4 + $0x18] sm:$0xff] }
 0x12b   : > { %v1104_v17 = vpack.c.b16 %v1098_v11, %v1095_v10  ;;  %v1103_v18 = vpack.c.b16 %v1097_v20, %v1094_v12  ;;  %v1059_v25 = vsel %vm2242_vm9, %v2053_v6, 0  ;;  %v1089_v26 = vunpack.c.h.b16 %v1057_v24 }
 0x12c   : > { %v737_v33 = vpop.permute.xlu1 %736  ;;  %v735_v9 = vpop.permute.xlu0 %734  ;;  %1116 = vrot.lane.b32.xlu1 %v1105_v21, %s1933_s12  ;;  %v1092_v35 = vunpack.c.h.b16 %v1059_v25  ;;  %v1088_v27 = vunpack.c.l.b16 %v1057_v24  ;;  %v1091_v29 = vunpack.c.l.b16 %v1059_v25  ;;  %v1102_v32 = vpack.c.b16 %v1093_v23, %v1090_v22 }
 0x12d   : > { %v741_v14 = vsel %vm738_vm8, %v2203_v36, %v735_v9  ;;  %v742_v13 = vsel %vm738_vm8, %v735_v9, %v737_v33  ;;  %1114 = vrot.lane.b32.xlu0 %v1104_v17, %s1933_s12  ;;  %1112 = vrot.lane.b32.xlu2 %v1103_v18, %s1933_s12  ;;  %v1882_v36 = vld [vmem:[#allocation2 + $0x30] sm:$0xf0]  ;;  %v1755_v53 = vor.u32 %v1880_v47, %v1754_v46  ;;  %v1883_v33 = vld [vmem:[%s2557_s4 + $0x40] sm:$0xff] }
 0x12e   : > { %759 = vmatpush.bf16.msrb.mxu0 %v741_v14  ;;  %778 = vmatpush.bf16.msrb.mxu1 %v742_v13  ;;  %v1763_v42 = vor.u32 %v1882_v36, %v1762_v38  ;;  %v1101_v43 = vpack.c.b16 %v1092_v35, %v1089_v26  ;;  %v1100_v44 = vpack.c.b16 %v1091_v29, %v1088_v27 }
 0x130   : > { %v870_v5 = vpop.permute.xlu2 %869 }
 0x131   : > { %1704 = vmatmul.msk.bf16.vlgmr.msrb.gmra.mxu2 %vm485_vm15, %v1873_v30 }
 0x134   : > { %v731_v31 = vpop.permute.xlu1 %730  ;;  %v729_v37 = vpop.permute.xlu0 %728  ;;  %1706 = vmatmul.msk.bf16.vlgmr.msrb.gmra.mxu3 %vm485_vm15, %v1873_v30  ;;  %1110 = vrot.lane.b32.xlu1 %v1102_v32, %s1933_s12 }
 0x135   : > { %v739_v40 = vsel %vm738_vm8, %v2207_v15, %v729_v37  ;;  %v740_v41 = vsel %vm738_vm8, %v729_v37, %v731_v31  ;;  %1108 = vrot.lane.b32.xlu0 %v1101_v43, %s1933_s12  ;;  %1106 = vrot.lane.b32.xlu2 %v1100_v44, %s1933_s12  ;;  %v1756_v15 = vld [vmem:[#allocation2 + $0x14] sm:$0xf0]  ;;  %v1876_v37 = vld [vmem:[%s2557_s4 + $0x28] sm:$0xff] }
 0x136   : > { %760 = vmatpush.bf16.msrb.mxu0 %v739_v40  ;;  %779 = vmatpush.bf16.msrb.mxu1 %v740_v41  ;;  %v1759_v55 = vor.u32 %v1879_v49, %v1756_v15  ;;  %v1838_v49 = vld [vmem:[#allocation2 + $0x2c] sm:$0xf]  ;;  %v1890_v15 = vld [vmem:[#allocation2 + $0x38] sm:$0xf0] }
 0x139   : > { %1720 = vmatmul.msk.bf16.vlgmr.msrb.gmra.mxu0 %vm485_vm15, %v1875_v54  ;;  %1722 = vmatmul.msk.bf16.vlgmr.msrb.gmra.mxu1 %vm485_vm15, %v1875_v54 }
 0x13a   : > { %991 = vmatpush.bf16.msra.mxu0 %v1763_v42  ;;  %1010 = vmatpush.bf16.msra.mxu1 %v1767_v48 }
 0x13c   : > { %v874_v56 = vpop.permute.xlu1 %873  ;;  %v1179_v60 = vpop.permute.xlu0 %1178 }
 0x13d   : > { %v882_v59 = vsel %vm879_vm0, %v874_v56, %v876_v52  ;;  %v1180_v0 = vrot.slane %v1179_v60, 4  ;;  %v1839_v56 = vor.u32 %v1890_v15, %v1838_v49 }
 0x13e   : > { %992 = vmatpush.bf16.msra.mxu0 %v1755_v53  ;;  %1011 = vmatpush.bf16.msra.mxu1 %v1759_v55 }
 0x13f   : > { %900 = vmatpush.bf16.msra.mxu2 %v882_v59  ;;  %v1181_v16 = vsel %vm738_vm8, %v1180_v0, %v1179_v60  ;;  %v1189_v19 = vunpack.c.l.b16 %v1180_v0  ;;  %v1190_v1 = vunpack.c.h.b16 %v1180_v0  ;;  %v1832_v59 = vld [vmem:[#allocation2 + $0x34] sm:$0xf0]  ;;  %v1889_v60 = vld [vmem:[#allocation2 + $0x30] sm:$0xf0] }
 0x140   : > { %v1182_v2 = vunpack.c.l.b16 %v1181_v16  ;;  %v1183_v3 = vunpack.c.h.b16 %v1181_v16 }
 0x141   : > { %vm1193_vm10 = vcmp.ne.s32.totalorder %v1189_v19, %v2041_v50  ;;  %vm1194_vm11 = vcmp.ne.s32.totalorder %v1190_v1, %v2044_v51  ;;  %1705 = vmatmul.msk.bf16.gmra.mxu2 %vm485_vm15, %v1874_v4  ;;  %v1888_v19 = vld [vmem:[#allocation2 + $0x28] sm:$0xf]  ;;  %v1830_v1 = vld [vmem:[#allocation2 + $0x24] sm:$0xf] }
 0x142   : > { %vm1186_vm14 = vcmp.ne.s32.totalorder %v1182_v2, %v2041_v50  ;;  %vm1187_vm1 = vcmp.ne.s32.totalorder %v1183_v3, %v2044_v51  ;;  %vm2298_vm2 = vmpackc.low %vm1194_vm11, %vm1193_vm10  ;;  %v1835_v2 = vor.u32 %v1888_v19, %v1832_v59  ;;  %v1831_v3 = vor.u32 %v1889_v60, %v1830_v1  ;;  %v345_v19 = vld [vmem:[%s2435_s25 + $0x8] sm:$0xff] }
 0x143   : > { %vm2305_vm3 = vmpackc.low %vm1187_vm1, %vm1186_vm14  ;;  %v1201_v9 = vsel %vm2298_vm2, %v2226_v58, 0  ;;  %v1203_v10 = vsel %vm2298_vm2, %v2228_v61, 0  ;;  %v1197_v26 = vsel %vm2298_vm2, %v2230_v62, 0  ;;  %v1199_v35 = vsel %vm2298_vm2, %v2232_v63, 0 }
 0x144   : > { %v868_v28 = vpop.permute.xlu1 %867  ;;  %v878_v11 = vpop.permute.xlu0 %877  ;;  %v1235_v20 = vunpack.c.l.b16 %v1201_v9  ;;  %v1238_v21 = vunpack.c.l.b16 %v1203_v10  ;;  %v1200_v14 = vsel %vm2305_vm3, %v2036_v34, 0  ;;  %1707 = vmatmul.msk.bf16.gmra.mxu3 %vm485_vm15, %v1874_v4  ;;  %v1202_v17 = vsel %vm2305_vm3, %v2046_v57, 0  ;;  %v1826_v4 = vld [vmem:[#allocation2 + $0xc] sm:$0xf]  ;;  %v1885_v9 = vld [vmem:[#allocation2 + $0x8] sm:$0xf] }
 0x145   : > { %v880_v12 = vsel %vm879_vm0, %v868_v28, %v870_v5  ;;  %v883_v13 = vsel %vm879_vm0, %v876_v52, %v878_v11  ;;  %v1234_v18 = vunpack.c.h.b16 %v1200_v14  ;;  %v1233_v22 = vunpack.c.l.b16 %v1200_v14  ;;  %v1877_v52 = vld [vmem:[%s2557_s4 + $0x30] sm:$0xff]  ;;  %v1820_v10 = vld [vmem:[#allocation2 + $0x14] sm:$0xf0] }
 0x146   : > { %901 = vmatpush.bf16.msra.mxu2 %v880_v12  ;;  %919 = vmatpush.bf16.msra.mxu3 %v883_v13  ;;  %v1244_v23 = vpack.c.b16 %v1238_v21, %v1235_v20  ;;  %v1237_v24 = vunpack.c.h.b16 %v1202_v17  ;;  %v1236_v25 = vunpack.c.l.b16 %v1202_v17  ;;  %v1196_v36 = vsel %vm2305_vm3, %v2055_v7, 0 }
 0x147   : > { %v1198_v30 = vsel %vm2305_vm3, %v2053_v6, 0  ;;  %v1229_v31 = vunpack.c.l.b16 %v1197_v26  ;;  %v1232_v32 = vunpack.c.l.b16 %v1199_v35  ;;  %v1228_v40 = vunpack.c.h.b16 %v1196_v36 }
 0x148   : > { %1255 = vrot.lane.b32.xlu1 %v1244_v23, %s1934_s13  ;;  %v1243_v27 = vpack.c.b16 %v1237_v24, %v1234_v18  ;;  %v1242_v29 = vpack.c.b16 %v1236_v25, %v1233_v22  ;;  %v1231_v41 = vunpack.c.h.b16 %v1198_v30  ;;  %v1227_v42 = vunpack.c.l.b16 %v1196_v36  ;;  %v1878_v22 = vld [vmem:[%s2557_s4 + $0x38] sm:$0xff] }
 0x149   : > { %v1230_v43 = vunpack.c.l.b16 %v1198_v30  ;;  %1721 = vmatmul.msk.bf16.gmra.mxu0 %vm485_vm15, %v1876_v37  ;;  %1723 = vmatmul.msk.bf16.gmra.mxu1 %vm485_vm15, %v1876_v37  ;;  %v1241_v45 = vpack.c.b16 %v1232_v32, %v1229_v31  ;;  %v1823_v21 = vor.u32 %v1885_v9, %v1820_v10  ;;  %v347_v9 = vld [vmem:[%s2435_s25 + $0x18] sm:$0xff] }
 0x14a   : > { %1253 = vrot.lane.b32.xlu0 %v1243_v27, %s1934_s13  ;;  %1251 = vrot.lane.b32.xlu2 %v1242_v29, %s1934_s13  ;;  %v1240_v47 = vpack.c.b16 %v1231_v41, %v1228_v40 }
 0x14b   : > { %v1239_v48 = vpack.c.b16 %v1230_v43, %v1227_v42 }
 0x14c   : > { %v1432_v38 = vpop.permute.xlu1 %1431  ;;  %v872_v39 = vpop.permute.xlu0 %871 }
 0x14d   : > { %v881_v44 = vsel %vm879_vm0, %v870_v5, %v872_v39  ;;  %v1433_v46 = vrot.slane %v1432_v38, 4  ;;  %v1887_v5 = vld [vmem:[#allocation2 + $0x18] sm:$0xf0] }
 0x14e   : > { %920 = vmatpush.bf16.msra.mxu3 %v881_v44  ;;  %v1827_v28 = vor.u32 %v1887_v5, %v1826_v4 }
 0x14f   : > { %v1434_v53 = vsel %vm476_vm12, %v1433_v46, %v1432_v38  ;;  %v1442_v54 = vunpack.c.l.b16 %v1433_v46  ;;  %v1443_v55 = vunpack.c.h.b16 %v1433_v46 }
 0x150   : > { %1249 = vrot.lane.b32.xlu1 %v1241_v45, %s1934_s13  ;;  %v1435_v0 = vunpack.c.l.b16 %v1434_v53  ;;  %v1436_v16 = vunpack.c.h.b16 %v1434_v53 }
 0x151   : > { %1736 = vmatmul.msk.bf16.vlgmr.msra.gmra.mxu2 %vm485_vm15, %v1877_v52  ;;  %vm1446_vm0 = vcmp.ne.s32.totalorder %v1442_v54, %v2041_v50  ;;  %vm1447_vm5 = vcmp.ne.s32.totalorder %v1443_v55, %v2044_v51  ;;  %v1891_v55 = vld [vmem:[%s2557_s4 + $0x50] sm:$0xff] }
 0x152   : > { %1247 = vrot.lane.b32.xlu0 %v1240_v47, %s1934_s13  ;;  %1245 = vrot.lane.b32.xlu2 %v1239_v48, %s1934_s13  ;;  %s1939_s13 = smov 112   ;;  %vm1439_vm12 = vcmp.ne.s32.totalorder %v1435_v0, %v2041_v50  ;;  %vm1440_vm7 = vcmp.ne.s32.totalorder %v1436_v16, %v2044_v51  ;;  %vm2363_vm8 = vmpackc.low %vm1447_vm5, %vm1446_vm0  ;;  %v1818_v50 = vld [vmem:[#allocation2 + $0x4] sm:$0xf]  ;;  %v1886_v51 = vld [vmem:[#allocation2 + $0x10] sm:$0xf0] }
 0x153   : > { %vm2371_vm9 = vmpackc.low %vm1440_vm7, %vm1439_vm12  ;;  %v1454_v12 = vsel %vm2363_vm8, %v2226_v58, 0  ;;  %v1456_v20 = vsel %vm2363_vm8, %v2228_v61, 0  ;;  %v1819_v14 = vor.u32 %v1886_v51, %v1818_v50  ;;  %v344_v16 = vld [vmem:[%s2435_s25] sm:$0xff] }
 0x154   : > { %1738 = vmatmul.msk.bf16.vlgmr.msra.gmra.mxu3 %vm485_vm15, %v1877_v52  ;;  %v1488_v13 = vunpack.c.l.b16 %v1454_v12  ;;  %v1491_v17 = vunpack.c.l.b16 %v1456_v20  ;;  %v1453_v18 = vsel %vm2371_vm9, %v2036_v34, 0  ;;  %v1455_v58 = vsel %vm2371_vm9, %v2046_v57, 0  ;;  %v1892_v20 = vld [vmem:[%s2557_s4 + $0x58] sm:$0xff] }
 0x155   : > { %v1487_v61 = vunpack.c.h.b16 %v1453_v18  ;;  %v1490_v24 = vunpack.c.h.b16 %v1455_v58  ;;  %v1486_v25 = vunpack.c.l.b16 %v1453_v18  ;;  %v1489_v26 = vunpack.c.l.b16 %v1455_v58 }
 0x156   : > { %v1497_v23 = vpack.c.b16 %v1491_v17, %v1488_v13  ;;  %v1450_v34 = vsel %vm2363_vm8, %v2230_v62, 0  ;;  %v1452_v57 = vsel %vm2363_vm8, %v2232_v63, 0  ;;  %v1449_v29 = vsel %vm2371_vm9, %v2055_v7, 0  ;;  %v1884_v63 = vld [vmem:[%s2557_s4 + $0x48] sm:$0xff] }
 0x157   : > { %v1496_v35 = vpack.c.b16 %v1490_v24, %v1487_v61  ;;  %v1495_v27 = vpack.c.b16 %v1489_v26, %v1486_v25  ;;  %v1451_v36 = vsel %vm2371_vm9, %v2053_v6, 0  ;;  %v1482_v62 = vunpack.c.l.b16 %v1450_v34  ;;  %v348_v25 = vld [vmem:[%s2435_s25 + $0x20] sm:$0xff]  ;;  %v349_v26 = vld [vmem:[%s2435_s25 + $0x28] sm:$0xff] }
 0x158   : > { %1368 = vrot.lane.b32.xlu1 %v1839_v56, %s1939_s13  ;;  %v1485_v30 = vunpack.c.l.b16 %v1452_v57  ;;  %v1481_v31 = vunpack.c.h.b16 %v1449_v29  ;;  %v1484_v32 = vunpack.c.h.b16 %v1451_v36  ;;  %v1480_v37 = vunpack.c.l.b16 %v1449_v29 }
 0x159   : > { %1768 = vmatmul.msk.bf16.vlgmr.msra.gmra.mxu0 %vm485_vm15, %v1883_v33  ;;  %1770 = vmatmul.msk.bf16.vlgmr.msra.gmra.mxu1 %vm485_vm15, %v1883_v33  ;;  %v1483_v38 = vunpack.c.l.b16 %v1451_v36 }
 0x15a   : > { %1366 = vrot.lane.b32.xlu0 %v1835_v2, %s1939_s13  ;;  %1364 = vrot.lane.b32.xlu2 %v1831_v3, %s1939_s13  ;;  %v1494_v7 = vpack.c.b16 %v1485_v30, %v1482_v62  ;;  %v1493_v6 = vpack.c.b16 %v1484_v32, %v1481_v31  ;;  %v1893_v32 = vld [vmem:[%s2557_s4 + $0x60] sm:$0xff] }
 0x15b   : > { %v1492_v39 = vpack.c.b16 %v1483_v38, %v1480_v37 }
 0x160   : > { %1362 = vrot.lane.b32.xlu1 %v1827_v28, %s1939_s13  ;;  %v346_v28 = vld [vmem:[%s2435_s25 + $0x10] sm:$0xff] }
 0x161   : > { %1737 = vmatmul.msk.bf16.gmra.mxu2 %vm485_vm15, %v1878_v22 }
 0x162   : > { %1360 = vrot.lane.b32.xlu0 %v1823_v21, %s1939_s13  ;;  %1358 = vrot.lane.b32.xlu2 %v1819_v14, %s1939_s13 }
 0x164   : > { %1739 = vmatmul.msk.bf16.gmra.mxu3 %vm485_vm15, %v1878_v22 }
 0x168   : > { %1508 = vrot.lane.b32.xlu1 %v1497_v23, %s1932_s11 }
 0x169   : > { %1769 = vmatmul.msk.bf16.gmra.mxu0 %vm485_vm15, %v1884_v63  ;;  %1771 = vmatmul.msk.bf16.gmra.mxu1 %vm485_vm15, %v1884_v63 }
 0x16a   : > { %1506 = vrot.lane.b32.xlu0 %v1496_v35, %s1932_s11  ;;  %1504 = vrot.lane.b32.xlu2 %v1495_v27, %s1932_s11 }
 0x170   : > { %1502 = vrot.lane.b32.xlu1 %v1494_v7, %s1932_s11 }
 0x172   : > { %1500 = vrot.lane.b32.xlu0 %v1493_v6, %s1932_s11  ;;  %1498 = vrot.lane.b32.xlu2 %v1492_v39, %s1932_s11 }
 0x187   : > { %v1113_v40 = vpop.permute.xlu2 %1112 }
 0x18f   : > { %v1107_v15 = vpop.permute.xlu2 %1106 }
 0x19e   : > { %v1117_v41 = vpop.permute.xlu1 %1116  ;;  %v501_v45 = vpop.f32.mrf.mxu0 }
 0x19f   : > { %v1115_v42 = vpop.permute.xlu0 %1114  ;;  %v520_v46 = vpop.f32.mrf.mxu1  ;;  %v530_v2 = vadd.f32 %v501_v45, %v344_v16 }
 0x1a0   : > { %v1120_v43 = vsel %vm802_vm4, %v1113_v40, %v1115_v42  ;;  %v1121_v44 = vsel %vm802_vm4, %v1115_v42, %v1117_v41  ;;  %v531_v3 = vadd.f32 %v520_v46, %v345_v19  ;;  %v350_v40 = vld [vmem:[%s2435_s25 + $0x30] sm:$0xff]  ;;  %v351_v41 = vld [vmem:[%s2435_s25 + $0x38] sm:$0xff] }
 0x1a1   : > { %1138 = vmatpush.bf16.msrb.mxu2 %v1120_v43  ;;  %1157 = vmatpush.bf16.msrb.mxu3 %v1121_v44 }
 0x1a4   : > { %v506_v47 = vpop.f32.mrf.mxu2  ;;  %v1252_v1 = vpop.permute.xlu2 %1251 }
 0x1a5   : > { %v534_v62 = vadd.f32 %v506_v47, %v348_v25 }
 0x1a6   : > { %v1111_v49 = vpop.permute.xlu1 %1110  ;;  %v503_v56 = vpop.f32.mrf.mxu0 }
 0x1a7   : > { %v525_v48 = vpop.f32.mrf.mxu3  ;;  %v1109_v52 = vpop.permute.xlu0 %1108  ;;  %v532_v13 = vadd.f32 %v503_v56, %v346_v28 }
 0x1a8   : > { %v1118_v53 = vsel %vm802_vm4, %v1107_v15, %v1109_v52  ;;  %v1119_v54 = vsel %vm802_vm4, %v1109_v52, %v1111_v49  ;;  %v522_v59 = vpop.f32.mrf.mxu1  ;;  %v535_v30 = vadd.f32 %v525_v48, %v349_v26 }
 0x1a9   : > { %1139 = vmatpush.bf16.msrb.mxu2 %v1118_v53  ;;  %1158 = vmatpush.bf16.msrb.mxu3 %v1119_v54  ;;  %v533_v17 = vadd.f32 %v522_v59, %v347_v9 }
 0x1ac   : > { %1784 = vmatmul.msk.bf16.vlgmr.msrb.gmra.mxu2 %vm485_vm15, %v1891_v55  ;;  %1786 = vmatmul.msk.bf16.vlgmr.msrb.gmra.mxu3 %vm485_vm15, %v1891_v55  ;;  %v2427_v60 = vpop.f32.mrf.mxu2  ;;  %v1246_v21 = vpop.permute.xlu2 %1245 }
 0x1ad   : > { %v536_v48 = vadd.f32 %v2427_v60, %v350_v40 }
 0x1af   : > { %v2429_v0 = vpop.f32.mrf.mxu3 }
 0x1b0   : > { %v537_v49 = vadd.f32 %v2429_v0, %v351_v41 }
 0x1b4   : > { %v615_v33 = vpop.f32.mrf.mxu2  ;;  %v1365_v37 = vpop.permute.xlu2 %1364 }
 0x1b5   : > { %v644_v5 = vadd.f32 %v615_v33, %v530_v2 }
 0x1b6   : > { %v762_v10 = vpop.f32.mrf.mxu0  ;;  %v781_v11 = vpop.f32.mrf.mxu1 }
 0x1b7   : > { %v634_v4 = vpop.f32.mrf.mxu3  ;;  %v2441_v51 = vadd.f32 %v762_v10, %v644_v5  ;;  %v1895_v5 = vld [vmem:[%s2557_s4 + $0x70] sm:$0xff] }
 0x1b8   : > { %v645_v8 = vadd.f32 %v634_v4, %v531_v3  ;;  %v1894_v4 = vld [vmem:[%s2557_s4 + $0x68] sm:$0xff] }
 0x1ba   : > { %v1256_v50 = vpop.permute.xlu1 %1255  ;;  %v2443_v12 = vadd.f32 %v781_v11, %v645_v8 }
 0x1bc   : > { %v1254_v14 = vpop.permute.xlu0 %1253  ;;  %1785 = vmatmul.msk.bf16.gmra.mxu2 %vm485_vm15, %v1892_v20  ;;  %1787 = vmatmul.msk.bf16.gmra.mxu3 %vm485_vm15, %v1892_v20  ;;  %v617_v58 = vpop.f32.mrf.mxu2 }
 0x1bd   : > { %v1259_v18 = vsel %vm661_vm13, %v1252_v1, %v1254_v14  ;;  %v1260_v22 = vsel %vm661_vm13, %v1254_v14, %v1256_v50  ;;  %v646_v23 = vadd.f32 %v617_v58, %v532_v13  ;;  %v1359_v55 = vpop.permute.xlu2 %1358 }
 0x1be   : > { %1277 = vmatpush.bf16.msrb.mxu0 %v1259_v18  ;;  %1296 = vmatpush.bf16.msrb.mxu1 %v1260_v22  ;;  %v764_v34 = vpop.f32.mrf.mxu0  ;;  %v783_v57 = vpop.f32.mrf.mxu1  ;;  %v1896_v18 = vld [vmem:[%s2557_s4 + $0x78] sm:$0xff]  ;;  %v1898_v22 = vld [vmem:[%s2557_s4 + $0x88] sm:$0xff] }
 0x1bf   : > { %v636_v61 = vpop.f32.mrf.mxu3  ;;  %v2454_v27 = vadd.f32 %v764_v34, %v646_v23 }
 0x1c0   : > { %v647_v24 = vadd.f32 %v636_v61, %v533_v17  ;;  %v1897_v17 = vld [vmem:[%s2557_s4 + $0x80] sm:$0xff] }
 0x1c2   : > { %v1250_v35 = vpop.permute.xlu1 %1249  ;;  %v2456_v29 = vadd.f32 %v783_v57, %v647_v24 }
 0x1c4   : > { %v1248_v36 = vpop.permute.xlu0 %1247  ;;  %v620_v38 = vpop.f32.mrf.mxu2 }
 0x1c5   : > { %v1257_v63 = vsel %vm661_vm13, %v1246_v21, %v1248_v36  ;;  %v1258_v31 = vsel %vm661_vm13, %v1248_v36, %v1250_v35  ;;  %v648_v6 = vadd.f32 %v620_v38, %v534_v62  ;;  %vm1370_vm13 = vcmask 916480   ;;  %v1505_v8 = vpop.permute.xlu2 %1504 }
 0x1c6   : > { %1278 = vmatpush.bf16.msrb.mxu0 %v1257_v63  ;;  %1297 = vmatpush.bf16.msrb.mxu1 %v1258_v31  ;;  %v767_v42 = vpop.f32.mrf.mxu0  ;;  %v786_v43 = vpop.f32.mrf.mxu1 }
 0x1c7   : > { %v639_v7 = vpop.f32.mrf.mxu3  ;;  %v2467_v45 = vadd.f32 %v767_v42, %v648_v6 }
 0x1c8   : > { %v649_v39 = vadd.f32 %v639_v7, %v535_v30 }
 0x1c9   : > { %1800 = vmatmul.msk.bf16.vlgmr.msrb.gmra.mxu0 %vm485_vm15, %v1893_v32  ;;  %1802 = vmatmul.msk.bf16.vlgmr.msrb.gmra.mxu1 %vm485_vm15, %v1893_v32 }
 0x1ca   : > { %v1369_v44 = vpop.permute.xlu1 %1368  ;;  %v2469_v46 = vadd.f32 %v786_v43, %v649_v39 }
 0x1cc   : > { %v1367_v47 = vpop.permute.xlu0 %1366  ;;  %v622_v53 = vpop.f32.mrf.mxu2 }
 0x1cd   : > { %v1373_v15 = vsel %vm1370_vm13, %v1365_v37, %v1367_v47  ;;  %v1374_v52 = vsel %vm1370_vm13, %v1367_v47, %v1369_v44  ;;  %v650_v56 = vadd.f32 %v622_v53, %v536_v48  ;;  %v1499_v20 = vpop.permute.xlu2 %1498 }
 0x1ce   : > { %1391 = vmatpush.bf16.msra.mxu2 %v1373_v15  ;;  %1410 = vmatpush.bf16.msra.mxu3 %v1374_v52  ;;  %v769_v16 = vpop.f32.mrf.mxu0  ;;  %v788_v19 = vpop.f32.mrf.mxu1 }
 0x1cf   : > { %v641_v54 = vpop.f32.mrf.mxu3  ;;  %v2475_v2 = vadd.f32 %v769_v16, %v650_v56 }
 0x1d0   : > { %v651_v59 = vadd.f32 %v641_v54, %v537_v49 }
 0x1d2   : > { %v1363_v1 = vpop.permute.xlu1 %1362  ;;  %v2477_v3 = vadd.f32 %v788_v19, %v651_v59 }
 0x1d4   : > { %v1361_v60 = vpop.permute.xlu0 %1360  ;;  %v903_v58 = vpop.f32.mrf.mxu2 }
 0x1d5   : > { %v1371_v0 = vsel %vm1370_vm13, %v1359_v55, %v1361_v60  ;;  %v1372_v33 = vsel %vm1370_vm13, %v1361_v60, %v1363_v1  ;;  %v932_v53 = vadd.f32 %v903_v58, %v2441_v51 }
 0x1d6   : > { %1392 = vmatpush.bf16.msra.mxu2 %v1371_v0  ;;  %1411 = vmatpush.bf16.msra.mxu3 %v1372_v33  ;;  %v994_v25 = vpop.f32.mrf.mxu0  ;;  %v1013_v26 = vpop.f32.mrf.mxu1 }
 0x1d7   : > { %v922_v61 = vpop.f32.mrf.mxu3  ;;  %v1023_v19 = vadd.f32 %v994_v25, %v932_v53 }
 0x1d8   : > { %v933_v54 = vadd.f32 %v922_v61, %v2443_v12 }
 0x1d9   : > { %1801 = vmatmul.msk.bf16.gmra.mxu0 %vm485_vm15, %v1894_v4  ;;  %1803 = vmatmul.msk.bf16.gmra.mxu1 %vm485_vm15, %v1894_v4 }
 0x1da   : > { %1840 = vmatmul.msk.bf16.vlgmr.msra.gmra.mxu2 %vm485_vm15, %v1895_v5  ;;  %1842 = vmatmul.msk.bf16.vlgmr.msra.gmra.mxu3 %vm485_vm15, %v1895_v5  ;;  %v1509_v28 = vpop.permute.xlu1 %1508  ;;  %v1024_v1 = vadd.f32 %v1013_v26, %v933_v54 }
 0x1dc   : > { %v1507_v9 = vpop.permute.xlu0 %1506  ;;  %v905_v23 = vpop.f32.mrf.mxu2 }
 0x1dd   : > { %v1512_v10 = vsel %vm400_vm6, %v1505_v8, %v1507_v9  ;;  %v1513_v11 = vsel %vm400_vm6, %v1507_v9, %v1509_v28  ;;  %v934_v33 = vadd.f32 %v905_v23, %v2454_v27 }
 0x1de   : > { %1530 = vmatpush.bf16.msra.mxu0 %v1512_v10  ;;  %1549 = vmatpush.bf16.msra.mxu1 %v1513_v11  ;;  %v996_v35 = vpop.f32.mrf.mxu0  ;;  %v1015_v36 = vpop.f32.mrf.mxu1 }
 0x1df   : > { %v924_v24 = vpop.f32.mrf.mxu3 }
 0x1e0   : > { %v935_v4 = vadd.f32 %v924_v24, %v2456_v29 }
 0x1e2   : > { %v1503_v50 = vpop.permute.xlu1 %1502 }
 0x1e4   : > { %v1501_v21 = vpop.permute.xlu0 %1500  ;;  %v908_v34 = vpop.f32.mrf.mxu2 }
 0x1e5   : > { %v1510_v14 = vsel %vm400_vm6, %v1499_v20, %v1501_v21  ;;  %v1511_v13 = vsel %vm400_vm6, %v1501_v21, %v1503_v50  ;;  %v1025_v50 = vadd.f32 %v996_v35, %v934_v33  ;;  %v1026_v20 = vadd.f32 %v1015_v36, %v935_v4 }
 0x1e6   : > { %1531 = vmatpush.bf16.msra.mxu0 %v1510_v14  ;;  %1550 = vmatpush.bf16.msra.mxu1 %v1511_v13  ;;  %v999_v63 = vpop.f32.mrf.mxu0  ;;  %v1018_v31 = vpop.f32.mrf.mxu1  ;;  %v936_v13 = vadd.f32 %v908_v34, %v2467_v45 }
 0x1e7   : > { %v927_v57 = vpop.f32.mrf.mxu3 }
 0x1e8   : > { %v1027_v25 = vadd.f32 %v999_v63, %v936_v13 }
 0x1e9   : > { %1856 = vmatmul.msk.bf16.vlgmr.msra.gmra.mxu0 %vm485_vm15, %v1897_v17  ;;  %1858 = vmatmul.msk.bf16.vlgmr.msra.gmra.mxu1 %vm485_vm15, %v1897_v17  ;;  %v937_v17 = vadd.f32 %v927_v57, %v2469_v46 }
 0x1ea   : > { %1841 = vmatmul.msk.bf16.gmra.mxu2 %vm485_vm15, %v1896_v18  ;;  %1843 = vmatmul.msk.bf16.gmra.mxu3 %vm485_vm15, %v1896_v18 }
 0x1eb   : > { %v1028_v26 = vadd.f32 %v1018_v31, %v937_v17 }
 0x1ec   : > { %v2510_v62 = vpop.f32.mrf.mxu2 }
 0x1ed   : > { %v938_v45 = vadd.f32 %v2510_v62, %v2475_v2 }
 0x1ee   : > { %v2514_v38 = vpop.f32.mrf.mxu0  ;;  %v2516_v7 = vpop.f32.mrf.mxu1 }
 0x1ef   : > { %v2512_v30 = vpop.f32.mrf.mxu3 }
 0x1f0   : > { %v939_v46 = vadd.f32 %v2512_v30, %v2477_v3 }
 0x1f9   : > { %1857 = vmatmul.msk.bf16.gmra.mxu0 %vm485_vm15, %v1898_v22  ;;  %1859 = vmatmul.msk.bf16.gmra.mxu1 %vm485_vm15, %v1898_v22 }
 0x22f   : > { %v1141_v32 = vpop.f32.mrf.mxu2  ;;  %v1160_v37 = vpop.f32.mrf.mxu3 }
 0x230   : > { %v1170_v60 = vadd.f32 %v1141_v32, %v1023_v19  ;;  %v1171_v0 = vadd.f32 %v1160_v37, %v1024_v1 }
 0x237   : > { %v1143_v6 = vpop.f32.mrf.mxu2  ;;  %v1162_v39 = vpop.f32.mrf.mxu3 }
 0x238   : > { %v1172_v29 = vadd.f32 %v1143_v6, %v1025_v50  ;;  %v1173_v14 = vadd.f32 %v1162_v39, %v1026_v20 }
 0x23f   : > { %v1146_v42 = vpop.f32.mrf.mxu2  ;;  %v1165_v43 = vpop.f32.mrf.mxu3 }
 0x240   : > { %v1174_v6 = vadd.f32 %v1146_v42, %v1027_v25  ;;  %v1175_v39 = vadd.f32 %v1165_v43, %v1028_v26  ;;  %v1030_v42 = vadd.f32 %v2516_v7, %v939_v46 }
 0x246   : > { %v1280_v40 = vpop.f32.mrf.mxu0  ;;  %v1299_v41 = vpop.f32.mrf.mxu1 }
 0x247   : > { %v2518_v48 = vpop.f32.mrf.mxu2  ;;  %v2520_v49 = vpop.f32.mrf.mxu3  ;;  %v1309_v5 = vadd.f32 %v1280_v40, %v1170_v60  ;;  %v1310_v8 = vadd.f32 %v1299_v41, %v1171_v0 }
 0x248   : > { %v1177_v62 = vadd.f32 %v2520_v49, %v1030_v42 }
 0x24e   : > { %v1282_v44 = vpop.f32.mrf.mxu0  ;;  %v1301_v47 = vpop.f32.mrf.mxu1 }
 0x24f   : > { %v1311_v18 = vadd.f32 %v1282_v44, %v1172_v29  ;;  %v1312_v22 = vadd.f32 %v1301_v47, %v1173_v14  ;;  %v1029_v44 = vadd.f32 %v2514_v38, %v938_v45 }
 0x251   : > { %v1176_v2 = vadd.f32 %v2518_v48, %v1029_v44 }
 0x256   : > { %v1285_v15 = vpop.f32.mrf.mxu0  ;;  %v1304_v52 = vpop.f32.mrf.mxu1 }
 0x257   : > { %v1313_v34 = vadd.f32 %v1285_v15, %v1174_v6  ;;  %v1314_v57 = vadd.f32 %v1304_v52, %v1175_v39 }
 0x25d   : > { %v1394_v55 = vpop.f32.mrf.mxu2  ;;  %v1413_v56 = vpop.f32.mrf.mxu3 }
 0x25e   : > { %v1287_v59 = vpop.f32.mrf.mxu0  ;;  %v1306_v16 = vpop.f32.mrf.mxu1  ;;  %v1423_v28 = vadd.f32 %v1394_v55, %v1309_v5  ;;  %v1424_v9 = vadd.f32 %v1413_v56, %v1310_v8 }
 0x25f   : > { %v1315_v15 = vadd.f32 %v1287_v59, %v1176_v2  ;;  %v1316_v52 = vadd.f32 %v1306_v16, %v1177_v62 }
 0x265   : > { %v1396_v51 = vpop.f32.mrf.mxu2  ;;  %v1415_v10 = vpop.f32.mrf.mxu3 }
 0x266   : > { %v1533_v12 = vpop.f32.mrf.mxu0  ;;  %v1552_v11 = vpop.f32.mrf.mxu1  ;;  %v1425_v58 = vadd.f32 %v1396_v51, %v1311_v18  ;;  %v1426_v61 = vadd.f32 %v1415_v10, %v1312_v22 }
 0x267   : > { %v1562_v27 = vadd.f32 %v1533_v12, %v1423_v28  ;;  %v1563_v21 = vadd.f32 %v1552_v11, %v1424_v9 }
 0x269   : > { %1570 = vst [vmem:[%s2530_s19] sm:$0xff] %v1562_v27 }
 0x26a   : > { %1571 = vst [vmem:[%s2530_s19 + $0x8] sm:$0xff] %v1563_v21 }
 0x26d   : > { %v1399_v32 = vpop.f32.mrf.mxu2  ;;  %v1418_v37 = vpop.f32.mrf.mxu3 }
 0x26e   : > { %v1535_v23 = vpop.f32.mrf.mxu0  ;;  %v1554_v24 = vpop.f32.mrf.mxu1  ;;  %v1427_v63 = vadd.f32 %v1399_v32, %v1313_v34  ;;  %v1428_v31 = vadd.f32 %v1418_v37, %v1314_v57 }
 0x26f   : > { %v1564_v35 = vadd.f32 %v1535_v23, %v1425_v58  ;;  %v1565_v36 = vadd.f32 %v1554_v24, %v1426_v61 }
 0x271   : > { %1572 = vst [vmem:[%s2530_s19 + $0x10] sm:$0xff] %v1564_v35 }
 0x272   : > { %1573 = vst [vmem:[%s2530_s19 + $0x18] sm:$0xff] %v1565_v36 }
 0x275   : > { %v1401_v3 = vpop.f32.mrf.mxu2  ;;  %v1420_v30 = vpop.f32.mrf.mxu3 }
 0x276   : > { %v1538_v40 = vpop.f32.mrf.mxu0  ;;  %v1557_v41 = vpop.f32.mrf.mxu1  ;;  %v1429_v53 = vadd.f32 %v1401_v3, %v1315_v15  ;;  %v1430_v54 = vadd.f32 %v1420_v30, %v1316_v52 }
 0x277   : > { %v1566_v43 = vadd.f32 %v1538_v40, %v1427_v63  ;;  %v1567_v47 = vadd.f32 %v1557_v41, %v1428_v31 }
 0x279   : > { %1574 = vst [vmem:[%s2530_s19 + $0x20] sm:$0xff] %v1566_v43 }
 0x27a   : > { %1575 = vst [vmem:[%s2530_s19 + $0x28] sm:$0xff] %v1567_v47 }
 0x27e   : > { %v1540_v55 = vpop.f32.mrf.mxu0  ;;  %v1559_v38 = vpop.f32.mrf.mxu1 }
 0x27f   : > { %v1568_v56 = vadd.f32 %v1540_v55, %v1429_v53  ;;  %v1569_v7 = vadd.f32 %v1559_v38, %v1430_v54 }
 0x281   : > { %1576 = vst [vmem:[%s2530_s19 + $0x30] sm:$0xff] %v1568_v56 }
 0x282   : > { %1577 = vst [vmem:[%s2530_s19 + $0x38] sm:$0xff] %v1569_v7 }
 0x283 PF: > { %s15_s18 = sadd.s32 1, %s1929_s18  }
 0x284   : > { %p12_p4 = scmp.ge.s32.totalorder %s15_s18, 4  }
 0x286   :  { %14 = sbr.rel (!%p12_p4) target bundleno = 1 (0x1), region = 81 }

</bundles_post_ra>
